<compile_context>
chip_gen: v5e
topology: v5e:2x2
jax: 0.10.0
libtpu: 0.0.40
codegen_flags: <defaults>
</compile_context>

<pallas_src>
import functools

import jax
import jax.numpy as jnp
from jax.experimental import pallas as pl
from jax.experimental.pallas import tpu as pltpu


CFG = dict(img=32, patch=16, in_chans=3, dim=128, heads=4, depth=2,
           mlp=512, num_classes=2048)


# ------------------------------ in-kernel helpers ---------------------------

def _ln(x, g, b, eps=1e-6):
    """LayerNorm over the last dim, f32 math."""
    mu = jnp.mean(x, axis=-1, keepdims=True)
    xc = x - mu
    var = jnp.mean(xc * xc, axis=-1, keepdims=True)
    return (xc * jax.lax.rsqrt(var + eps)) * g + b


# ------------------------------ Pallas kernels ------------------------------

def _embed_kernel(bid_ref, tok_ref, w_ref, b_ref, cls_ref, pos_ref, o_ref):
    """Patch embed + cls token + pos embed for one image (grid over 3B images)."""
    del bid_ref  # consumed by the index_maps only
    bf16 = jnp.bfloat16
    emb = jnp.dot(tok_ref[...].astype(bf16), w_ref[...],
                  preferred_element_type=jnp.float32) + b_ref[...]      # (Np, D)
    o_ref[0:1, :] = cls_ref[...] + pos_ref[0:1, :]
    o_ref[1:, :] = emb + pos_ref[1:, :]


def pallas_embed(tokens, branch_id, bb):
    """tokens: (3B, Np, P); bb weights are stacked (2, ...) along branch axis."""
    B3, Np, P = tokens.shape
    D = bb["patch_w"].shape[2]
    N = Np + 1

    def wmap(shape):
        return pl.BlockSpec((None,) + shape,
                            lambda b, bid: (bid[b],) + (0,) * len(shape))

    return pl.pallas_call(
        _embed_kernel,
        out_shape=jax.ShapeDtypeStruct((B3, N, D), jnp.float32),
        grid_spec=pltpu.PrefetchScalarGridSpec(
            num_scalar_prefetch=1,
            grid=(B3,),
            in_specs=[pl.BlockSpec((None, Np, P), lambda b, bid: (b, 0, 0)),
                      wmap((P, D)),       # patch_w
                      wmap((1, D)),       # patch_b
                      wmap((1, D)),       # cls_token
                      wmap((N, D))],      # pos_embed
            out_specs=pl.BlockSpec((None, N, D), lambda b, bid: (b, 0, 0)),
        ),
        compiler_params=pltpu.CompilerParams(dimension_semantics=("parallel",)),
    )(branch_id, tokens, bb["patch_w"], bb["patch_b"], bb["cls_token"],
      bb["pos_embed"])


def _block_kernel(bid_ref, x_ref, ln1g, ln1b, qkvw, qkvb, projw, projb,
                  ln2g, ln2b, fc1w, fc1b, fc2w, fc2b, o_ref, *, heads):
    """Fused pre-LN transformer block for one image (grid over 3B images).

    All matmuls are bf16 operands with f32 accumulation; LN / softmax / GELU
    math stays in f32.  Heads are processed in a statically unrolled loop in
    the same grid step (no per-head grid iteration).
    """
    del bid_ref  # consumed by the index_maps only
    bf16 = jnp.bfloat16
    n, d = x_ref.shape
    dh = d // heads
    scale = dh ** -0.5

    x = x_ref[...]                                                      # (N, D) f32

    # --- attention sub-block ---
    h1 = _ln(x, ln1g[...], ln1b[...])
    qkv = jnp.dot(h1.astype(bf16), qkvw[...],
                  preferred_element_type=jnp.float32) + qkvb[...]       # (N, 3D)
    pw = projw[...]                                                     # (D, D) bf16

    attn = jnp.zeros((n, d), jnp.float32)
    for h in range(heads):
        qh = qkv[:, h * dh:(h + 1) * dh]
        kh = qkv[:, d + h * dh: d + (h + 1) * dh]
        vh = qkv[:, 2 * d + h * dh: 2 * d + (h + 1) * dh]
        # scores without materializing K^T: contract the last dims directly.
        s = jax.lax.dot_general(qh.astype(bf16), kh.astype(bf16),
                                (((1,), (1,)), ((), ())),
                                preferred_element_type=jnp.float32) * scale  # (N, N)
        m = jnp.max(s, axis=-1, keepdims=True)
        p = jnp.exp(s - m)
        denom = jnp.sum(p, axis=-1, keepdims=True)
        p = p * pl.reciprocal(denom, approx=True)                       # EUP divide
        ah = jnp.dot(p.astype(bf16), vh.astype(bf16),
                     preferred_element_type=jnp.float32)                # (N, Dh)
        # fold the output projection per head:  concat_h(ah) @ Wp == sum_h ah @ Wp[h]
        attn = attn + jnp.dot(ah.astype(bf16), pw[h * dh:(h + 1) * dh, :],
                              preferred_element_type=jnp.float32)
    x = x + attn + projb[...]

    # --- MLP sub-block ---
    h2 = _ln(x, ln2g[...], ln2b[...])
    h2 = jnp.dot(h2.astype(bf16), fc1w[...],
                 preferred_element_type=jnp.float32) + fc1b[...]
    # TODO(synk): timm ViT uses exact erf GELU; tanh approximation used here.
    h2 = jax.nn.gelu(h2, approximate=True)
    h2 = jnp.dot(h2.astype(bf16), fc2w[...],
                 preferred_element_type=jnp.float32) + fc2b[...]
    o_ref[...] = x + h2


def pallas_block(x, branch_id, blk, *, heads):
    """x: (3B, N, D); blk weights stacked (2, ...) along the branch axis."""
    B3, N, D = x.shape
    mlp = blk["fc1_w"].shape[2]
    kern = functools.partial(_block_kernel, heads=heads)

    def wmap(shape):
        return pl.BlockSpec((None,) + shape,
                            lambda b, bid: (bid[b],) + (0,) * len(shape))

    return pl.pallas_call(
        kern,
        out_shape=jax.ShapeDtypeStruct((B3, N, D), jnp.float32),
        grid_spec=pltpu.PrefetchScalarGridSpec(
            num_scalar_prefetch=1,
            grid=(B3,),
            in_specs=[
                pl.BlockSpec((None, N, D), lambda b, bid: (b, 0, 0)),   # x
                wmap((1, D)), wmap((1, D)),                             # ln1
                wmap((D, 3 * D)), wmap((1, 3 * D)),                     # qkv
                wmap((D, D)), wmap((1, D)),                             # proj
                wmap((1, D)), wmap((1, D)),                             # ln2
                wmap((D, mlp)), wmap((1, mlp)),                         # fc1
                wmap((mlp, D)), wmap((1, D)),                           # fc2
            ],
            out_specs=pl.BlockSpec((None, N, D), lambda b, bid: (b, 0, 0)),
        ),
        compiler_params=pltpu.CompilerParams(dimension_semantics=("parallel",)),
    )(branch_id, x, blk["ln1_g"], blk["ln1_b"], blk["qkv_w"], blk["qkv_b"],
      blk["proj_w"], blk["proj_b"], blk["ln2_g"], blk["ln2_b"],
      blk["fc1_w"], blk["fc1_b"], blk["fc2_w"], blk["fc2_b"])


def _head_kernel(cls_ref, g_ref, b_ref, w_ref, hb_ref, o_ref):
    """Final LN (on cls tokens only) + classification head."""
    x = _ln(cls_ref[...], g_ref[...], b_ref[...])
    o_ref[...] = (jnp.dot(x.astype(jnp.bfloat16), w_ref[...],
                          preferred_element_type=jnp.float32) + hb_ref[...])


def pallas_head(cls_tok, bb, branch):
    """Person-branch head: cls_tok (2B, D), branch selects the stacked weights."""
    Bc, D = cls_tok.shape
    C = bb["head_w"].shape[2]

    def wspec(shape):
        return pl.BlockSpec((None,) + shape,
                            lambda i: (branch,) + (0,) * len(shape))

    return pl.pallas_call(
        _head_kernel,
        out_shape=jax.ShapeDtypeStruct((Bc, C), jnp.float32),
        grid=(1,),
        in_specs=[pl.BlockSpec((Bc, D), lambda i: (0, 0)),
                  wspec((1, D)), wspec((1, D)),
                  wspec((D, C)), wspec((1, C))],
        out_specs=pl.BlockSpec((Bc, C), lambda i: (0, 0)),
    )(cls_tok, bb["ln_g"], bb["ln_b"], bb["head_w"], bb["head_b"])


def _pair_head_bbox_kernel(cls_ref, g_ref, b_ref, hw_ref, hb_ref,
                           x4_ref, bw_ref, bb_ref, o1_ref, o4_ref):
    """Pair-branch final LN + head, with the bboxes Linear fused in."""
    x = _ln(cls_ref[...], g_ref[...], b_ref[...])
    o1_ref[...] = (jnp.dot(x.astype(jnp.bfloat16), hw_ref[...],
                           preferred_element_type=jnp.float32) + hb_ref[...])
    # bbox matmul is (B,10)@(10,2048): kept f32 (no MXU benefit at K=10).
    o4_ref[...] = (jnp.dot(x4_ref[...], bw_ref[...],
                           preferred_element_type=jnp.float32) + bb_ref[...])


def pallas_pair_head_bbox(cls_tok, bb, x4, bbox_w, bbox_b, branch=0):
    Bc, D = cls_tok.shape
    C = bb["head_w"].shape[2]
    B4, K4 = x4.shape

    def wspec(shape):
        return pl.BlockSpec((None,) + shape,
                            lambda i: (branch,) + (0,) * len(shape))

    return pl.pallas_call(
        _pair_head_bbox_kernel,
        out_shape=(jax.ShapeDtypeStruct((Bc, C), jnp.float32),
                   jax.ShapeDtypeStruct((B4, C), jnp.float32)),
        grid=(1,),
        in_specs=[pl.BlockSpec((Bc, D), lambda i: (0, 0)),
                  wspec((1, D)), wspec((1, D)),
                  wspec((D, C)), wspec((1, C)),
                  pl.BlockSpec((B4, K4), lambda i: (0, 0)),
                  pl.BlockSpec((K4, C), lambda i: (0, 0)),
                  pl.BlockSpec((1, C), lambda i: (0, 0))],
        out_specs=(pl.BlockSpec((Bc, C), lambda i: (0, 0)),
                   pl.BlockSpec((B4, C), lambda i: (0, 0))),
    )(cls_tok, bb["ln_g"], bb["ln_b"], bb["head_w"], bb["head_b"],
      x4, bbox_w, bbox_b)


# ------------------------------ ViT (scaled) --------------------------------

def patchify(x_nchw, patch):
    """NCHW image -> (B, num_patches, C*ph*pw), PyTorch conv-weight flatten order."""
    B, C, H, W = x_nchw.shape
    gh, gw = H // patch, W // patch
    x = x_nchw.reshape(B, C, gh, patch, gw, patch)
    x = x.transpose(0, 2, 4, 1, 3, 5)              # B, gh, gw, C, ph, pw
    return x.reshape(B, gh * gw, C * patch * patch)


def init_vit_params(key, cfg):
    D = cfg["dim"]
    P = cfg["in_chans"] * cfg["patch"] * cfg["patch"]
    Np = (cfg["img"] // cfg["patch"]) ** 2
    ks = list(jax.random.split(key, 8 + 12 * cfg["depth"]))
    nk = iter(ks)

    def nrm(shape, dtype=jnp.bfloat16):
        return (jax.random.normal(next(nk), shape, jnp.float32) * 0.02).astype(dtype)

    params = {
        "patch_w": nrm((P, D)),                                    # bf16 (MXU)
        "patch_b": jnp.zeros((1, D), jnp.float32),
        "cls_token": nrm((1, D), jnp.float32),
        "pos_embed": nrm((Np + 1, D), jnp.float32),
        "ln_g": jnp.ones((1, D), jnp.float32),
        "ln_b": jnp.zeros((1, D), jnp.float32),
        "head_w": nrm((D, cfg["num_classes"])),                    # bf16 (MXU)
        "head_b": jnp.zeros((1, cfg["num_classes"]), jnp.float32),
        "blocks": [],
    }
    for _ in range(cfg["depth"]):
        params["blocks"].append({
            "ln1_g": jnp.ones((1, D), jnp.float32), "ln1_b": jnp.zeros((1, D), jnp.float32),
            "qkv_w": nrm((D, 3 * D)), "qkv_b": jnp.zeros((1, 3 * D), jnp.float32),
            "proj_w": nrm((D, D)), "proj_b": jnp.zeros((1, D), jnp.float32),
            "ln2_g": jnp.ones((1, D), jnp.float32), "ln2_b": jnp.zeros((1, D), jnp.float32),
            "fc1_w": nrm((D, cfg["mlp"])), "fc1_b": jnp.zeros((1, cfg["mlp"]), jnp.float32),
            "fc2_w": nrm((cfg["mlp"], D)), "fc2_b": jnp.zeros((1, D), jnp.float32),
        })
    return params


# ------------------------------ person_pair ---------------------------------

def init_person_pair_params(key, cfg):
    k1, k2, k3 = jax.random.split(key, 3)
    pair = init_vit_params(k1, cfg)        # self.pair   (ViT_imagenet_1)
    person = init_vit_params(k2, cfg)      # self.person_a == self.person_b
    # Stack the two backbones along a leading "branch" axis (0 = pair,
    # 1 = person); done ONCE at init so the forward never copies weights.
    backbones = jax.tree_util.tree_map(lambda a, b: jnp.stack([a, b]), pair, person)
    return {
        "backbones": backbones,
        "bbox_w": jax.random.normal(k3, (10, cfg["num_classes"]), jnp.float32) * 0.02,
        "bbox_b": jnp.zeros((1, cfg["num_classes"]), jnp.float32),
    }


def person_pair_forward(params, x1, x2, x3, x4):
    cfg = CFG
    B = x2.shape[0]
    bb = params["backbones"]

    # One fused backbone pass over all 3B images: branch 0 weights (pair) for
    # x1's rows, branch 1 weights (person) for x2/x3's rows.  person_a and
    # person_b share weights exactly as in the PyTorch module.
    x_all = jnp.concatenate([x1, x2, x3], axis=0)                       # (3B,C,H,W)
    branch_id = jnp.concatenate([jnp.zeros((B,), jnp.int32),
                                 jnp.ones((2 * B,), jnp.int32)])        # (3B,)

    tokens = patchify(x_all, cfg["patch"])                              # (3B, Np, P)
    x = pallas_embed(tokens, branch_id, bb)                             # (3B, N, D)
    for blk in bb["blocks"]:
        x = pallas_block(x, branch_id, blk, heads=cfg["heads"])
    cls = x[:, 0, :]                                                    # (3B, D)
    cls1, cls23 = cls[:B], cls[B:]

    # pair head + bboxes Linear fused in one kernel; person head in another.
    o1, o4 = pallas_pair_head_bbox(cls1, bb, x4,
                                   params["bbox_w"], params["bbox_b"], branch=0)
    o23 = pallas_head(cls23, bb, branch=1)
    o2, o3 = o23[:B], o23[B:]
    return (o4, o1, o2, o3)


if __name__ == "__main__":
    key = jax.random.PRNGKey(0)
    kp, k1, k2, k3, k4 = jax.random.split(key, 5)

    params = init_person_pair_params(kp, CFG)

    B = 2
    x1 = jax.random.normal(k1, (B, CFG["in_chans"], CFG["img"], CFG["img"]), jnp.float32)
    x2 = jax.random.normal(k2, (B, CFG["in_chans"], CFG["img"], CFG["img"]), jnp.float32)
    x3 = jax.random.normal(k3, (B, CFG["in_chans"], CFG["img"], CFG["img"]), jnp.float32)
    x4 = jax.random.normal(k4, (B, 10), jnp.float32)

    fwd = jax.jit(person_pair_forward)
    out4, out1, out2, out3 = fwd(params, x1, x2, x3, x4)
    jax.block_until_ready((out4, out1, out2, out3))

    assert out4.shape == (B, CFG["num_classes"])
    assert out1.shape == (B, CFG["num_classes"])
    assert out2.shape == (B, CFG["num_classes"])
    assert out3.shape == (B, CFG["num_classes"])
    assert all(jnp.isfinite(o).all() for o in (out4, out1, out2, out3))
    print("KERNEL_OK")
</pallas_src>

<mosaic_0001>
module attributes {stable_mosaic.version = 11 : i64} {
  func.func @_embed_kernel(%arg0: i32, %arg1: memref<6xi32, #tpu.memory_space<smem>>, %arg2: memref<1x4x768xf32, #tpu.memory_space<vmem>>, %arg3: memref<1x768x128xbf16, #tpu.memory_space<vmem>>, %arg4: memref<1x1x128xf32, #tpu.memory_space<vmem>>, %arg5: memref<1x1x128xf32, #tpu.memory_space<vmem>>, %arg6: memref<1x5x128xf32, #tpu.memory_space<vmem>>, %arg7: memref<1x5x128xf32, #tpu.memory_space<vmem>>) attributes {dimension_semantics = [#tpu.dimension_semantics<parallel>], iteration_bounds = array<i64: 6>, scalar_prefetch = 1 : i64, scratch_operands = 0 : i64, tpu.core_type = #tpu.core_type<tc>, window_params = [{transform_indices = @transform_0, window_bounds = array<i64: 1, 4, 768>}, {transform_indices = @transform_1, window_bounds = array<i64: 1, 768, 128>}, {transform_indices = @transform_2, window_bounds = array<i64: 1, 1, 128>}, {transform_indices = @transform_3, window_bounds = array<i64: 1, 1, 128>}, {transform_indices = @transform_4, window_bounds = array<i64: 1, 5, 128>}, {transform_indices = @transform_5, window_bounds = array<i64: 1, 5, 128>}]} {
    %c0 = arith.constant 0 : index
    %c0_0 = arith.constant 0 : index
    %c0_1 = arith.constant 0 : index
    %0 = vector.load %arg2[%c0, %c0_0, %c0_1] : memref<1x4x768xf32, #tpu.memory_space<vmem>>, vector<1x4x768xf32>
    %1 = vector.shape_cast %0 : vector<1x4x768xf32> to vector<4x768xf32>
    %2 = arith.truncf %1 : vector<4x768xf32> to vector<4x768xbf16>
    %c0_2 = arith.constant 0 : index
    %c0_3 = arith.constant 0 : index
    %c0_4 = arith.constant 0 : index
    %3 = vector.load %arg3[%c0_2, %c0_3, %c0_4] : memref<1x768x128xbf16, #tpu.memory_space<vmem>>, vector<1x768x128xbf16>
    %4 = vector.shape_cast %3 : vector<1x768x128xbf16> to vector<768x128xbf16>
    %cst = arith.constant dense<0.000000e+00> : vector<4x128xf32>
    %5 = tpu.matmul %2, %4, %cst {dimension_numbers = #tpu.dot_dimension_numbers<[1], [0], [0], [1], [0, 0, 1, 1], [], []>} : vector<4x768xbf16>, vector<768x128xbf16>, vector<4x128xf32> -> vector<4x128xf32>
    %c0_5 = arith.constant 0 : index
    %c0_6 = arith.constant 0 : index
    %c0_7 = arith.constant 0 : index
    %6 = vector.load %arg4[%c0_5, %c0_6, %c0_7] : memref<1x1x128xf32, #tpu.memory_space<vmem>>, vector<1x1x128xf32>
    %7 = vector.shape_cast %6 : vector<1x1x128xf32> to vector<1x128xf32>
    %8 = vector.broadcast %7 : vector<1x128xf32> to vector<4x128xf32>
    %9 = arith.addf %5, %8 : vector<4x128xf32>
    %c0_8 = arith.constant 0 : index
    %c0_9 = arith.constant 0 : index
    %c0_10 = arith.constant 0 : index
    %10 = vector.load %arg5[%c0_8, %c0_9, %c0_10] : memref<1x1x128xf32, #tpu.memory_space<vmem>>, vector<1x1x128xf32>
    %11 = vector.shape_cast %10 : vector<1x1x128xf32> to vector<1x128xf32>
    %c0_11 = arith.constant 0 : index
    %c0_12 = arith.constant 0 : index
    %c0_13 = arith.constant 0 : index
    %12 = vector.load %arg6[%c0_11, %c0_12, %c0_13] : memref<1x5x128xf32, #tpu.memory_space<vmem>>, vector<1x1x128xf32>
    %13 = vector.shape_cast %12 : vector<1x1x128xf32> to vector<1x128xf32>
    %14 = arith.addf %11, %13 : vector<1x128xf32>
    %c0_14 = arith.constant 0 : index
    %c0_15 = arith.constant 0 : index
    %c0_16 = arith.constant 0 : index
    %15 = vector.load %arg7[%c0_14, %c0_15, %c0_16] : memref<1x5x128xf32, #tpu.memory_space<vmem>>, vector<1x1x128xf32>
    %16 = vector.shape_cast %15 : vector<1x1x128xf32> to vector<1x128xf32>
    %17 = vector.shape_cast %14 : vector<1x128xf32> to vector<1x1x128xf32>
    tpu.vector_store %arg7[%c0_14, %c0_15, %c0_16], %17 {strides = array<i32>} : memref<1x5x128xf32, #tpu.memory_space<vmem>>, vector<1x1x128xf32>,
    %c0_17 = arith.constant 0 : index
    %c1 = arith.constant 1 : index
    %c0_18 = arith.constant 0 : index
    %18 = vector.load %arg6[%c0_17, %c1, %c0_18] : memref<1x5x128xf32, #tpu.memory_space<vmem>>, vector<1x4x128xf32>
    %19 = vector.shape_cast %18 : vector<1x4x128xf32> to vector<4x128xf32>
    %20 = arith.addf %9, %19 : vector<4x128xf32>
    %c0_19 = arith.constant 0 : index
    %c1_20 = arith.constant 1 : index
    %c0_21 = arith.constant 0 : index
    %21 = vector.load %arg7[%c0_19, %c1_20, %c0_21] : memref<1x5x128xf32, #tpu.memory_space<vmem>>, vector<1x4x128xf32>
    %22 = vector.shape_cast %21 : vector<1x4x128xf32> to vector<4x128xf32>
    %23 = vector.shape_cast %20 : vector<4x128xf32> to vector<1x4x128xf32>
    tpu.vector_store %arg7[%c0_19, %c1_20, %c0_21], %23 {strides = array<i32>} : memref<1x5x128xf32, #tpu.memory_space<vmem>>, vector<1x4x128xf32>,
    return
  }
  func.func @transform_0(%arg0: i32, %arg1: memref<6xi32, #tpu.memory_space<smem>>) -> (i32, i32, i32) {
    %c0_i32 = arith.constant 0 : i32
    %c0_i32_0 = arith.constant 0 : i32
    %c0_i32_1 = arith.constant 0 : i32
    return %arg0, %c0_i32, %c0_i32_0 : i32, i32, i32
  }
  func.func @transform_1(%arg0: i32, %arg1: memref<6xi32, #tpu.memory_space<smem>>) -> (i32, i32, i32) {
    %0 = arith.index_cast %arg0 : i32 to index
    %1 = memref.load %arg1[%0] : memref<6xi32, #tpu.memory_space<smem>>
    %c0_i32 = arith.constant 0 : i32
    %c0_i32_0 = arith.constant 0 : i32
    %c0_i32_1 = arith.constant 0 : i32
    return %1, %c0_i32, %c0_i32_0 : i32, i32, i32
  }
  func.func @transform_2(%arg0: i32, %arg1: memref<6xi32, #tpu.memory_space<smem>>) -> (i32, i32, i32) {
    %0 = arith.index_cast %arg0 : i32 to index
    %1 = memref.load %arg1[%0] : memref<6xi32, #tpu.memory_space<smem>>
    %c0_i32 = arith.constant 0 : i32
    %c0_i32_0 = arith.constant 0 : i32
    %c0_i32_1 = arith.constant 0 : i32
    return %1, %c0_i32, %c0_i32_0 : i32, i32, i32
  }
  func.func @transform_3(%arg0: i32, %arg1: memref<6xi32, #tpu.memory_space<smem>>) -> (i32, i32, i32) {
    %0 = arith.index_cast %arg0 : i32 to index
    %1 = memref.load %arg1[%0] : memref<6xi32, #tpu.memory_space<smem>>
    %c0_i32 = arith.constant 0 : i32
    %c0_i32_0 = arith.constant 0 : i32
    %c0_i32_1 = arith.constant 0 : i32
    return %1, %c0_i32, %c0_i32_0 : i32, i32, i32
  }
  func.func @transform_4(%arg0: i32, %arg1: memref<6xi32, #tpu.memory_space<smem>>) -> (i32, i32, i32) {
    %0 = arith.index_cast %arg0 : i32 to index
    %1 = memref.load %arg1[%0] : memref<6xi32, #tpu.memory_space<smem>>
    %c0_i32 = arith.constant 0 : i32
    %c0_i32_0 = arith.constant 0 : i32
    %c0_i32_1 = arith.constant 0 : i32
    return %1, %c0_i32, %c0_i32_0 : i32, i32, i32
  }
  func.func @transform_5(%arg0: i32, %arg1: memref<6xi32, #tpu.memory_space<smem>>) -> (i32, i32, i32) {
    %c0_i32 = arith.constant 0 : i32
    %c0_i32_0 = arith.constant 0 : i32
    %c0_i32_1 = arith.constant 0 : i32
    return %arg0, %c0_i32, %c0_i32_0 : i32, i32, i32
  }
}

module attributes {stable_mosaic.version = 11 : i64} {
  func.func @_block_kernel(%arg0: i32, %arg1: memref<6xi32, #tpu.memory_space<smem>>, %arg2: memref<1x5x128xf32, #tpu.memory_space<vmem>>, %arg3: memref<1x1x128xf32, #tpu.memory_space<vmem>>, %arg4: memref<1x1x128xf32, #tpu.memory_space<vmem>>, %arg5: memref<1x128x384xbf16, #tpu.memory_space<vmem>>, %arg6: memref<1x1x384xf32, #tpu.memory_space<vmem>>, %arg7: memref<1x128x128xbf16, #tpu.memory_space<vmem>>, %arg8: memref<1x1x128xf32, #tpu.memory_space<vmem>>, %arg9: memref<1x1x128xf32, #tpu.memory_space<vmem>>, %arg10: memref<1x1x128xf32, #tpu.memory_space<vmem>>, %arg11: memref<1x128x512xbf16, #tpu.memory_space<vmem>>, %arg12: memref<1x1x512xf32, #tpu.memory_space<vmem>>, %arg13: memref<1x512x128xbf16, #tpu.memory_space<vmem>>, %arg14: memref<1x1x128xf32, #tpu.memory_space<vmem>>, %arg15: memref<1x5x128xf32, #tpu.memory_space<vmem>>) attributes {dimension_semantics = [#tpu.dimension_semantics<parallel>], iteration_bounds = array<i64: 6>, scalar_prefetch = 1 : i64, scratch_operands = 0 : i64, tpu.core_type = #tpu.core_type<tc>, window_params = [{transform_indices = @transform_0, window_bounds = array<i64: 1, 5, 128>}, {transform_indices = @transform_1, window_bounds = array<i64: 1, 1, 128>}, {transform_indices = @transform_2, window_bounds = array<i64: 1, 1, 128>}, {transform_indices = @transform_3, window_bounds = array<i64: 1, 128, 384>}, {transform_indices = @transform_4, window_bounds = array<i64: 1, 1, 384>}, {transform_indices = @transform_5, window_bounds = array<i64: 1, 128, 128>}, {transform_indices = @transform_6, window_bounds = array<i64: 1, 1, 128>}, {transform_indices = @transform_7, window_bounds = array<i64: 1, 1, 128>}, {transform_indices = @transform_8, window_bounds = array<i64: 1, 1, 128>}, {transform_indices = @transform_9, window_bounds = array<i64: 1, 128, 512>}, {transform_indices = @transform_10, window_bounds = array<i64: 1, 1, 512>}, {transform_indices = @transform_11, window_bounds = array<i64: 1, 512, 128>}, {transform_indices = @transform_12, window_bounds = array<i64: 1, 1, 128>}, {transform_indices = @transform_13, window_bounds = array<i64: 1, 5, 128>}]} {
    %c0 = arith.constant 0 : index
    %c0_0 = arith.constant 0 : index
    %c0_1 = arith.constant 0 : index
    %0 = vector.load %arg2[%c0, %c0_0, %c0_1] : memref<1x5x128xf32, #tpu.memory_space<vmem>>, vector<1x5x128xf32>
    %1 = vector.shape_cast %0 : vector<1x5x128xf32> to vector<5x128xf32>
    %c0_2 = arith.constant 0 : index
    %c0_3 = arith.constant 0 : index
    %c0_4 = arith.constant 0 : index
    %2 = vector.load %arg3[%c0_2, %c0_3, %c0_4] : memref<1x1x128xf32, #tpu.memory_space<vmem>>, vector<1x1x128xf32>
    %3 = vector.shape_cast %2 : vector<1x1x128xf32> to vector<1x128xf32>
    %c0_5 = arith.constant 0 : index
    %c0_6 = arith.constant 0 : index
    %c0_7 = arith.constant 0 : index
    %4 = vector.load %arg4[%c0_5, %c0_6, %c0_7] : memref<1x1x128xf32, #tpu.memory_space<vmem>>, vector<1x1x128xf32>
    %5 = vector.shape_cast %4 : vector<1x1x128xf32> to vector<1x128xf32>
    %cst = arith.constant dense<0.000000e+00> : vector<5xf32>
    %6 = vector.multi_reduction <add>, %1, %cst [1] : vector<5x128xf32> to vector<5xf32>
    %7 = vector.shape_cast %6 : vector<5xf32> to vector<5x1xf32>
    %cst_8 = arith.constant 1.280000e+02 : f32
    %8 = vector.broadcast %cst_8 : f32 to vector<5x1xf32>
    %9 = arith.divf %7, %8 : vector<5x1xf32>
    %10 = vector.broadcast %9 : vector<5x1xf32> to vector<5x128xf32>
    %11 = arith.subf %1, %10 : vector<5x128xf32>
    %12 = arith.mulf %11, %11 : vector<5x128xf32>
    %cst_9 = arith.constant dense<0.000000e+00> : vector<5xf32>
    %13 = vector.multi_reduction <add>, %12, %cst_9 [1] : vector<5x128xf32> to vector<5xf32>
    %14 = vector.shape_cast %13 : vector<5xf32> to vector<5x1xf32>
    %cst_10 = arith.constant 1.280000e+02 : f32
    %15 = vector.broadcast %cst_10 : f32 to vector<5x1xf32>
    %16 = arith.divf %14, %15 : vector<5x1xf32>
    %cst_11 = arith.constant 9.99999997E-7 : f32
    %17 = vector.broadcast %cst_11 : f32 to vector<5x1xf32>
    %18 = arith.addf %16, %17 : vector<5x1xf32>
    %19 = math.rsqrt %18 : vector<5x1xf32>
    %20 = vector.broadcast %19 : vector<5x1xf32> to vector<5x128xf32>
    %21 = arith.mulf %11, %20 : vector<5x128xf32>
    %22 = vector.broadcast %3 : vector<1x128xf32> to vector<5x128xf32>
    %23 = arith.mulf %21, %22 : vector<5x128xf32>
    %24 = vector.broadcast %5 : vector<1x128xf32> to vector<5x128xf32>
    %25 = arith.addf %23, %24 : vector<5x128xf32>
    %26 = arith.truncf %25 : vector<5x128xf32> to vector<5x128xbf16>
    %c0_12 = arith.constant 0 : index
    %c0_13 = arith.constant 0 : index
    %c0_14 = arith.constant 0 : index
    %27 = vector.load %arg5[%c0_12, %c0_13, %c0_14] : memref<1x128x384xbf16, #tpu.memory_space<vmem>>, vector<1x128x384xbf16>
    %28 = vector.shape_cast %27 : vector<1x128x384xbf16> to vector<128x384xbf16>
    %cst_15 = arith.constant dense<0.000000e+00> : vector<5x384xf32>
    %29 = tpu.matmul %26, %28, %cst_15 {dimension_numbers = #tpu.dot_dimension_numbers<[1], [0], [0], [1], [0, 0, 1, 1], [], []>} : vector<5x128xbf16>, vector<128x384xbf16>, vector<5x384xf32> -> vector<5x384xf32>
    %c0_16 = arith.constant 0 : index
    %c0_17 = arith.constant 0 : index
    %c0_18 = arith.constant 0 : index
    %30 = vector.load %arg6[%c0_16, %c0_17, %c0_18] : memref<1x1x384xf32, #tpu.memory_space<vmem>>, vector<1x1x384xf32>
    %31 = vector.shape_cast %30 : vector<1x1x384xf32> to vector<1x384xf32>
    %32 = vector.broadcast %31 : vector<1x384xf32> to vector<5x384xf32>
    %33 = arith.addf %29, %32 : vector<5x384xf32>
    %c0_19 = arith.constant 0 : index
    %c0_20 = arith.constant 0 : index
    %c0_21 = arith.constant 0 : index
    %34 = vector.load %arg7[%c0_19, %c0_20, %c0_21] : memref<1x128x128xbf16, #tpu.memory_space<vmem>>, vector<1x128x128xbf16>
    %35 = vector.shape_cast %34 : vector<1x128x128xbf16> to vector<128x128xbf16>
    %cst_22 = arith.constant 0.000000e+00 : f32
    %36 = vector.broadcast %cst_22 : f32 to vector<5x128xf32>
    %37 = vector.extract_strided_slice %33 {offsets = [0, 0], sizes = [5, 32], strides = [1, 1]} : vector<5x384xf32> to vector<5x32xf32>
    %38 = vector.extract_strided_slice %33 {offsets = [0, 128], sizes = [5, 32], strides = [1, 1]} : vector<5x384xf32> to vector<5x32xf32>
    %39 = vector.extract_strided_slice %33 {offsets = [0, 256], sizes = [5, 32], strides = [1, 1]} : vector<5x384xf32> to vector<5x32xf32>
    %40 = arith.truncf %37 : vector<5x32xf32> to vector<5x32xbf16>
    %41 = arith.truncf %38 : vector<5x32xf32> to vector<5x32xbf16>
    %cst_23 = arith.constant dense<0.000000e+00> : vector<5x5xf32>
    %42 = tpu.matmul %40, %41, %cst_23 {dimension_numbers = #tpu.dot_dimension_numbers<[1], [1], [0], [0], [0, 0, 1, 0], [], []>} : vector<5x32xbf16>, vector<5x32xbf16>, vector<5x5xf32> -> vector<5x5xf32>
    %cst_24 = arith.constant 0.176776692 : f32
    %43 = vector.broadcast %cst_24 : f32 to vector<5x5xf32>
    %44 = arith.mulf %42, %43 : vector<5x5xf32>
    %cst_25 = arith.constant dense<0xFF800000> : vector<5xf32>
    %45 = vector.multi_reduction <maximumf>, %44, %cst_25 [1] : vector<5x5xf32> to vector<5xf32>
    %46 = vector.shape_cast %45 : vector<5xf32> to vector<5x1xf32>
    %47 = vector.broadcast %46 : vector<5x1xf32> to vector<5x5xf32>
    %48 = arith.subf %44, %47 : vector<5x5xf32>
    %49 = math.exp %48 : vector<5x5xf32>
    %cst_26 = arith.constant dense<0.000000e+00> : vector<5xf32>
    %50 = vector.multi_reduction <add>, %49, %cst_26 [1] : vector<5x5xf32> to vector<5xf32>
    %51 = vector.shape_cast %50 : vector<5xf32> to vector<5x1xf32>
    %52 = tpu.reciprocal %51 {approx = true} : vector<5x1xf32> -> vector<5x1xf32>
    %53 = vector.broadcast %52 : vector<5x1xf32> to vector<5x5xf32>
    %54 = arith.mulf %49, %53 : vector<5x5xf32>
    %55 = arith.truncf %54 : vector<5x5xf32> to vector<5x5xbf16>
    %56 = arith.truncf %39 : vector<5x32xf32> to vector<5x32xbf16>
    %cst_27 = arith.constant dense<0.000000e+00> : vector<5x32xf32>
    %57 = tpu.matmul %55, %56, %cst_27 {dimension_numbers = #tpu.dot_dimension_numbers<[1], [0], [0], [1], [0, 0, 1, 1], [], []>} : vector<5x5xbf16>, vector<5x32xbf16>, vector<5x32xf32> -> vector<5x32xf32>
    %58 = arith.truncf %57 : vector<5x32xf32> to vector<5x32xbf16>
    %59 = vector.extract_strided_slice %35 {offsets = [0, 0], sizes = [32, 128], strides = [1, 1]} : vector<128x128xbf16> to vector<32x128xbf16>
    %cst_28 = arith.constant dense<0.000000e+00> : vector<5x128xf32>
    %60 = tpu.matmul %58, %59, %cst_28 {dimension_numbers = #tpu.dot_dimension_numbers<[1], [0], [0], [1], [0, 0, 1, 1], [], []>} : vector<5x32xbf16>, vector<32x128xbf16>, vector<5x128xf32> -> vector<5x128xf32>
    %61 = arith.addf %36, %60 : vector<5x128xf32>
    %62 = vector.extract_strided_slice %33 {offsets = [0, 32], sizes = [5, 32], strides = [1, 1]} : vector<5x384xf32> to vector<5x32xf32>
    %63 = vector.extract_strided_slice %33 {offsets = [0, 160], sizes = [5, 32], strides = [1, 1]} : vector<5x384xf32> to vector<5x32xf32>
    %64 = vector.extract_strided_slice %33 {offsets = [0, 288], sizes = [5, 32], strides = [1, 1]} : vector<5x384xf32> to vector<5x32xf32>
    %65 = arith.truncf %62 : vector<5x32xf32> to vector<5x32xbf16>
    %66 = arith.truncf %63 : vector<5x32xf32> to vector<5x32xbf16>
    %cst_29 = arith.constant dense<0.000000e+00> : vector<5x5xf32>
    %67 = tpu.matmul %65, %66, %cst_29 {dimension_numbers = #tpu.dot_dimension_numbers<[1], [1], [0], [0], [0, 0, 1, 0], [], []>} : vector<5x32xbf16>, vector<5x32xbf16>, vector<5x5xf32> -> vector<5x5xf32>
    %cst_30 = arith.constant 0.176776692 : f32
    %68 = vector.broadcast %cst_30 : f32 to vector<5x5xf32>
    %69 = arith.mulf %67, %68 : vector<5x5xf32>
    %cst_31 = arith.constant dense<0xFF800000> : vector<5xf32>
    %70 = vector.multi_reduction <maximumf>, %69, %cst_31 [1] : vector<5x5xf32> to vector<5xf32>
    %71 = vector.shape_cast %70 : vector<5xf32> to vector<5x1xf32>
    %72 = vector.broadcast %71 : vector<5x1xf32> to vector<5x5xf32>
    %73 = arith.subf %69, %72 : vector<5x5xf32>
    %74 = math.exp %73 : vector<5x5xf32>
    %cst_32 = arith.constant dense<0.000000e+00> : vector<5xf32>
    %75 = vector.multi_reduction <add>, %74, %cst_32 [1] : vector<5x5xf32> to vector<5xf32>
    %76 = vector.shape_cast %75 : vector<5xf32> to vector<5x1xf32>
    %77 = tpu.reciprocal %76 {approx = true} : vector<5x1xf32> -> vector<5x1xf32>
    %78 = vector.broadcast %77 : vector<5x1xf32> to vector<5x5xf32>
    %79 = arith.mulf %74, %78 : vector<5x5xf32>
    %80 = arith.truncf %79 : vector<5x5xf32> to vector<5x5xbf16>
    %81 = arith.truncf %64 : vector<5x32xf32> to vector<5x32xbf16>
    %cst_33 = arith.constant dense<0.000000e+00> : vector<5x32xf32>
    %82 = tpu.matmul %80, %81, %cst_33 {dimension_numbers = #tpu.dot_dimension_numbers<[1], [0], [0], [1], [0, 0, 1, 1], [], []>} : vector<5x5xbf16>, vector<5x32xbf16>, vector<5x32xf32> -> vector<5x32xf32>
    %83 = arith.truncf %82 : vector<5x32xf32> to vector<5x32xbf16>
    %84 = vector.extract_strided_slice %35 {offsets = [32, 0], sizes = [32, 128], strides = [1, 1]} : vector<128x128xbf16> to vector<32x128xbf16>
    %cst_34 = arith.constant dense<0.000000e+00> : vector<5x128xf32>
    %85 = tpu.matmul %83, %84, %cst_34 {dimension_numbers = #tpu.dot_dimension_numbers<[1], [0], [0], [1], [0, 0, 1, 1], [], []>} : vector<5x32xbf16>, vector<32x128xbf16>, vector<5x128xf32> -> vector<5x128xf32>
    %86 = arith.addf %61, %85 : vector<5x128xf32>
    %87 = vector.extract_strided_slice %33 {offsets = [0, 64], sizes = [5, 32], strides = [1, 1]} : vector<5x384xf32> to vector<5x32xf32>
    %88 = vector.extract_strided_slice %33 {offsets = [0, 192], sizes = [5, 32], strides = [1, 1]} : vector<5x384xf32> to vector<5x32xf32>
    %89 = vector.extract_strided_slice %33 {offsets = [0, 320], sizes = [5, 32], strides = [1, 1]} : vector<5x384xf32> to vector<5x32xf32>
    %90 = arith.truncf %87 : vector<5x32xf32> to vector<5x32xbf16>
    %91 = arith.truncf %88 : vector<5x32xf32> to vector<5x32xbf16>
    %cst_35 = arith.constant dense<0.000000e+00> : vector<5x5xf32>
    %92 = tpu.matmul %90, %91, %cst_35 {dimension_numbers = #tpu.dot_dimension_numbers<[1], [1], [0], [0], [0, 0, 1, 0], [], []>} : vector<5x32xbf16>, vector<5x32xbf16>, vector<5x5xf32> -> vector<5x5xf32>
    %cst_36 = arith.constant 0.176776692 : f32
    %93 = vector.broadcast %cst_36 : f32 to vector<5x5xf32>
    %94 = arith.mulf %92, %93 : vector<5x5xf32>
    %cst_37 = arith.constant dense<0xFF800000> : vector<5xf32>
    %95 = vector.multi_reduction <maximumf>, %94, %cst_37 [1] : vector<5x5xf32> to vector<5xf32>
    %96 = vector.shape_cast %95 : vector<5xf32> to vector<5x1xf32>
    %97 = vector.broadcast %96 : vector<5x1xf32> to vector<5x5xf32>
    %98 = arith.subf %94, %97 : vector<5x5xf32>
    %99 = math.exp %98 : vector<5x5xf32>
    %cst_38 = arith.constant dense<0.000000e+00> : vector<5xf32>
    %100 = vector.multi_reduction <add>, %99, %cst_38 [1] : vector<5x5xf32> to vector<5xf32>
    %101 = vector.shape_cast %100 : vector<5xf32> to vector<5x1xf32>
    %102 = tpu.reciprocal %101 {approx = true} : vector<5x1xf32> -> vector<5x1xf32>
    %103 = vector.broadcast %102 : vector<5x1xf32> to vector<5x5xf32>
    %104 = arith.mulf %99, %103 : vector<5x5xf32>
    %105 = arith.truncf %104 : vector<5x5xf32> to vector<5x5xbf16>
    %106 = arith.truncf %89 : vector<5x32xf32> to vector<5x32xbf16>
    %cst_39 = arith.constant dense<0.000000e+00> : vector<5x32xf32>
    %107 = tpu.matmul %105, %106, %cst_39 {dimension_numbers = #tpu.dot_dimension_numbers<[1], [0], [0], [1], [0, 0, 1, 1], [], []>} : vector<5x5xbf16>, vector<5x32xbf16>, vector<5x32xf32> -> vector<5x32xf32>
    %108 = arith.truncf %107 : vector<5x32xf32> to vector<5x32xbf16>
    %109 = vector.extract_strided_slice %35 {offsets = [64, 0], sizes = [32, 128], strides = [1, 1]} : vector<128x128xbf16> to vector<32x128xbf16>
    %cst_40 = arith.constant dense<0.000000e+00> : vector<5x128xf32>
    %110 = tpu.matmul %108, %109, %cst_40 {dimension_numbers = #tpu.dot_dimension_numbers<[1], [0], [0], [1], [0, 0, 1, 1], [], []>} : vector<5x32xbf16>, vector<32x128xbf16>, vector<5x128xf32> -> vector<5x128xf32>
    %111 = arith.addf %86, %110 : vector<5x128xf32>
    %112 = vector.extract_strided_slice %33 {offsets = [0, 96], sizes = [5, 32], strides = [1, 1]} : vector<5x384xf32> to vector<5x32xf32>
    %113 = vector.extract_strided_slice %33 {offsets = [0, 224], sizes = [5, 32], strides = [1, 1]} : vector<5x384xf32> to vector<5x32xf32>
    %114 = vector.extract_strided_slice %33 {offsets = [0, 352], sizes = [5, 32], strides = [1, 1]} : vector<5x384xf32> to vector<5x32xf32>
    %115 = arith.truncf %112 : vector<5x32xf32> to vector<5x32xbf16>
    %116 = arith.truncf %113 : vector<5x32xf32> to vector<5x32xbf16>
    %cst_41 = arith.constant dense<0.000000e+00> : vector<5x5xf32>
    %117 = tpu.matmul %115, %116, %cst_41 {dimension_numbers = #tpu.dot_dimension_numbers<[1], [1], [0], [0], [0, 0, 1, 0], [], []>} : vector<5x32xbf16>, vector<5x32xbf16>, vector<5x5xf32> -> vector<5x5xf32>
    %cst_42 = arith.constant 0.176776692 : f32
    %118 = vector.broadcast %cst_42 : f32 to vector<5x5xf32>
    %119 = arith.mulf %117, %118 : vector<5x5xf32>
    %cst_43 = arith.constant dense<0xFF800000> : vector<5xf32>
    %120 = vector.multi_reduction <maximumf>, %119, %cst_43 [1] : vector<5x5xf32> to vector<5xf32>
    %121 = vector.shape_cast %120 : vector<5xf32> to vector<5x1xf32>
    %122 = vector.broadcast %121 : vector<5x1xf32> to vector<5x5xf32>
    %123 = arith.subf %119, %122 : vector<5x5xf32>
    %124 = math.exp %123 : vector<5x5xf32>
    %cst_44 = arith.constant dense<0.000000e+00> : vector<5xf32>
    %125 = vector.multi_reduction <add>, %124, %cst_44 [1] : vector<5x5xf32> to vector<5xf32>
    %126 = vector.shape_cast %125 : vector<5xf32> to vector<5x1xf32>
    %127 = tpu.reciprocal %126 {approx = true} : vector<5x1xf32> -> vector<5x1xf32>
    %128 = vector.broadcast %127 : vector<5x1xf32> to vector<5x5xf32>
    %129 = arith.mulf %124, %128 : vector<5x5xf32>
    %130 = arith.truncf %129 : vector<5x5xf32> to vector<5x5xbf16>
    %131 = arith.truncf %114 : vector<5x32xf32> to vector<5x32xbf16>
    %cst_45 = arith.constant dense<0.000000e+00> : vector<5x32xf32>
    %132 = tpu.matmul %130, %131, %cst_45 {dimension_numbers = #tpu.dot_dimension_numbers<[1], [0], [0], [1], [0, 0, 1, 1], [], []>} : vector<5x5xbf16>, vector<5x32xbf16>, vector<5x32xf32> -> vector<5x32xf32>
    %133 = arith.truncf %132 : vector<5x32xf32> to vector<5x32xbf16>
    %134 = vector.extract_strided_slice %35 {offsets = [96, 0], sizes = [32, 128], strides = [1, 1]} : vector<128x128xbf16> to vector<32x128xbf16>
    %cst_46 = arith.constant dense<0.000000e+00> : vector<5x128xf32>
    %135 = tpu.matmul %133, %134, %cst_46 {dimension_numbers = #tpu.dot_dimension_numbers<[1], [0], [0], [1], [0, 0, 1, 1], [], []>} : vector<5x32xbf16>, vector<32x128xbf16>, vector<5x128xf32> -> vector<5x128xf32>
    %136 = arith.addf %111, %135 : vector<5x128xf32>
    %137 = arith.addf %1, %136 : vector<5x128xf32>
    %c0_47 = arith.constant 0 : index
    %c0_48 = arith.constant 0 : index
    %c0_49 = arith.constant 0 : index
    %138 = vector.load %arg8[%c0_47, %c0_48, %c0_49] : memref<1x1x128xf32, #tpu.memory_space<vmem>>, vector<1x1x128xf32>
    %139 = vector.shape_cast %138 : vector<1x1x128xf32> to vector<1x128xf32>
    %140 = vector.broadcast %139 : vector<1x128xf32> to vector<5x128xf32>
    %141 = arith.addf %137, %140 : vector<5x128xf32>
    %c0_50 = arith.constant 0 : index
    %c0_51 = arith.constant 0 : index
    %c0_52 = arith.constant 0 : index
    %142 = vector.load %arg9[%c0_50, %c0_51, %c0_52] : memref<1x1x128xf32, #tpu.memory_space<vmem>>, vector<1x1x128xf32>
    %143 = vector.shape_cast %142 : vector<1x1x128xf32> to vector<1x128xf32>
    %c0_53 = arith.constant 0 : index
    %c0_54 = arith.constant 0 : index
    %c0_55 = arith.constant 0 : index
    %144 = vector.load %arg10[%c0_53, %c0_54, %c0_55] : memref<1x1x128xf32, #tpu.memory_space<vmem>>, vector<1x1x128xf32>
    %145 = vector.shape_cast %144 : vector<1x1x128xf32> to vector<1x128xf32>
    %cst_56 = arith.constant dense<0.000000e+00> : vector<5xf32>
    %146 = vector.multi_reduction <add>, %141, %cst_56 [1] : vector<5x128xf32> to vector<5xf32>
    %147 = vector.shape_cast %146 : vector<5xf32> to vector<5x1xf32>
    %cst_57 = arith.constant 1.280000e+02 : f32
    %148 = vector.broadcast %cst_57 : f32 to vector<5x1xf32>
    %149 = arith.divf %147, %148 : vector<5x1xf32>
    %150 = vector.broadcast %149 : vector<5x1xf32> to vector<5x128xf32>
    %151 = arith.subf %141, %150 : vector<5x128xf32>
    %152 = arith.mulf %151, %151 : vector<5x128xf32>
    %cst_58 = arith.constant dense<0.000000e+00> : vector<5xf32>
    %153 = vector.multi_reduction <add>, %152, %cst_58 [1] : vector<5x128xf32> to vector<5xf32>
    %154 = vector.shape_cast %153 : vector<5xf32> to vector<5x1xf32>
    %cst_59 = arith.constant 1.280000e+02 : f32
    %155 = vector.broadcast %cst_59 : f32 to vector<5x1xf32>
    %156 = arith.divf %154, %155 : vector<5x1xf32>
    %cst_60 = arith.constant 9.99999997E-7 : f32
    %157 = vector.broadcast %cst_60 : f32 to vector<5x1xf32>
    %158 = arith.addf %156, %157 : vector<5x1xf32>
    %159 = math.rsqrt %158 : vector<5x1xf32>
    %160 = vector.broadcast %159 : vector<5x1xf32> to vector<5x128xf32>
    %161 = arith.mulf %151, %160 : vector<5x128xf32>
    %162 = vector.broadcast %143 : vector<1x128xf32> to vector<5x128xf32>
    %163 = arith.mulf %161, %162 : vector<5x128xf32>
    %164 = vector.broadcast %145 : vector<1x128xf32> to vector<5x128xf32>
    %165 = arith.addf %163, %164 : vector<5x128xf32>
    %166 = arith.truncf %165 : vector<5x128xf32> to vector<5x128xbf16>
    %c0_61 = arith.constant 0 : index
    %c0_62 = arith.constant 0 : index
    %c0_63 = arith.constant 0 : index
    %167 = vector.load %arg11[%c0_61, %c0_62, %c0_63] : memref<1x128x512xbf16, #tpu.memory_space<vmem>>, vector<1x128x512xbf16>
    %168 = vector.shape_cast %167 : vector<1x128x512xbf16> to vector<128x512xbf16>
    %cst_64 = arith.constant dense<0.000000e+00> : vector<5x512xf32>
    %169 = tpu.matmul %166, %168, %cst_64 {dimension_numbers = #tpu.dot_dimension_numbers<[1], [0], [0], [1], [0, 0, 1, 1], [], []>} : vector<5x128xbf16>, vector<128x512xbf16>, vector<5x512xf32> -> vector<5x512xf32>
    %c0_65 = arith.constant 0 : index
    %c0_66 = arith.constant 0 : index
    %c0_67 = arith.constant 0 : index
    %170 = vector.load %arg12[%c0_65, %c0_66, %c0_67] : memref<1x1x512xf32, #tpu.memory_space<vmem>>, vector<1x1x512xf32>
    %171 = vector.shape_cast %170 : vector<1x1x512xf32> to vector<1x512xf32>
    %172 = vector.broadcast %171 : vector<1x512xf32> to vector<5x512xf32>
    %173 = arith.addf %169, %172 : vector<5x512xf32>
    %174 = arith.mulf %173, %173 : vector<5x512xf32>
    %175 = arith.mulf %173, %174 : vector<5x512xf32>
    %cst_68 = arith.constant 4.471500e-02 : f32
    %176 = vector.broadcast %cst_68 : f32 to vector<5x512xf32>
    %177 = arith.mulf %176, %175 : vector<5x512xf32>
    %178 = arith.addf %173, %177 : vector<5x512xf32>
    %cst_69 = arith.constant 0.797884583 : f32
    %179 = vector.broadcast %cst_69 : f32 to vector<5x512xf32>
    %180 = arith.mulf %179, %178 : vector<5x512xf32>
    %181 = math.tanh %180 : vector<5x512xf32>
    %cst_70 = arith.constant 1.000000e+00 : f32
    %182 = vector.broadcast %cst_70 : f32 to vector<5x512xf32>
    %183 = arith.addf %182, %181 : vector<5x512xf32>
    %cst_71 = arith.constant 5.000000e-01 : f32
    %184 = vector.broadcast %cst_71 : f32 to vector<5x512xf32>
    %185 = arith.mulf %184, %183 : vector<5x512xf32>
    %186 = arith.mulf %173, %185 : vector<5x512xf32>
    %187 = arith.truncf %186 : vector<5x512xf32> to vector<5x512xbf16>
    %c0_72 = arith.constant 0 : index
    %c0_73 = arith.constant 0 : index
    %c0_74 = arith.constant 0 : index
    %188 = vector.load %arg13[%c0_72, %c0_73, %c0_74] : memref<1x512x128xbf16, #tpu.memory_space<vmem>>, vector<1x512x128xbf16>
    %189 = vector.shape_cast %188 : vector<1x512x128xbf16> to vector<512x128xbf16>
    %cst_75 = arith.constant dense<0.000000e+00> : vector<5x128xf32>
    %190 = tpu.matmul %187, %189, %cst_75 {dimension_numbers = #tpu.dot_dimension_numbers<[1], [0], [0], [1], [0, 0, 1, 1], [], []>} : vector<5x512xbf16>, vector<512x128xbf16>, vector<5x128xf32> -> vector<5x128xf32>
    %c0_76 = arith.constant 0 : index
    %c0_77 = arith.constant 0 : index
    %c0_78 = arith.constant 0 : index
    %191 = vector.load %arg14[%c0_76, %c0_77, %c0_78] : memref<1x1x128xf32, #tpu.memory_space<vmem>>, vector<1x1x128xf32>
    %192 = vector.shape_cast %191 : vector<1x1x128xf32> to vector<1x128xf32>
    %193 = vector.broadcast %192 : vector<1x128xf32> to vector<5x128xf32>
    %194 = arith.addf %190, %193 : vector<5x128xf32>
    %195 = arith.addf %141, %194 : vector<5x128xf32>
    %c0_79 = arith.constant 0 : index
    %c0_80 = arith.constant 0 : index
    %c0_81 = arith.constant 0 : index
    %196 = vector.load %arg15[%c0_79, %c0_80, %c0_81] : memref<1x5x128xf32, #tpu.memory_space<vmem>>, vector<1x5x128xf32>
    %197 = vector.shape_cast %196 : vector<1x5x128xf32> to vector<5x128xf32>
    %198 = vector.shape_cast %195 : vector<5x128xf32> to vector<1x5x128xf32>
    tpu.vector_store %arg15[%c0_79, %c0_80, %c0_81], %198 {strides = array<i32>} : memref<1x5x128xf32, #tpu.memory_space<vmem>>, vector<1x5x128xf32>,
    return
  }
  func.func @transform_0(%arg0: i32, %arg1: memref<6xi32, #tpu.memory_space<smem>>) -> (i32, i32, i32) {
    %c0_i32 = arith.constant 0 : i32
    %c0_i32_0 = arith.constant 0 : i32
    %c0_i32_1 = arith.constant 0 : i32
    return %arg0, %c0_i32, %c0_i32_0 : i32, i32, i32
  }
  func.func @transform_1(%arg0: i32, %arg1: memref<6xi32, #tpu.memory_space<smem>>) -> (i32, i32, i32) {
    %0 = arith.index_cast %arg0 : i32 to index
    %1 = memref.load %arg1[%0] : memref<6xi32, #tpu.memory_space<smem>>
    %c0_i32 = arith.constant 0 : i32
    %c0_i32_0 = arith.constant 0 : i32
    %c0_i32_1 = arith.constant 0 : i32
    return %1, %c0_i32, %c0_i32_0 : i32, i32, i32
  }
  func.func @transform_2(%arg0: i32, %arg1: memref<6xi32, #tpu.memory_space<smem>>) -> (i32, i32, i32) {
    %0 = arith.index_cast %arg0 : i32 to index
    %1 = memref.load %arg1[%0] : memref<6xi32, #tpu.memory_space<smem>>
    %c0_i32 = arith.constant 0 : i32
    %c0_i32_0 = arith.constant 0 : i32
    %c0_i32_1 = arith.constant 0 : i32
    return %1, %c0_i32, %c0_i32_0 : i32, i32, i32
  }
  func.func @transform_3(%arg0: i32, %arg1: memref<6xi32, #tpu.memory_space<smem>>) -> (i32, i32, i32) {
    %0 = arith.index_cast %arg0 : i32 to index
    %1 = memref.load %arg1[%0] : memref<6xi32, #tpu.memory_space<smem>>
    %c0_i32 = arith.constant 0 : i32
    %c0_i32_0 = arith.constant 0 : i32
    %c0_i32_1 = arith.constant 0 : i32
    return %1, %c0_i32, %c0_i32_0 : i32, i32, i32
  }
  func.func @transform_4(%arg0: i32, %arg1: memref<6xi32, #tpu.memory_space<smem>>) -> (i32, i32, i32) {
    %0 = arith.index_cast %arg0 : i32 to index
    %1 = memref.load %arg1[%0] : memref<6xi32, #tpu.memory_space<smem>>
    %c0_i32 = arith.constant 0 : i32
    %c0_i32_0 = arith.constant 0 : i32
    %c0_i32_1 = arith.constant 0 : i32
    return %1, %c0_i32, %c0_i32_0 : i32, i32, i32
  }
  func.func @transform_5(%arg0: i32, %arg1: memref<6xi32, #tpu.memory_space<smem>>) -> (i32, i32, i32) {
    %0 = arith.index_cast %arg0 : i32 to index
    %1 = memref.load %arg1[%0] : memref<6xi32, #tpu.memory_space<smem>>
    %c0_i32 = arith.constant 0 : i32
    %c0_i32_0 = arith.constant 0 : i32
    %c0_i32_1 = arith.constant 0 : i32
    return %1, %c0_i32, %c0_i32_0 : i32, i32, i32
  }
  func.func @transform_6(%arg0: i32, %arg1: memref<6xi32, #tpu.memory_space<smem>>) -> (i32, i32, i32) {
    %0 = arith.index_cast %arg0 : i32 to index
    %1 = memref.load %arg1[%0] : memref<6xi32, #tpu.memory_space<smem>>
    %c0_i32 = arith.constant 0 : i32
    %c0_i32_0 = arith.constant 0 : i32
    %c0_i32_1 = arith.constant 0 : i32
    return %1, %c0_i32, %c0_i32_0 : i32, i32, i32
  }
  func.func @transform_7(%arg0: i32, %arg1: memref<6xi32, #tpu.memory_space<smem>>) -> (i32, i32, i32) {
    %0 = arith.index_cast %arg0 : i32 to index
    %1 = memref.load %arg1[%0] : memref<6xi32, #tpu.memory_space<smem>>
    %c0_i32 = arith.constant 0 : i32
    %c0_i32_0 = arith.constant 0 : i32
    %c0_i32_1 = arith.constant 0 : i32
    return %1, %c0_i32, %c0_i32_0 : i32, i32, i32
  }
  func.func @transform_8(%arg0: i32, %arg1: memref<6xi32, #tpu.memory_space<smem>>) -> (i32, i32, i32) {
    %0 = arith.index_cast %arg0 : i32 to index
    %1 = memref.load %arg1[%0] : memref<6xi32, #tpu.memory_space<smem>>
    %c0_i32 = arith.constant 0 : i32
    %c0_i32_0 = arith.constant 0 : i32
    %c0_i32_1 = arith.constant 0 : i32
    return %1, %c0_i32, %c0_i32_0 : i32, i32, i32
  }
  func.func @transform_9(%arg0: i32, %arg1: memref<6xi32, #tpu.memory_space<smem>>) -> (i32, i32, i32) {
    %0 = arith.index_cast %arg0 : i32 to index
    %1 = memref.load %arg1[%0] : memref<6xi32, #tpu.memory_space<smem>>
    %c0_i32 = arith.constant 0 : i32
    %c0_i32_0 = arith.constant 0 : i32
    %c0_i32_1 = arith.constant 0 : i32
    return %1, %c0_i32, %c0_i32_0 : i32, i32, i32
  }
  func.func @transform_10(%arg0: i32, %arg1: memref<6xi32, #tpu.memory_space<smem>>) -> (i32, i32, i32) {
    %0 = arith.index_cast %arg0 : i32 to index
    %1 = memref.load %arg1[%0] : memref<6xi32, #tpu.memory_space<smem>>
    %c0_i32 = arith.constant 0 : i32
    %c0_i32_0 = arith.constant 0 : i32
    %c0_i32_1 = arith.constant 0 : i32
    return %1, %c0_i32, %c0_i32_0 : i32, i32, i32
  }
  func.func @transform_11(%arg0: i32, %arg1: memref<6xi32, #tpu.memory_space<smem>>) -> (i32, i32, i32) {
    %0 = arith.index_cast %arg0 : i32 to index
    %1 = memref.load %arg1[%0] : memref<6xi32, #tpu.memory_space<smem>>
    %c0_i32 = arith.constant 0 : i32
    %c0_i32_0 = arith.constant 0 : i32
    %c0_i32_1 = arith.constant 0 : i32
    return %1, %c0_i32, %c0_i32_0 : i32, i32, i32
  }
  func.func @transform_12(%arg0: i32, %arg1: memref<6xi32, #tpu.memory_space<smem>>) -> (i32, i32, i32) {
    %0 = arith.index_cast %arg0 : i32 to index
    %1 = memref.load %arg1[%0] : memref<6xi32, #tpu.memory_space<smem>>
    %c0_i32 = arith.constant 0 : i32
    %c0_i32_0 = arith.constant 0 : i32
    %c0_i32_1 = arith.constant 0 : i32
    return %1, %c0_i32, %c0_i32_0 : i32, i32, i32
  }
  func.func @transform_13(%arg0: i32, %arg1: memref<6xi32, #tpu.memory_space<smem>>) -> (i32, i32, i32) {
    %c0_i32 = arith.constant 0 : i32
    %c0_i32_0 = arith.constant 0 : i32
    %c0_i32_1 = arith.constant 0 : i32
    return %arg0, %c0_i32, %c0_i32_0 : i32, i32, i32
  }
}

module attributes {stable_mosaic.version = 11 : i64} {
  func.func @_head_kernel(%arg0: i32, %arg1: memref<4x128xf32, #tpu.memory_space<vmem>>, %arg2: memref<1x1x128xf32, #tpu.memory_space<vmem>>, %arg3: memref<1x1x128xf32, #tpu.memory_space<vmem>>, %arg4: memref<1x128x2048xbf16, #tpu.memory_space<vmem>>, %arg5: memref<1x1x2048xf32, #tpu.memory_space<vmem>>, %arg6: memref<4x2048xf32, #tpu.memory_space<vmem>>) attributes {dimension_semantics = [#tpu.dimension_semantics<arbitrary>], iteration_bounds = array<i64: 1>, scalar_prefetch = 0 : i64, scratch_operands = 0 : i64, tpu.core_type = #tpu.core_type<tc>, window_params = [{pipeline_mode = #tpu.pipeline_mode<synchronous>, transform_indices = @transform_0, window_bounds = array<i64: 4, 128>}, {transform_indices = @transform_1, window_bounds = array<i64: 1, 1, 128>}, {transform_indices = @transform_2, window_bounds = array<i64: 1, 1, 128>}, {transform_indices = @transform_3, window_bounds = array<i64: 1, 128, 2048>}, {transform_indices = @transform_4, window_bounds = array<i64: 1, 1, 2048>}, {pipeline_mode = #tpu.pipeline_mode<synchronous>, transform_indices = @transform_5, window_bounds = array<i64: 4, 2048>}]} {
    %c0 = arith.constant 0 : index
    %c0_0 = arith.constant 0 : index
    %0 = vector.load %arg1[%c0, %c0_0] : memref<4x128xf32, #tpu.memory_space<vmem>>, vector<4x128xf32>
    %c0_1 = arith.constant 0 : index
    %c0_2 = arith.constant 0 : index
    %c0_3 = arith.constant 0 : index
    %1 = vector.load %arg2[%c0_1, %c0_2, %c0_3] : memref<1x1x128xf32, #tpu.memory_space<vmem>>, vector<1x1x128xf32>
    %2 = vector.shape_cast %1 : vector<1x1x128xf32> to vector<1x128xf32>
    %c0_4 = arith.constant 0 : index
    %c0_5 = arith.constant 0 : index
    %c0_6 = arith.constant 0 : index
    %3 = vector.load %arg3[%c0_4, %c0_5, %c0_6] : memref<1x1x128xf32, #tpu.memory_space<vmem>>, vector<1x1x128xf32>
    %4 = vector.shape_cast %3 : vector<1x1x128xf32> to vector<1x128xf32>
    %cst = arith.constant dense<0.000000e+00> : vector<4xf32>
    %5 = vector.multi_reduction <add>, %0, %cst [1] : vector<4x128xf32> to vector<4xf32>
    %6 = vector.shape_cast %5 : vector<4xf32> to vector<4x1xf32>
    %cst_7 = arith.constant 1.280000e+02 : f32
    %7 = vector.broadcast %cst_7 : f32 to vector<4x1xf32>
    %8 = arith.divf %6, %7 : vector<4x1xf32>
    %9 = vector.broadcast %8 : vector<4x1xf32> to vector<4x128xf32>
    %10 = arith.subf %0, %9 : vector<4x128xf32>
    %11 = arith.mulf %10, %10 : vector<4x128xf32>
    %cst_8 = arith.constant dense<0.000000e+00> : vector<4xf32>
    %12 = vector.multi_reduction <add>, %11, %cst_8 [1] : vector<4x128xf32> to vector<4xf32>
    %13 = vector.shape_cast %12 : vector<4xf32> to vector<4x1xf32>
    %cst_9 = arith.constant 1.280000e+02 : f32
    %14 = vector.broadcast %cst_9 : f32 to vector<4x1xf32>
    %15 = arith.divf %13, %14 : vector<4x1xf32>
    %cst_10 = arith.constant 9.99999997E-7 : f32
    %16 = vector.broadcast %cst_10 : f32 to vector<4x1xf32>
    %17 = arith.addf %15, %16 : vector<4x1xf32>
    %18 = math.rsqrt %17 : vector<4x1xf32>
    %19 = vector.broadcast %18 : vector<4x1xf32> to vector<4x128xf32>
    %20 = arith.mulf %10, %19 : vector<4x128xf32>
    %21 = vector.broadcast %2 : vector<1x128xf32> to vector<4x128xf32>
    %22 = arith.mulf %20, %21 : vector<4x128xf32>
    %23 = vector.broadcast %4 : vector<1x128xf32> to vector<4x128xf32>
    %24 = arith.addf %22, %23 : vector<4x128xf32>
    %25 = arith.truncf %24 : vector<4x128xf32> to vector<4x128xbf16>
    %c0_11 = arith.constant 0 : index
    %c0_12 = arith.constant 0 : index
    %c0_13 = arith.constant 0 : index
    %26 = vector.load %arg4[%c0_11, %c0_12, %c0_13] : memref<1x128x2048xbf16, #tpu.memory_space<vmem>>, vector<1x128x2048xbf16>
    %27 = vector.shape_cast %26 : vector<1x128x2048xbf16> to vector<128x2048xbf16>
    %cst_14 = arith.constant dense<0.000000e+00> : vector<4x2048xf32>
    %28 = tpu.matmul %25, %27, %cst_14 {dimension_numbers = #tpu.dot_dimension_numbers<[1], [0], [0], [1], [0, 0, 1, 1], [], []>} : vector<4x128xbf16>, vector<128x2048xbf16>, vector<4x2048xf32> -> vector<4x2048xf32>
    %c0_15 = arith.constant 0 : index
    %c0_16 = arith.constant 0 : index
    %c0_17 = arith.constant 0 : index
    %29 = vector.load %arg5[%c0_15, %c0_16, %c0_17] : memref<1x1x2048xf32, #tpu.memory_space<vmem>>, vector<1x1x2048xf32>
    %30 = vector.shape_cast %29 : vector<1x1x2048xf32> to vector<1x2048xf32>
    %31 = vector.broadcast %30 : vector<1x2048xf32> to vector<4x2048xf32>
    %32 = arith.addf %28, %31 : vector<4x2048xf32>
    %c0_18 = arith.constant 0 : index
    %c0_19 = arith.constant 0 : index
    %33 = vector.load %arg6[%c0_18, %c0_19] : memref<4x2048xf32, #tpu.memory_space<vmem>>, vector<4x2048xf32>
    tpu.vector_store %arg6[%c0_18, %c0_19], %32 {strides = array<i32>} : memref<4x2048xf32, #tpu.memory_space<vmem>>, vector<4x2048xf32>,
    return
  }
  func.func @transform_0(%arg0: i32) -> (i32, i32) {
    %c0_i32 = arith.constant 0 : i32
    %c0_i32_0 = arith.constant 0 : i32
    %c0_i32_1 = arith.constant 0 : i32
    return %c0_i32, %c0_i32_0 : i32, i32
  }
  func.func @transform_1(%arg0: i32) -> (i32, i32, i32) {
    %c1_i32 = arith.constant 1 : i32
    %c0_i32 = arith.constant 0 : i32
    %c0_i32_0 = arith.constant 0 : i32
    %c0_i32_1 = arith.constant 0 : i32
    return %c1_i32, %c0_i32, %c0_i32_0 : i32, i32, i32
  }
  func.func @transform_2(%arg0: i32) -> (i32, i32, i32) {
    %c1_i32 = arith.constant 1 : i32
    %c0_i32 = arith.constant 0 : i32
    %c0_i32_0 = arith.constant 0 : i32
    %c0_i32_1 = arith.constant 0 : i32
    return %c1_i32, %c0_i32, %c0_i32_0 : i32, i32, i32
  }
  func.func @transform_3(%arg0: i32) -> (i32, i32, i32) {
    %c1_i32 = arith.constant 1 : i32
    %c0_i32 = arith.constant 0 : i32
    %c0_i32_0 = arith.constant 0 : i32
    %c0_i32_1 = arith.constant 0 : i32
    return %c1_i32, %c0_i32, %c0_i32_0 : i32, i32, i32
  }
  func.func @transform_4(%arg0: i32) -> (i32, i32, i32) {
    %c1_i32 = arith.constant 1 : i32
    %c0_i32 = arith.constant 0 : i32
    %c0_i32_0 = arith.constant 0 : i32
    %c0_i32_1 = arith.constant 0 : i32
    return %c1_i32, %c0_i32, %c0_i32_0 : i32, i32, i32
  }
  func.func @transform_5(%arg0: i32) -> (i32, i32) {
    %c0_i32 = arith.constant 0 : i32
    %c0_i32_0 = arith.constant 0 : i32
    %c0_i32_1 = arith.constant 0 : i32
    return %c0_i32, %c0_i32_0 : i32, i32
  }
}

module attributes {stable_mosaic.version = 11 : i64} {
  func.func @_pair_head_bbox_kernel(%arg0: i32, %arg1: memref<2x128xf32, #tpu.memory_space<vmem>>, %arg2: memref<1x1x128xf32, #tpu.memory_space<vmem>>, %arg3: memref<1x1x128xf32, #tpu.memory_space<vmem>>, %arg4: memref<1x128x2048xbf16, #tpu.memory_space<vmem>>, %arg5: memref<1x1x2048xf32, #tpu.memory_space<vmem>>, %arg6: memref<2x10xf32, #tpu.memory_space<vmem>>, %arg7: memref<10x2048xf32, #tpu.memory_space<vmem>>, %arg8: memref<1x2048xf32, #tpu.memory_space<vmem>>, %arg9: memref<2x2048xf32, #tpu.memory_space<vmem>>, %arg10: memref<2x2048xf32, #tpu.memory_space<vmem>>) attributes {dimension_semantics = [#tpu.dimension_semantics<arbitrary>], iteration_bounds = array<i64: 1>, scalar_prefetch = 0 : i64, scratch_operands = 0 : i64, tpu.core_type = #tpu.core_type<tc>, window_params = [{pipeline_mode = #tpu.pipeline_mode<synchronous>, transform_indices = @transform_0, window_bounds = array<i64: 2, 128>}, {transform_indices = @transform_1, window_bounds = array<i64: 1, 1, 128>}, {transform_indices = @transform_2, window_bounds = array<i64: 1, 1, 128>}, {transform_indices = @transform_3, window_bounds = array<i64: 1, 128, 2048>}, {transform_indices = @transform_4, window_bounds = array<i64: 1, 1, 2048>}, {pipeline_mode = #tpu.pipeline_mode<synchronous>, transform_indices = @transform_5, window_bounds = array<i64: 2, 10>}, {pipeline_mode = #tpu.pipeline_mode<synchronous>, transform_indices = @transform_6, window_bounds = array<i64: 10, 2048>}, {pipeline_mode = #tpu.pipeline_mode<synchronous>, transform_indices = @transform_7, window_bounds = array<i64: 1, 2048>}, {pipeline_mode = #tpu.pipeline_mode<synchronous>, transform_indices = @transform_8, window_bounds = array<i64: 2, 2048>}, {pipeline_mode = #tpu.pipeline_mode<synchronous>, transform_indices = @transform_9, window_bounds = array<i64: 2, 2048>}]} {
    %c0 = arith.constant 0 : index
    %c0_0 = arith.constant 0 : index
    %0 = vector.load %arg1[%c0, %c0_0] : memref<2x128xf32, #tpu.memory_space<vmem>>, vector<2x128xf32>
    %c0_1 = arith.constant 0 : index
    %c0_2 = arith.constant 0 : index
    %c0_3 = arith.constant 0 : index
    %1 = vector.load %arg2[%c0_1, %c0_2, %c0_3] : memref<1x1x128xf32, #tpu.memory_space<vmem>>, vector<1x1x128xf32>
    %2 = vector.shape_cast %1 : vector<1x1x128xf32> to vector<1x128xf32>
    %c0_4 = arith.constant 0 : index
    %c0_5 = arith.constant 0 : index
    %c0_6 = arith.constant 0 : index
    %3 = vector.load %arg3[%c0_4, %c0_5, %c0_6] : memref<1x1x128xf32, #tpu.memory_space<vmem>>, vector<1x1x128xf32>
    %4 = vector.shape_cast %3 : vector<1x1x128xf32> to vector<1x128xf32>
    %cst = arith.constant dense<0.000000e+00> : vector<2xf32>
    %5 = vector.multi_reduction <add>, %0, %cst [1] : vector<2x128xf32> to vector<2xf32>
    %6 = vector.shape_cast %5 : vector<2xf32> to vector<2x1xf32>
    %cst_7 = arith.constant 1.280000e+02 : f32
    %7 = vector.broadcast %cst_7 : f32 to vector<2x1xf32>
    %8 = arith.divf %6, %7 : vector<2x1xf32>
    %9 = vector.broadcast %8 : vector<2x1xf32> to vector<2x128xf32>
    %10 = arith.subf %0, %9 : vector<2x128xf32>
    %11 = arith.mulf %10, %10 : vector<2x128xf32>
    %cst_8 = arith.constant dense<0.000000e+00> : vector<2xf32>
    %12 = vector.multi_reduction <add>, %11, %cst_8 [1] : vector<2x128xf32> to vector<2xf32>
    %13 = vector.shape_cast %12 : vector<2xf32> to vector<2x1xf32>
    %cst_9 = arith.constant 1.280000e+02 : f32
    %14 = vector.broadcast %cst_9 : f32 to vector<2x1xf32>
    %15 = arith.divf %13, %14 : vector<2x1xf32>
    %cst_10 = arith.constant 9.99999997E-7 : f32
    %16 = vector.broadcast %cst_10 : f32 to vector<2x1xf32>
    %17 = arith.addf %15, %16 : vector<2x1xf32>
    %18 = math.rsqrt %17 : vector<2x1xf32>
    %19 = vector.broadcast %18 : vector<2x1xf32> to vector<2x128xf32>
    %20 = arith.mulf %10, %19 : vector<2x128xf32>
    %21 = vector.broadcast %2 : vector<1x128xf32> to vector<2x128xf32>
    %22 = arith.mulf %20, %21 : vector<2x128xf32>
    %23 = vector.broadcast %4 : vector<1x128xf32> to vector<2x128xf32>
    %24 = arith.addf %22, %23 : vector<2x128xf32>
    %25 = arith.truncf %24 : vector<2x128xf32> to vector<2x128xbf16>
    %c0_11 = arith.constant 0 : index
    %c0_12 = arith.constant 0 : index
    %c0_13 = arith.constant 0 : index
    %26 = vector.load %arg4[%c0_11, %c0_12, %c0_13] : memref<1x128x2048xbf16, #tpu.memory_space<vmem>>, vector<1x128x2048xbf16>
    %27 = vector.shape_cast %26 : vector<1x128x2048xbf16> to vector<128x2048xbf16>
    %cst_14 = arith.constant dense<0.000000e+00> : vector<2x2048xf32>
    %28 = tpu.matmul %25, %27, %cst_14 {dimension_numbers = #tpu.dot_dimension_numbers<[1], [0], [0], [1], [0, 0, 1, 1], [], []>} : vector<2x128xbf16>, vector<128x2048xbf16>, vector<2x2048xf32> -> vector<2x2048xf32>
    %c0_15 = arith.constant 0 : index
    %c0_16 = arith.constant 0 : index
    %c0_17 = arith.constant 0 : index
    %29 = vector.load %arg5[%c0_15, %c0_16, %c0_17] : memref<1x1x2048xf32, #tpu.memory_space<vmem>>, vector<1x1x2048xf32>
    %30 = vector.shape_cast %29 : vector<1x1x2048xf32> to vector<1x2048xf32>
    %31 = vector.broadcast %30 : vector<1x2048xf32> to vector<2x2048xf32>
    %32 = arith.addf %28, %31 : vector<2x2048xf32>
    %c0_18 = arith.constant 0 : index
    %c0_19 = arith.constant 0 : index
    %33 = vector.load %arg9[%c0_18, %c0_19] : memref<2x2048xf32, #tpu.memory_space<vmem>>, vector<2x2048xf32>
    tpu.vector_store %arg9[%c0_18, %c0_19], %32 {strides = array<i32>} : memref<2x2048xf32, #tpu.memory_space<vmem>>, vector<2x2048xf32>,
    %c0_20 = arith.constant 0 : index
    %c0_21 = arith.constant 0 : index
    %34 = vector.load %arg6[%c0_20, %c0_21] : memref<2x10xf32, #tpu.memory_space<vmem>>, vector<2x10xf32>
    %c0_22 = arith.constant 0 : index
    %c0_23 = arith.constant 0 : index
    %35 = vector.load %arg7[%c0_22, %c0_23] : memref<10x2048xf32, #tpu.memory_space<vmem>>, vector<10x2048xf32>
    %cst_24 = arith.constant dense<0.000000e+00> : vector<2x2048xf32>
    %36 = tpu.matmul %34, %35, %cst_24 {dimension_numbers = #tpu.dot_dimension_numbers<[1], [0], [0], [1], [0, 0, 1, 1], [], []>} : vector<2x10xf32>, vector<10x2048xf32>, vector<2x2048xf32> -> vector<2x2048xf32>
    %c0_25 = arith.constant 0 : index
    %c0_26 = arith.constant 0 : index
    %37 = vector.load %arg8[%c0_25, %c0_26] : memref<1x2048xf32, #tpu.memory_space<vmem>>, vector<1x2048xf32>
    %38 = vector.broadcast %37 : vector<1x2048xf32> to vector<2x2048xf32>
    %39 = arith.addf %36, %38 : vector<2x2048xf32>
    %c0_27 = arith.constant 0 : index
    %c0_28 = arith.constant 0 : index
    %40 = vector.load %arg10[%c0_27, %c0_28] : memref<2x2048xf32, #tpu.memory_space<vmem>>, vector<2x2048xf32>
    tpu.vector_store %arg10[%c0_27, %c0_28], %39 {strides = array<i32>} : memref<2x2048xf32, #tpu.memory_space<vmem>>, vector<2x2048xf32>,
    return
  }
  func.func @transform_0(%arg0: i32) -> (i32, i32) {
    %c0_i32 = arith.constant 0 : i32
    %c0_i32_0 = arith.constant 0 : i32
    %c0_i32_1 = arith.constant 0 : i32
    return %c0_i32, %c0_i32_0 : i32, i32
  }
  func.func @transform_1(%arg0: i32) -> (i32, i32, i32) {
    %c0_i32 = arith.constant 0 : i32
    %c0_i32_0 = arith.constant 0 : i32
    %c0_i32_1 = arith.constant 0 : i32
    %c0_i32_2 = arith.constant 0 : i32
    return %c0_i32, %c0_i32_0, %c0_i32_1 : i32, i32, i32
  }
  func.func @transform_2(%arg0: i32) -> (i32, i32, i32) {
    %c0_i32 = arith.constant 0 : i32
    %c0_i32_0 = arith.constant 0 : i32
    %c0_i32_1 = arith.constant 0 : i32
    %c0_i32_2 = arith.constant 0 : i32
    return %c0_i32, %c0_i32_0, %c0_i32_1 : i32, i32, i32
  }
  func.func @transform_3(%arg0: i32) -> (i32, i32, i32) {
    %c0_i32 = arith.constant 0 : i32
    %c0_i32_0 = arith.constant 0 : i32
    %c0_i32_1 = arith.constant 0 : i32
    %c0_i32_2 = arith.constant 0 : i32
    return %c0_i32, %c0_i32_0, %c0_i32_1 : i32, i32, i32
  }
  func.func @transform_4(%arg0: i32) -> (i32, i32, i32) {
    %c0_i32 = arith.constant 0 : i32
    %c0_i32_0 = arith.constant 0 : i32
    %c0_i32_1 = arith.constant 0 : i32
    %c0_i32_2 = arith.constant 0 : i32
    return %c0_i32, %c0_i32_0, %c0_i32_1 : i32, i32, i32
  }
  func.func @transform_5(%arg0: i32) -> (i32, i32) {
    %c0_i32 = arith.constant 0 : i32
    %c0_i32_0 = arith.constant 0 : i32
    %c0_i32_1 = arith.constant 0 : i32
    return %c0_i32, %c0_i32_0 : i32, i32
  }
  func.func @transform_6(%arg0: i32) -> (i32, i32) {
    %c0_i32 = arith.constant 0 : i32
    %c0_i32_0 = arith.constant 0 : i32
    %c0_i32_1 = arith.constant 0 : i32
    return %c0_i32, %c0_i32_0 : i32, i32
  }
  func.func @transform_7(%arg0: i32) -> (i32, i32) {
    %c0_i32 = arith.constant 0 : i32
    %c0_i32_0 = arith.constant 0 : i32
    %c0_i32_1 = arith.constant 0 : i32
    return %c0_i32, %c0_i32_0 : i32, i32
  }
  func.func @transform_8(%arg0: i32) -> (i32, i32) {
    %c0_i32 = arith.constant 0 : i32
    %c0_i32_0 = arith.constant 0 : i32
    %c0_i32_1 = arith.constant 0 : i32
    return %c0_i32, %c0_i32_0 : i32, i32
  }
  func.func @transform_9(%arg0: i32) -> (i32, i32) {
    %c0_i32 = arith.constant 0 : i32
    %c0_i32_0 = arith.constant 0 : i32
    %c0_i32_1 = arith.constant 0 : i32
    return %c0_i32, %c0_i32_0 : i32, i32
  }
}

</mosaic_0001>

<bundles_post_ra>
// kernel: person_pair_forward.5
= control target key start
LH: loop header
LB: loop body
LE: loop exit
PB: predicated region body
PF: predicated region fallthrough
CT: control target
= control target key end

     0   :  { %s1207_s24 = smov [#allocation3]   ;;  %s1350_s0 = inlined_call_operand.vmem [shape: s32[6], index: 0, kind: input, shape index: {}]   ;;  %s1351_s1 = inlined_call_operand.vmem [shape: f32[6,4,768], index: 1, kind: input, shape index: {}]   ;;  %s1352_s2 = inlined_call_operand.vmem [shape: bf16[2,768,128], index: 2, kind: input, shape index: {}]   ;;  %s1353_s3 = inlined_call_operand.vmem [shape: f32[2,1,128], index: 3, kind: input, shape index: {}]   ;;  %s1354_s4 = inlined_call_operand.vmem [shape: f32[2,1,128], index: 4, kind: input, shape index: {}]   ;;  %s1355_s5 = inlined_call_operand.vmem [shape: f32[2,5,128], index: 5, kind: input, shape index: {}]   ;;  %s1356_s6 = inlined_call_operand.vmem [shape: f32[6,5,128], index: 6, kind: output, shape index: {}]  }
   0x1   :  { %s12_s23 = sshll.u32 %s1350_s0, 4  ;;  %s13_s23 = int_to_ptr.vmem [resolvable:$true] %s12_s23 }
   0x2   :  { %15 = dma.vmem_to_smem %s13_s23, 16, %s1207_s24, [#allocation2] }
   0x3   :  { %1201 = dma.done.wait [#allocation2], 16 }
   0x4   :  { %1202 = vsyncadd [#allocation2], 4294967280 }
   0x5   :  { %18 = sfence }
   0x6   :  { %s1246_s25 = smov 0  }
   0x7 LB: > { %s1252_s26 = sadd.s32 4294967295, %s1205_s25   ;;  %p926_p0 = scmp.ge.s32.totalorder %s1205_s25, 1  ;;  %s1205_s25 = sphi %s1246_s25, %s24_s25  }
   0x8   : > { %p247_p1 = scmp.lt.s32.totalorder %s1205_s25, 7 }
   0xa   : > { %p248_p2 = pnand %p926_p0, %p247_p1 }
   0xb   : > { %s298_s0 = sld [smem:[#allocation3 + %s1252_s26]] (!%p248_p2)  ;;  %p293_p3 = scmp.lt.s32.totalorder (!%p248_p2), %s1252_s26, 5 }
   0xc   : > { %251 = sbr.rel (%p248_p2) target bundleno = 223 (0xdf), region = 40  ;;  %s305_s27 = sld [smem:[#allocation3 + %s1252_s26]] (!%p248_p2) }
   0xd   : > { %s315_s16 = sld [smem:[#allocation3 + %s1252_s26]] (!%p248_p2) }
   0xe   : > { %s310_s17 = sld [smem:[#allocation3 + %s1252_s26]] (!%p248_p2) }
  0x11   : > { %s1260_s28 = scalar_select %p293_p3, %s1252_s26, 5 }
  0x12   : > { %p299_p4 = scmp.lt.s32.totalorder %s298_s0, 1  ;;  %p306_p5 = scmp.lt.s32.totalorder %s305_s27, 1 }
  0x13   : > { %s1173_s29 = smul.u32 24, %s1260_s28  ;;  %p316_p6 = scmp.lt.s32.totalorder %s315_s16, 1 }
  0x14   : > { %s1358_s0 = smov (!%p299_p4, %s298_s0), 1  ;;  %s1360_s27 = smov (!%p306_p5, %s305_s27), 1 }
  0x15   : > { %s1266_s8 = scalar_lea.vmem %s1351_s1, %s1173_s29  ;;  %s1174_s9 = smul.u32 384, %s1358_s0 }
  0x16   : > { %v325_v0 = vld [vmem:[%s1266_s8] sm:$0xff]  ;;  %s308_s12 = scalar_lea.vmem %s1353_s3, %s1360_s27  ;;  %v326_v1 = vld [vmem:[%s1266_s8 + $0x8] sm:$0xff]  ;;  %v327_v24 = vld [vmem:[%s1266_s8 + $0x10] sm:$0xff]  ;;  %p311_p7 = scmp.lt.s32.totalorder %s310_s17, 1 }
  0x17   : > { %331 = vst [vmem:[#allocation1] ss:$2 sm:$0xff] %v325_v0  ;;  %s1278_s15 = scalar_lea.vmem %s1352_s2, %s1174_s9  ;;  %s1362_s16 = smov (!%p316_p6, %s315_s16), 1 }
  0x18   : > { %v1132_v2 = vld [vmem:[%s1278_s15 + $0x38] sm:$0xff]  ;;  %333 = vst [vmem:[#allocation1 + $0x10] ss:$2 sm:$0xff] %v326_v1  ;;  %v1131_v4 = vld [vmem:[%s1278_s15 + $0x30] sm:$0xff]  ;;  %v1130_v10 = vld [vmem:[%s1278_s15 + $0x28] sm:$0xff]  ;;  %s1364_s17 = smov (!%p311_p7, %s310_s17), 1 }
  0x19   : > { %v1140_v3 = vld [vmem:[%s1278_s15 + $0x78] sm:$0xff]  ;;  %742 = vmatpush.bf16.msra.mxu0 %v1132_v2  ;;  %v1139_v5 = vld [vmem:[%s1278_s15 + $0x70] sm:$0xff]  ;;  %v1138_v11 = vld [vmem:[%s1278_s15 + $0x68] sm:$0xff]  ;;  %335 = vst [vmem:[#allocation1 + $0x20] ss:$2 sm:$0xff] %v327_v24  ;;  %s929_s18 = sshll.u32 %s1362_s16, 3  ;;  %s313_s22 = scalar_lea.vmem %s1354_s4, %s1364_s17 }
  0x1a   : > { %755 = vmatpush.bf16.msra.mxu1 %v1140_v3  ;;  %v1148_v6 = vld [vmem:[%s1278_s15 + $0xb8] sm:$0xff]  ;;  %v1147_v8 = vld [vmem:[%s1278_s15 + $0xb0] sm:$0xff]  ;;  %v1146_v12 = vld [vmem:[%s1278_s15 + $0xa8] sm:$0xff]  ;;  %s930_s19 = sshll.u32 %s1260_s28, 3  ;;  %s319_s0 = scalar_lea.vmem %s1355_s5, %s929_s18 }
  0x1b   : > { %v1156_v7 = vld [vmem:[%s1278_s15 + $0xf8] sm:$0xff]  ;;  %768 = vmatpush.bf16.msra.mxu2 %v1148_v6  ;;  %v1155_v9 = vld [vmem:[%s1278_s15 + $0xf0] sm:$0xff]  ;;  %v1154_v13 = vld [vmem:[%s1278_s15 + $0xe8] sm:$0xff]  ;;  %s324_s26 = scalar_lea.vmem %s1356_s6, %s930_s19 }
  0x1c   : > { %781 = vmatpush.bf16.msra.mxu3 %v1156_v7  ;;  %v1129_v14 = vld [vmem:[%s1278_s15 + $0x20] sm:$0xff]  ;;  %v1128_v18 = vld [vmem:[%s1278_s15 + $0x18] sm:$0xff]  ;;  %v1127_v22 = vld [vmem:[%s1278_s15 + $0x10] sm:$0xff] }
  0x1d   : > { %743 = vmatpush.bf16.msra.mxu0 %v1131_v4  ;;  %v1137_v15 = vld [vmem:[%s1278_s15 + $0x60] sm:$0xff]  ;;  %v1136_v19 = vld [vmem:[%s1278_s15 + $0x58] sm:$0xff]  ;;  %v1135_v23 = vld [vmem:[%s1278_s15 + $0x50] sm:$0xff] }
  0x1e   : > { %756 = vmatpush.bf16.msra.mxu1 %v1139_v5  ;;  %v1145_v16 = vld [vmem:[%s1278_s15 + $0xa0] sm:$0xff]  ;;  %v1144_v20 = vld [vmem:[%s1278_s15 + $0x98] sm:$0xff]  ;;  %v1143_v25 = vld [vmem:[%s1278_s15 + $0x90] sm:$0xff] }
  0x1f   : > { %769 = vmatpush.bf16.msra.mxu2 %v1147_v8  ;;  %v1153_v17 = vld [vmem:[%s1278_s15 + $0xe0] sm:$0xff]  ;;  %v1152_v21 = vld [vmem:[%s1278_s15 + $0xd8] sm:$0xff]  ;;  %v1151_v26 = vld [vmem:[%s1278_s15 + $0xd0] sm:$0xff] }
  0x20   : > { %782 = vmatpush.bf16.msra.mxu3 %v1155_v9  ;;  %v1126_v27 = vld [vmem:[%s1278_s15 + $0x8] sm:$0xff]  ;;  %v1125_v31 = vld [vmem:[%s1278_s15] sm:$0xff]  ;;  %v1164_v35 = vld [vmem:[%s1278_s15 + $0x138] sm:$0xff] }
  0x21   : > { %744 = vmatpush.bf16.msra.mxu0 %v1130_v10  ;;  %v1134_v28 = vld [vmem:[%s1278_s15 + $0x48] sm:$0xff]  ;;  %v1133_v32 = vld [vmem:[%s1278_s15 + $0x40] sm:$0xff]  ;;  %v1172_v36 = vld [vmem:[%s1278_s15 + $0x178] sm:$0xff] }
  0x22   : > { %757 = vmatpush.bf16.msra.mxu1 %v1138_v11  ;;  %v1142_v29 = vld [vmem:[%s1278_s15 + $0x88] sm:$0xff]  ;;  %v336_v33 = vld.sshfl [vmem:[#allocation1] sm:$0xff pattern:$0x75316420]  ;;  %v1163_v43 = vld [vmem:[%s1278_s15 + $0x130] sm:$0xff] }
  0x23   : > { %770 = vmatpush.bf16.msra.mxu2 %v1146_v12  ;;  %v1150_v30 = vld [vmem:[%s1278_s15 + $0xc8] sm:$0xff]  ;;  %v1141_v37 = vld [vmem:[%s1278_s15 + $0x80] sm:$0xff]  ;;  %v348_v39 = vpack.c.bf16 %v336_v33, %v336_v33  ;;  %v338_v41 = vld.sshfl [vmem:[#allocation1 + $0x10] sm:$0xff pattern:$0x75316420] }
  0x24   : > { %783 = vmatpush.bf16.msra.mxu3 %v1154_v13  ;;  %v337_v34 = vld.sshfl [vmem:[#allocation1 + $0x8] sm:$0xff pattern:$0x75316420]  ;;  %v1149_v38 = vld [vmem:[%s1278_s15 + $0xc0] sm:$0xff]  ;;  %v1171_v44 = vld [vmem:[%s1278_s15 + $0x170] sm:$0xff]  ;;  %v350_v45 = vpack.c.bf16 %v338_v41, %v338_v41 }
  0x25   : > { %745 = vmatpush.bf16.msra.mxu0 %v1129_v14  ;;  %v349_v40 = vpack.c.bf16 %v337_v34, %v337_v34  ;;  %v339_v42 = vld.sshfl [vmem:[#allocation1 + $0x18] sm:$0xff pattern:$0x75316420]  ;;  %v1162_v47 = vld [vmem:[%s1278_s15 + $0x128] sm:$0xff]  ;;  %v1161_v49 = vld [vmem:[%s1278_s15 + $0x120] sm:$0xff] }
  0x26   : > { %758 = vmatpush.bf16.msra.mxu1 %v1137_v15  ;;  %v351_v46 = vpack.c.bf16 %v339_v42, %v339_v42  ;;  %v1170_v48 = vld [vmem:[%s1278_s15 + $0x168] sm:$0xff]  ;;  %v1169_v50 = vld [vmem:[%s1278_s15 + $0x160] sm:$0xff]  ;;  %v1160_v51 = vld [vmem:[%s1278_s15 + $0x118] sm:$0xff] }
  0x27   : > { %771 = vmatpush.bf16.msra.mxu2 %v1145_v16  ;;  %v1168_v52 = vld [vmem:[%s1278_s15 + $0x158] sm:$0xff]  ;;  %v1159_v53 = vld [vmem:[%s1278_s15 + $0x110] sm:$0xff]  ;;  %v1158_v55 = vld [vmem:[%s1278_s15 + $0x108] sm:$0xff] }
  0x28   : > { %784 = vmatpush.bf16.msra.mxu3 %v1153_v17  ;;  %v1167_v54 = vld [vmem:[%s1278_s15 + $0x150] sm:$0xff]  ;;  %v1166_v56 = vld [vmem:[%s1278_s15 + $0x148] sm:$0xff]  ;;  %v1157_v57 = vld [vmem:[%s1278_s15 + $0x100] sm:$0xff] }
  0x29   : > { %746 = vmatpush.bf16.msra.mxu0 %v1128_v18  ;;  %v1165_v58 = vld [vmem:[%s1278_s15 + $0x140] sm:$0xff]  ;;  %v341_v60 = vld.sshfl [vmem:[#allocation1 + $0x28] sm:$0xff pattern:$0x75316420] }
  0x2a   : > { %759 = vmatpush.bf16.msra.mxu1 %v1136_v19  ;;  %v340_v59 = vld.sshfl [vmem:[#allocation1 + $0x20] sm:$0xff pattern:$0x75316420]  ;;  %v353_v62 = vpack.c.bf16 %v341_v60, %v341_v60 }
  0x2b   : > { %772 = vmatpush.bf16.msra.mxu2 %v1144_v20  ;;  %v352_v61 = vpack.c.bf16 %v340_v59, %v340_v59  ;;  %v820_v1 = vld [vmem:[%s313_s22] sm:$0x1]  ;;  %v824_v18 = vld [vmem:[%s319_s0 + $0x1] sm:$0xf] }
  0x2c   : > { %785 = vmatpush.bf16.msra.mxu3 %v1152_v21  ;;  %v821_v2 = vld [vmem:[%s319_s0] sm:$0x1] }
  0x2d   : > { %747 = vmatpush.bf16.msra.mxu0 %v1127_v22  ;;  %v822_v3 = vadd.f32 %v821_v2, %v820_v1  ;;  %v1184_v8 = vld [vmem:[%s308_s12] ss:$0 sm:$0xff] }
  0x2e   : > { %760 = vmatpush.bf16.msra.mxu1 %v1135_v23 }
  0x2f   : > { %773 = vmatpush.bf16.msra.mxu2 %v1143_v25  ;;  %823 = vst [vmem:[%s324_s26] sm:$0x1] %v822_v3 }
  0x30   : > { %786 = vmatpush.bf16.msra.mxu3 %v1151_v26 }
  0x31   : > { %748 = vmatpush.bf16.msra.mxu0 %v1126_v27 }
  0x32   : > { %761 = vmatpush.bf16.msra.mxu1 %v1134_v28 }
  0x33   : > { %774 = vmatpush.bf16.msra.mxu2 %v1142_v29 }
  0x34   : > { %787 = vmatpush.bf16.msra.mxu3 %v1150_v30 }
  0x35   : > { %749 = vmatpush.bf16.msra.mxu0 %v1125_v31 }
  0x36   : > { %762 = vmatpush.bf16.msra.mxu1 %v1133_v32 }
  0x37   : > { %775 = vmatpush.bf16.msra.mxu2 %v1141_v37 }
  0x38   : > { %788 = vmatpush.bf16.msra.mxu3 %v1149_v38  ;;  %750 = vmatmul.bf16.vlgmr.msra.gmra.mxu0 %v348_v39 }
  0x39   : > { %794 = vmatpush.bf16.msrb.mxu0 %v1164_v35  ;;  %763 = vmatmul.bf16.vlgmr.msra.gmra.mxu1 %v349_v40 }
  0x3a   : > { %807 = vmatpush.bf16.msrb.mxu1 %v1172_v36  ;;  %776 = vmatmul.bf16.vlgmr.msra.gmra.mxu2 %v350_v45 }
  0x3b   : > { %789 = vmatmul.bf16.vlgmr.msra.gmra.mxu3 %v351_v46 }
  0x3d   : > { %795 = vmatpush.bf16.msrb.mxu0 %v1163_v43 }
  0x3e   : > { %808 = vmatpush.bf16.msrb.mxu1 %v1171_v44 }
  0x41   : > { %796 = vmatpush.bf16.msrb.mxu0 %v1162_v47 }
  0x42   : > { %809 = vmatpush.bf16.msrb.mxu1 %v1170_v48 }
  0x45   : > { %797 = vmatpush.bf16.msrb.mxu0 %v1161_v49 }
  0x46   : > { %810 = vmatpush.bf16.msrb.mxu1 %v1169_v50 }
  0x49   : > { %798 = vmatpush.bf16.msrb.mxu0 %v1160_v51 }
  0x4a   : > { %811 = vmatpush.bf16.msrb.mxu1 %v1168_v52 }
  0x4d   : > { %799 = vmatpush.bf16.msrb.mxu0 %v1159_v53 }
  0x4e   : > { %812 = vmatpush.bf16.msrb.mxu1 %v1167_v54 }
  0x51   : > { %800 = vmatpush.bf16.msrb.mxu0 %v1158_v55 }
  0x52   : > { %813 = vmatpush.bf16.msrb.mxu1 %v1166_v56 }
  0x55   : > { %801 = vmatpush.bf16.msrb.mxu0 %v1157_v57 }
  0x56   : > { %814 = vmatpush.bf16.msrb.mxu1 %v1165_v58 }
  0x58   : > { %802 = vmatmul.bf16.vlgmr.msrb.gmra.mxu0 %v352_v61 }
  0x59   : > { %815 = vmatmul.bf16.vlgmr.msrb.gmra.mxu1 %v353_v62 }
  0xb5   : > { %v751_v63 = vpop.f32.mrf.mxu0 }
  0xb6   : > { %v764_v0 = vpop.f32.mrf.mxu1  ;;  %v752_v9 = vadd.f32 %v1184_v8, %v751_v63 }
  0xb8   : > { %v765_v12 = vadd.f32 %v764_v0, %v752_v9 }
  0xbd   : > { %v753_v4 = vpop.f32.mrf.mxu0  ;;  %v777_v6 = vpop.f32.mrf.mxu2 }
  0xbe   : > { %v766_v5 = vpop.f32.mrf.mxu1  ;;  %v790_v7 = vpop.f32.mrf.mxu3  ;;  %v778_v13 = vadd.f32 %v777_v6, %v765_v12 }
  0xc0   : > { %v791_v14 = vadd.f32 %v790_v7, %v778_v13 }
  0xc5   : > { %v779_v10 = vpop.f32.mrf.mxu2 }
  0xc6   : > { %v792_v11 = vpop.f32.mrf.mxu3 }
  0xd5   : > { %v803_v15 = vpop.f32.mrf.mxu0 }
  0xd6   : > { %v816_v16 = vpop.f32.mrf.mxu1  ;;  %v804_v17 = vadd.f32 %v803_v15, %v791_v14 }
  0xd8   : > { %v817_v19 = vadd.f32 %v816_v16, %v804_v17 }
  0xda   : > { %v825_v20 = vadd.f32 %v824_v18, %v817_v19 }
  0xdc   : > { %826 = vst [vmem:[%s324_s26 + $0x1] sm:$0xf] %v825_v20 }
  0xdd   : > { %v805_v21 = vpop.f32.mrf.mxu0 }
  0xde   : > { %v818_v22 = vpop.f32.mrf.mxu1 }
  0xdf PF: > { %s24_s25 = sadd.s32 1, %s1205_s25  }
  0xe0   : > { %p21_p8 = scmp.ge.s32.totalorder %s24_s25, 8  }
  0xe2   :  { %23 = sbr.rel (!%p21_p8) target bundleno = 7 (0x7), region = 84 }

// kernel: person_pair_forward.6
= control target key start
LH: loop header
LB: loop body
LE: loop exit
PB: predicated region body
PF: predicated region fallthrough
CT: control target
= control target key end

     0   :  { %s2758_s16 = smov [#allocation3]   ;;  %s3207_s0 = inlined_call_operand.vmem [shape: s32[6], index: 0, kind: input, shape index: {}]   ;;  %s3208_s1 = inlined_call_operand.vmem [shape: f32[6,5,128], index: 1, kind: input, shape index: {}]   ;;  %s3209_s2 = inlined_call_operand.vmem [shape: f32[2,1,128], index: 2, kind: input, shape index: {}]   ;;  %s3210_s3 = inlined_call_operand.vmem [shape: f32[2,1,128], index: 3, kind: input, shape index: {}]   ;;  %s3211_s4 = inlined_call_operand.vmem [shape: bf16[2,128,384], index: 4, kind: input, shape index: {}]   ;;  %s3212_s5 = inlined_call_operand.vmem [shape: f32[2,1,384], index: 5, kind: input, shape index: {}]   ;;  %s3213_s6 = inlined_call_operand.vmem [shape: bf16[2,128,128], index: 6, kind: input, shape index: {}]   ;;  %s3214_s7 = inlined_call_operand.vmem [shape: f32[2,1,128], index: 7, kind: input, shape index: {}]   ;;  %s3215_s8 = inlined_call_operand.vmem [shape: f32[2,1,128], index: 8, kind: input, shape index: {}]   ;;  %s3216_s9 = inlined_call_operand.vmem [shape: f32[2,1,128], index: 9, kind: input, shape index: {}]   ;;  %s3217_s10 = inlined_call_operand.vmem [shape: bf16[2,128,512], index: 10, kind: input, shape index: {}]   ;;  %s3218_s11 = inlined_call_operand.vmem [shape: f32[2,1,512], index: 11, kind: input, shape index: {}]   ;;  %s3219_s12 = inlined_call_operand.vmem [shape: bf16[2,512,128], index: 12, kind: input, shape index: {}]   ;;  %s3220_s13 = inlined_call_operand.vmem [shape: f32[2,1,128], index: 13, kind: input, shape index: {}]   ;;  %s3221_s14 = inlined_call_operand.vmem [shape: f32[6,5,128], index: 14, kind: output, shape index: {}]  }
   0x1   :  { %s20_s15 = sshll.u32 %s3207_s0, 4  ;;  %s21_s15 = int_to_ptr.vmem [resolvable:$true] %s20_s15 }
   0x2   :  { %23 = dma.vmem_to_smem %s21_s15, 16, %s2758_s16, [#allocation2] }
   0x3   :  { %2752 = dma.done.wait [#allocation2], 16 }
   0x4   :  { %2753 = vsyncadd [#allocation2], 4294967280 }
   0x5   :  { %26 = sfence }
   0x6   :  { %s2842_s17 = smov 0  }
   0x7 LB: > { %s2848_s18 = sadd.s32 4294967295, %s2756_s17   ;;  %p2176_p0 = scmp.ge.s32.totalorder %s2756_s17, 1  ;;  %s2756_s17 = sphi %s2842_s17, %s32_s17  }
   0x8   : > { %p549_p1 = scmp.lt.s32.totalorder %s2756_s17, 7 }
   0xa   : > { %p550_p2 = pnand %p2176_p0, %p549_p1 }
   0xb   : > { %p649_p3 = scmp.lt.s32.totalorder (!%p550_p2), %s2848_s18, 5  ;;  %s663_s23 = sld [smem:[#allocation3 + %s2848_s18]] (!%p550_p2) }
   0xc   : > { %553 = sbr.rel (%p550_p2) target bundleno = 2198 (0x896), region = 72  ;;  %s653_s28 = sld [smem:[#allocation3 + %s2848_s18]] (!%p550_p2) }
   0xd   : > { %s658_s29 = sld [smem:[#allocation3 + %s2848_s18]] (!%p550_p2)  ;;  %s2761_s20 = smov (!%p550_p2), 96  }
   0xe   : > { %s2763_s21 = smov (!%p550_p2), 64  }
  0x11   : > { %s2854_s0 = scalar_select %p649_p3, %s2848_s18, 5  ;;  %vm731_vm0 = vcmask 1044480   ;;  %v2759_v2 = vmov 128.0   ;;  %vm995_vm5 = vcmask 261120   ;;  %vm1034_vm6 = vcmask 1041408  }
  0x12   : > { %p664_p4 = scmp.lt.s32.totalorder %s663_s23, 1  ;;  %2706 = vrcp.f32 %v2759_v2  ;;  %p654_p5 = scmp.lt.s32.totalorder %s653_s28, 1  ;;  %vm1035_vm7 = vcmask 1042432   ;;  %vm1016_vm8 = vcmask 36864   ;;  %vm1030_vm9 = vcmask 39936  }
  0x13   : > { %s2177_s19 = sshll.u32 %s2854_s0, 3  ;;  %p659_p6 = scmp.lt.s32.totalorder %s658_s29, 1 }
  0x14   : > { %s652_s22 = scalar_lea.vmem %s3208_s1, %s2177_s19  ;;  %s3223_s23 = smov (!%p664_p4, %s663_s23), 1 }
  0x15   : > { %v2862_v0 = vld [vmem:[%s652_s22] sm:$0x1f]  ;;  %s2684_s24 = smul.u32 192, %s3223_s23  ;;  %s3225_s28 = smov (!%p654_p5, %s653_s28), 1 }
  0x16   : > { %v732_v1 = vsel %vm731_vm0, %v2862_v0, 0.0  ;;  %s656_s16 = scalar_lea.vmem %s3209_s2, %s3225_s28  ;;  %s3227_s29 = smov (!%p659_p6, %s658_s29), 1 }
  0x17   : > { %733 = vadd.xlane.f32.xlu0 %v732_v1  ;;  %s2870_s27 = scalar_lea.vmem %s3211_s4, %s2684_s24  ;;  %s661_s22 = scalar_lea.vmem %s3210_s3, %s3227_s29 }
  0x18   : > { %v2273_v3 = vld [vmem:[%s2870_s27 + $0xa8] sm:$0xf]  ;;  %v2610_v4 = vld [vmem:[%s2870_s27 + $0xb0] sm:$0xf0]  ;;  %v2609_v5 = vld [vmem:[%s2870_s27 + $0xac] sm:$0xf]  ;;  %v2707_v12 = vpop.eup %2706  ;;  %s726_s28 = scalar_lea.vmem %s3221_s14, %s2177_s19 }
  0x19   : > { %v2274_v6 = vor.u32 %v2610_v4, %v2273_v3  ;;  %v2275_v7 = vld [vmem:[%s2870_s27 + $0xb4] sm:$0xf0]  ;;  %v2281_v8 = vld [vmem:[%s2870_s27 + $0xb0] sm:$0xf]  ;;  %v2611_v9 = vld [vmem:[%s2870_s27 + $0xb8] sm:$0xf0]  ;;  %vm740_vm1 = vweird.f32 %v2707_v12 }
  0x1a   : > { %v2278_v10 = vor.u32 %v2609_v5, %v2275_v7  ;;  %v2282_v11 = vor.u32 %v2611_v9, %v2281_v8  ;;  %v736_v13 = vmul.f32 128.0, %v2707_v12  ;;  %v2261_v23 = vld [vmem:[%s2870_s27 + $0x90] sm:$0xf]  ;;  %v2607_v24 = vld [vmem:[%s2870_s27 + $0x98] sm:$0xf0]  ;;  %s2760_s29 = smov 32  }
  0x1b   : > { %938 = vmatpush.bf16.msra.mxu0 %v2274_v6  ;;  %v2606_v25 = vld [vmem:[%s2870_s27 + $0x94] sm:$0xf]  ;;  %v2262_v26 = vor.u32 %v2607_v24, %v2261_v23  ;;  %v2263_v27 = vld [vmem:[%s2870_s27 + $0x9c] sm:$0xf0]  ;;  %v2269_v28 = vld [vmem:[%s2870_s27 + $0x98] sm:$0xf] }
  0x1c   : > { %951 = vmatpush.bf16.msra.mxu1 %v2278_v10  ;;  %964 = vmatpush.bf16.msra.mxu2 %v2282_v11  ;;  %v737_v14 = vsub.f32 1.0, %v736_v13  ;;  %v2608_v29 = vld [vmem:[%s2870_s27 + $0xa0] sm:$0xf0]  ;;  %v2266_v30 = vor.u32 %v2606_v25, %v2263_v27  ;;  %v2249_v32 = vld [vmem:[%s2870_s27 + $0x78] sm:$0xf]  ;;  %s693_s24 = sld [smem:[#allocation3 + %s2848_s18]] }
  0x1d   : > { %v2270_v31 = vor.u32 %v2608_v29, %v2269_v28  ;;  %v2604_v33 = vld [vmem:[%s2870_s27 + $0x80] sm:$0xf0]  ;;  %v2603_v34 = vld [vmem:[%s2870_s27 + $0x7c] sm:$0xf]  ;;  %v2251_v36 = vld [vmem:[%s2870_s27 + $0x84] sm:$0xf0] }
  0x1e   : > { %v738_v15 = vmul.f32 %v2707_v12, %v737_v14  ;;  %v2250_v35 = vor.u32 %v2604_v33, %v2249_v32  ;;  %v2257_v37 = vld [vmem:[%s2870_s27 + $0x80] sm:$0xf]  ;;  %v2605_v38 = vld [vmem:[%s2870_s27 + $0x88] sm:$0xf0]  ;;  %v2254_v39 = vor.u32 %v2603_v34, %v2251_v36  ;;  %v2600_v43 = vld [vmem:[%s2870_s27 + $0x64] sm:$0xf] }
  0x1f   : > { %939 = vmatpush.bf16.msra.mxu0 %v2262_v26  ;;  %v2258_v40 = vor.u32 %v2605_v38, %v2257_v37  ;;  %v2237_v41 = vld [vmem:[%s2870_s27 + $0x60] sm:$0xf]  ;;  %v2601_v42 = vld [vmem:[%s2870_s27 + $0x68] sm:$0xf0]  ;;  %v2239_v45 = vld [vmem:[%s2870_s27 + $0x6c] sm:$0xf0] }
  0x20   : > { %v739_v16 = vadd.f32 %v2707_v12, %v738_v15  ;;  %952 = vmatpush.bf16.msra.mxu1 %v2266_v30  ;;  %965 = vmatpush.bf16.msra.mxu2 %v2270_v31  ;;  %v2238_v44 = vor.u32 %v2601_v42, %v2237_v41  ;;  %v2245_v46 = vld [vmem:[%s2870_s27 + $0x68] sm:$0xf]  ;;  %v2602_v47 = vld [vmem:[%s2870_s27 + $0x70] sm:$0xf0]  ;;  %v2242_v48 = vor.u32 %v2600_v43, %v2239_v45  ;;  %v2597_v52 = vld [vmem:[%s2870_s27 + $0x4c] sm:$0xf] }
  0x21   : > { %v2246_v49 = vor.u32 %v2602_v47, %v2245_v46  ;;  %v2225_v50 = vld [vmem:[%s2870_s27 + $0x48] sm:$0xf]  ;;  %v2598_v51 = vld [vmem:[%s2870_s27 + $0x50] sm:$0xf0]  ;;  %v2227_v54 = vld [vmem:[%s2870_s27 + $0x54] sm:$0xf0] }
  0x22   : > { %v2878_v17 = vsel %vm740_vm1, %v2707_v12, %v739_v16  ;;  %v2226_v53 = vor.u32 %v2598_v51, %v2225_v50  ;;  %v2233_v55 = vld [vmem:[%s2870_s27 + $0x50] sm:$0xf]  ;;  %v2599_v56 = vld [vmem:[%s2870_s27 + $0x58] sm:$0xf0]  ;;  %v2230_v57 = vor.u32 %v2597_v52, %v2227_v54  ;;  %v2594_v61 = vld [vmem:[%s2870_s27 + $0x34] sm:$0xf] }
  0x23   : > { %940 = vmatpush.bf16.msra.mxu0 %v2250_v35  ;;  %v2234_v58 = vor.u32 %v2599_v56, %v2233_v55  ;;  %v2213_v59 = vld [vmem:[%s2870_s27 + $0x30] sm:$0xf]  ;;  %v2595_v60 = vld [vmem:[%s2870_s27 + $0x38] sm:$0xf0]  ;;  %v2215_v63 = vld [vmem:[%s2870_s27 + $0x3c] sm:$0xf0] }
  0x24   : > { %953 = vmatpush.bf16.msra.mxu1 %v2254_v39  ;;  %966 = vmatpush.bf16.msra.mxu2 %v2258_v40  ;;  %v2214_v62 = vor.u32 %v2595_v60, %v2213_v59  ;;  %v2221_v1 = vld [vmem:[%s2870_s27 + $0x38] sm:$0xf]  ;;  %v2596_v2 = vld [vmem:[%s2870_s27 + $0x40] sm:$0xf0]  ;;  %v2218_v3 = vor.u32 %v2594_v61, %v2215_v63  ;;  %v2591_v7 = vld [vmem:[%s2870_s27 + $0x1c] sm:$0xf] }
  0x25   : > { %v2222_v4 = vor.u32 %v2596_v2, %v2221_v1  ;;  %v2201_v5 = vld [vmem:[%s2870_s27 + $0x18] sm:$0xf]  ;;  %v2592_v6 = vld [vmem:[%s2870_s27 + $0x20] sm:$0xf0]  ;;  %v2203_v9 = vld [vmem:[%s2870_s27 + $0x24] sm:$0xf0] }
  0x26   : > { %v2202_v8 = vor.u32 %v2592_v6, %v2201_v5  ;;  %v2209_v10 = vld [vmem:[%s2870_s27 + $0x20] sm:$0xf]  ;;  %v2593_v11 = vld [vmem:[%s2870_s27 + $0x28] sm:$0xf0]  ;;  %v2206_v12 = vor.u32 %v2591_v7, %v2203_v9  ;;  %v2588_v16 = vld [vmem:[%s2870_s27 + $0x4] sm:$0xf] }
  0x27   : > { %941 = vmatpush.bf16.msra.mxu0 %v2238_v44  ;;  %v2210_v13 = vor.u32 %v2593_v11, %v2209_v10  ;;  %v2189_v14 = vld [vmem:[%s2870_s27] sm:$0xf]  ;;  %v2589_v15 = vld [vmem:[%s2870_s27 + $0x8] sm:$0xf0]  ;;  %p694_p12 = scmp.lt.s32.totalorder %s693_s24, 1 }
  0x28   : > { %954 = vmatpush.bf16.msra.mxu1 %v2242_v48  ;;  %967 = vmatpush.bf16.msra.mxu2 %v2246_v49  ;;  %v2700_v34 = vld [vmem:[%s656_s16] ss:$0 sm:$0xff]  ;;  %v2762_v49 = vmov 65535  }
  0x29   : > { %v2701_v37 = vld [vmem:[%s661_s22] ss:$0 sm:$0xff]  ;;  %v1036_v50 = vsel %vm1034_vm6, 4294967295, %v2762_v49  ;;  %s676_s22 = sld [smem:[#allocation3 + %s2848_s18]]  ;;  %s3239_s24 = smov (!%p694_p12, %s693_s24), 1 }
  0x2a   : > { %v2962_v56 = vsel %vm1035_vm7, %v1036_v50, 0 }
  0x2b   : > { %942 = vmatpush.bf16.msra.mxu0 %v2226_v53 }
  0x2c   : > { %955 = vmatpush.bf16.msra.mxu1 %v2230_v57  ;;  %968 = vmatpush.bf16.msra.mxu2 %v2234_v58 }
  0x2f   : > { %943 = vmatpush.bf16.msra.mxu0 %v2214_v62  ;;  %p677_p8 = scmp.lt.s32.totalorder %s676_s22, 1 }
  0x30   : > { %956 = vmatpush.bf16.msra.mxu1 %v2218_v3  ;;  %969 = vmatpush.bf16.msra.mxu2 %v2222_v4 }
  0x31   : > { %s3231_s22 = smov (!%p677_p8, %s676_s22), 1 }
  0x32   : > { %s2585_s23 = sshll.u32 %s3231_s22, 6 }
  0x33   : > { %944 = vmatpush.bf16.msra.mxu0 %v2202_v8  ;;  %s2976_s26 = scalar_lea.vmem %s3213_s6, %s2585_s23  ;;  %s688_s23 = sld [smem:[#allocation3 + %s2848_s18]] }
  0x34   : > { %957 = vmatpush.bf16.msra.mxu1 %v2206_v12  ;;  %970 = vmatpush.bf16.msra.mxu2 %v2210_v13  ;;  %v2613_v61 = vld [vmem:[%s2976_s26 + $0x8] sm:$0xff]  ;;  %v2612_v62 = vld [vmem:[%s2976_s26] sm:$0xff] }
  0x39   : > { %p689_p11 = scmp.lt.s32.totalorder %s688_s23, 1 }
  0x3b   : > { %s3237_s23 = smov (!%p689_p11, %s688_s23), 1 }
  0x8a   : > { %v734_v18 = vpop.xlane.xlu0 %733 }
  0x8b   : > { %v742_v19 = vmul.f32 %v2878_v17, %v734_v18  ;;  %v2190_v18 = vor.u32 %v2589_v15, %v2189_v14 }
  0x8d   : > { %v2882_v20 = vsub.f32 %v2862_v0, %v742_v19  ;;  %v2191_v19 = vld [vmem:[%s2870_s27 + $0xc] sm:$0xf0]  ;;  %945 = vmatpush.bf16.msra.mxu0 %v2190_v18 }
  0x8e   : > { %v2194_v23 = vor.u32 %v2588_v16, %v2191_v19 }
  0x8f   : > { %v744_v21 = vmul.f32 %v2882_v20, %v2882_v20 }
  0x90   : > { %958 = vmatpush.bf16.msra.mxu1 %v2194_v23 }
  0x91   : > { %v745_v22 = vsel %vm731_vm0, %v744_v21, 0.0  ;;  %v2197_v21 = vld [vmem:[%s2870_s27 + $0x8] sm:$0xf] }
  0x92   : > { %746 = vadd.xlane.f32.xlu0 %v745_v22  ;;  %v2590_v22 = vld [vmem:[%s2870_s27 + $0x10] sm:$0xf0]  ;;  %s670_s27 = sld [smem:[#allocation3 + %s2848_s18]] }
  0x93   : > { %v2198_v24 = vor.u32 %v2590_v22, %v2197_v21 }
  0x95   : > { %971 = vmatpush.bf16.msra.mxu2 %v2198_v24 }
  0x98   : > { %p671_p7 = scmp.lt.s32.totalorder %s670_s27, 1 }
  0x99   : > { %1165 = vmatpush.bf16.msrb.mxu2 %v2613_v61 }
  0x9a   : > { %s3229_s27 = smov (!%p671_p7, %s670_s27), 1 }
  0x9b   : > { %s2685_s30 = smul.u32 3, %s3229_s27  ;;  %s683_s27 = sld [smem:[#allocation3 + %s2848_s18]] }
  0x9d   : > { %s674_s16 = scalar_lea.vmem %s3212_s5, %s2685_s30  ;;  %1166 = vmatpush.bf16.msrb.mxu2 %v2612_v62 }
  0xa1   : > { %p684_p9 = scmp.lt.s32.totalorder %s683_s27, 1 }
  0xa3   : > { %s3233_s27 = smov (!%p684_p9, %s683_s27), 1 }
  0xa4   : > { %s686_s15 = scalar_lea.vmem %s3214_s7, %s3233_s27  ;;  %s691_s27 = scalar_lea.vmem %s3215_s8, %s3237_s23 }
  0xa5   : > { %s718_s23 = sld [smem:[#allocation3 + %s2848_s18]] }
  0xab   : > { %p719_p0 = scmp.lt.s32.totalorder %s718_s23, 1 }
  0xad   : > { %s3243_s23 = smov (!%p719_p0, %s718_s23), 1 }
 0x105   : > { %v747_v25 = vpop.xlane.xlu0 %746 }
 0x106   : > { %v748_v26 = vmul.f32 %v747_v25, %v2878_v17 }
 0x108   : > { %v749_v27 = vadd.f32 1e-06, %v748_v26 }
 0x10a   : > { %2708 = vrsqrt.f32 %v749_v27  ;;  %vm756_vm3 = vweird.f32 %v749_v27 }
 0x110   : > { %v2709_v28 = vpop.eup %2708 }
 0x111   : > { %v751_v29 = vmul.f32 %v2709_v28, %v749_v27  ;;  %vm757_vm2 = vweird.f32 %v2709_v28 }
 0x112   : > { %vm758_vm4 = vmor %vm756_vm3, %vm757_vm2 }
 0x113   : > { %v752_v30 = vmul.f32 %v2709_v28, %v751_v29 }
 0x115   : > { %v753_v31 = vmul.f32 0.5, %v752_v30 }
 0x117   : > { %v754_v32 = vsub.f32 1.5, %v753_v31 }
 0x119   : > { %v755_v33 = vmul.f32 %v2709_v28, %v754_v32 }
 0x11b   : > { %v759_v35 = vsel %vm758_vm4, %v2709_v28, %v755_v33 }
 0x11c   : > { %v760_v36 = vmul.f32 %v759_v35, %v2882_v20  ;;  %v802_v20 = vld [vmem:[%s674_s16] sm:$0x7]  ;;  %s698_s16 = sld [smem:[#allocation3 + %s2848_s18]] }
 0x11d   : > { %v805_v41 = vperm.slane %v802_v20, 1  ;;  %v804_v45 = vperm.slane %v802_v20, 0  ;;  %v806_v47 = vperm.slane %v802_v20, 2 }
 0x11e   : > { %v764_v38 = vmul.f32 %v2700_v34, %v760_v36 }
 0x120   : > { %v768_v39 = vadd.f32 %v2701_v37, %v764_v38 }
 0x122   : > { %v769_v40 = vpack.c.bf16 %v768_v39, %v768_v39  ;;  %p699_p10 = scmp.lt.s32.totalorder %s698_s16, 1 }
 0x124   : > { %946 = vmatmul.bf16.vlgmr.msra.gmra.mxu0 %v769_v40  ;;  %959 = vmatmul.bf16.vlgmr.msra.gmra.mxu1 %v769_v40  ;;  %s3235_s16 = smov (!%p699_p10, %s698_s16), 1 }
 0x125   : > { %972 = vmatmul.bf16.vlgmr.msra.gmra.mxu2 %v769_v40 }
 0x1a1   : > { %v947_v42 = vpop.f32.mrf.mxu0  ;;  %v960_v43 = vpop.f32.mrf.mxu1 }
 0x1a2   : > { %v961_v44 = vadd.f32 %v960_v43, %v805_v41  ;;  %v948_v51 = vadd.f32 %v947_v42, %v804_v45 }
 0x1a4   : > { %v994_v46 = vpack.c.bf16 %v961_v44, %v961_v44  ;;  %v993_v58 = vpack.c.bf16 %v948_v51, %v948_v51 }
 0x1a6   : > { %1261 = vrot.lane.b32.xlu0 %v994_v46, %s2760_s29  ;;  %1059 = vrot.lane.b32.xlu2 %v994_v46, %s2761_s20  ;;  %v1000_v48 = vsel %vm995_vm5, %v994_v46, 0 }
 0x1a7   : > { %1009 = vmatpush.bf16.xpose.msra.mxu3 %v1000_v48 }
 0x1a8   : > { %v973_v52 = vpop.f32.mrf.mxu2 }
 0x1a9   : > { %v974_v53 = vadd.f32 %v973_v52, %v806_v47  ;;  %v949_v54 = vpop.f32.mrf.mxu0  ;;  %v962_v55 = vpop.f32.mrf.mxu1 }
 0x1ab   : > { %v2964_v57 = vpack.c.bf16 %v974_v53, %v974_v53 }
 0x1ad   : > { %v1039_v59 = vand.u32 %v2962_v56, %v2964_v57 }
 0x1ae   : > { %1056 = vrot.lane.b32.xlu2 %v993_v58, %s2761_s20  ;;  %2283 = vmatmul.msk.bf16.vlgmr.msra.gmra.mxu3 %vm995_vm5, %v993_v58 }
 0x1af   : > { %1048 = vmatpush.bf16.msrb.mxu3 %v1039_v59 }
 0x1b0   : > { %v975_v60 = vpop.f32.mrf.mxu2 }
 0x1b6   : > { %1259 = vrot.lane.b32.xlu2 %v993_v58, %s2760_s29 }
 0x1be   : > { %1172 = vrot.lane.b32.xlu2 %v993_v58, %s2763_s21 }
 0x200   : > { %v1060_v63 = vpop.permute.xlu2 %1059 }
 0x201   : > { %v1065_v1 = vsel %vm995_vm5, %v1060_v63, 0 }
 0x202   : > { %1074 = vmatpush.bf16.xpose.msra.mxu3 %v1065_v1 }
 0x208   : > { %v1057_v18 = vpop.permute.xlu2 %1056 }
 0x210   : > { %v1260_v22 = vpop.permute.xlu2 %1259 }
 0x218   : > { %v1262_v2 = vpop.permute.xlu0 %1261  ;;  %v1173_v23 = vpop.permute.xlu2 %1172 }
 0x219   : > { %v1267_v3 = vsel %vm995_vm5, %v1262_v2, 0 }
 0x21a   : > { %1276 = vmatpush.bf16.xpose.msra.mxu2 %v1267_v3 }
 0x231   : > { %v1011_v4 = vpop.f32.mrf.mxu3 }
 0x232   : > { %v1015_v5 = vmul.f32 0.17677669, %v1011_v4 }
 0x234   : > { %v1017_v6 = vsel %vm1016_vm8, %v1015_v5, -inf }
 0x235   : > { %1018 = vmax.xlane.f32.xlu1 %v1017_v6  ;;  %v2615_v6 = vld [vmem:[%s2976_s26 + $0x18] sm:$0xff] }
 0x236   : > { %1137 = vmatpush.bf16.msrb.mxu1 %v2615_v6 }
 0x239   : > { %v1013_v7 = vpop.f32.mrf.mxu3 }
 0x23a   : > { %v2614_v7 = vld [vmem:[%s2976_s26 + $0x10] sm:$0xff] }
 0x23b   : > { %1138 = vmatpush.bf16.msrb.mxu1 %v2614_v7 }
 0x2a8   : > { %v1019_v8 = vpop.xlane.xlu1 %1018 }
 0x2a9   : > { %v1020_v9 = vsub.f32 %v1015_v5, %v1019_v8  ;;  %v2617_v8 = vld [vmem:[%s2976_s26 + $0x28] sm:$0xff] }
 0x2aa   : > { %1251 = vmatpush.bf16.msra.mxu1 %v2617_v8 }
 0x2ab   : > { %v1021_v10 = vmul.f32 1.442695, %v1020_v9 }
 0x2ad   : > { %2710 = vpow2.f32 %v1021_v10  ;;  %v2616_v10 = vld [vmem:[%s2976_s26 + $0x20] sm:$0xff] }
 0x2ae   : > { %1252 = vmatpush.bf16.msra.mxu1 %v2616_v10 }
 0x2b3   : > { %v2711_v11 = vpop.eup %2710 }
 0x2b4   : > { %v1023_v12 = vsel %vm1016_vm8, %v2711_v11, 0.0 }
 0x2b5   : > { %1024 = vadd.xlane.f32.xlu1 %v1023_v12 }
 0x2ce   : > { %1174 = vrot.lane.b32.xlu1 %v994_v46, %s2763_s21 }
 0x328   : > { %v1025_v13 = vpop.xlane.xlu1 %1024 }
 0x329   : > { %2712 = vrcp.f32 %v1025_v13 }
 0x32f   : > { %v2713_v14 = vpop.eup %2712 }
 0x330   : > { %v1027_v15 = vmul.f32 %v2713_v14, %v2711_v11 }
 0x332   : > { %v1028_v16 = vpack.c.bf16 %v1027_v15, %v1027_v15  ;;  %v2619_v15 = vld [vmem:[%s2976_s26 + $0x38] sm:$0xff] }
 0x334   : > { %2284 = vmatmul.msk.bf16.vlgmr.msrb.gmra.mxu3 %vm1030_vm9, %v1028_v16 }
 0x340   : > { %v1175_v19 = vpop.permute.xlu1 %1174 }
 0x341   : > { %v1180_v21 = vsel %vm995_vm5, %v1175_v19, 0 }
 0x342   : > { %1189 = vmatpush.bf16.xpose.msrb.mxu3 %v1180_v21 }
 0x344   : > { %2285 = vmatmul.msk.bf16.vlgmr.msra.gmra.mxu3 %vm995_vm5, %v1057_v18 }
 0x354   : > { %2305 = vmatmul.msk.bf16.vlgmr.msrb.gmra.mxu3 %vm995_vm5, %v1173_v23 }
 0x3b7   : > { %v1050_v24 = vpop.f32.mrf.mxu3 }
 0x3b8   : > { %v1054_v25 = vpack.c.bf16 %v1050_v24, %v1050_v24 }
 0x3ba   : > { %2304 = vmatmul.msk.bf16.vlgmr.msrb.gmra.mxu2 %vm995_vm5, %v1054_v25 }
 0x3bf   : > { %v1052_v26 = vpop.f32.mrf.mxu3 }
 0x3c7   : > { %v1076_v27 = vpop.f32.mrf.mxu3 }
 0x3c8   : > { %v1080_v28 = vmul.f32 0.17677669, %v1076_v27 }
 0x3ca   : > { %2316 = vmatmul.msk.bf16.vlgmr.msra.gmra.mxu2 %vm995_vm5, %v1260_v22  ;;  %v1081_v29 = vsel %vm1016_vm8, %v1080_v28, -inf }
 0x3cb   : > { %1082 = vmax.xlane.f32.xlu2 %v1081_v29 }
 0x3cf   : > { %v1078_v30 = vpop.f32.mrf.mxu3 }
 0x3d7   : > { %v1191_v31 = vpop.f32.mrf.mxu3 }
 0x3d8   : > { %v1195_v32 = vmul.f32 0.17677669, %v1191_v31 }
 0x3da   : > { %v1196_v33 = vsel %vm1016_vm8, %v1195_v32, -inf }
 0x3db   : > { %1197 = vmax.xlane.f32.xlu1 %v1196_v33 }
 0x3df   : > { %v1193_v34 = vpop.f32.mrf.mxu3 }
 0x43d   : > { %v2993_v35 = vpop.f32.mrf.mxu2 }
 0x43e   : > { %v1083_v36 = vpop.xlane.xlu2 %1082 }
 0x43f   : > { %v1084_v37 = vsub.f32 %v1080_v28, %v1083_v36  ;;  %v2702_v36 = vld [vmem:[%s686_s15] ss:$0 sm:$0xff]  ;;  %s696_s15 = scalar_lea.vmem %s3216_s9, %s3239_s24 }
 0x441   : > { %v1085_v38 = vmul.f32 1.442695, %v1084_v37 }
 0x443   : > { %2714 = vpow2.f32 %v1085_v38 }
 0x445   : > { %v1170_v39 = vpop.f32.mrf.mxu2 }
 0x449   : > { %v2715_v40 = vpop.eup %2714 }
 0x44a   : > { %v1087_v20 = vsel %vm1016_vm8, %v2715_v40, 0.0 }
 0x44b   : > { %1088 = vadd.xlane.f32.xlu2 %v1087_v20 }
 0x44d   : > { %v1278_v41 = vpop.f32.mrf.mxu2 }
 0x44e   : > { %v1282_v42 = vmul.f32 0.17677669, %v1278_v41  ;;  %v1198_v43 = vpop.xlane.xlu1 %1197 }
 0x44f   : > { %v1199_v44 = vsub.f32 %v1195_v32, %v1198_v43 }
 0x450   : > { %v1283_v45 = vsel %vm1016_vm8, %v1282_v42, -inf }
 0x451   : > { %v1200_v46 = vmul.f32 1.442695, %v1199_v44  ;;  %1284 = vmax.xlane.f32.xlu0 %v1283_v45 }
 0x453   : > { %2716 = vpow2.f32 %v1200_v46 }
 0x455   : > { %v1280_v47 = vpop.f32.mrf.mxu2 }
 0x459   : > { %v2717_v48 = vpop.eup %2716 }
 0x45a   : > { %v1202_v49 = vsel %vm1016_vm8, %v2717_v48, 0.0 }
 0x45b   : > { %1203 = vadd.xlane.f32.xlu1 %v1202_v49 }
 0x465   : > { %1094 = vrot.lane.b32.xlu0 %v2964_v57, %s2761_s20 }
 0x474   : > { %1208 = vrot.lane.b32.xlu1 %v2964_v57, %s2763_s21 }
 0x4be   : > { %v1089_v53 = vpop.xlane.xlu2 %1088 }
 0x4c4   : > { %v1285_v50 = vpop.xlane.xlu0 %1284 }
 0x4c5   : > { %v1286_v51 = vsub.f32 %v1282_v42, %v1285_v50 }
 0x4c7   : > { %v1287_v52 = vmul.f32 1.442695, %v1286_v51 }
 0x4c9   : > { %2718 = vpow2.f32 %v1287_v52 }
 0x4ca   : > { %2720 = vrcp.f32 %v1089_v53 }
 0x4ce   : > { %v1204_v62 = vpop.xlane.xlu1 %1203 }
 0x4cf   : > { %v2719_v54 = vpop.eup %2718  ;;  %2722 = vrcp.f32 %v1204_v62 }
 0x4d0   : > { %v1289_v55 = vsel %vm1016_vm8, %v2719_v54, 0.0  ;;  %v2721_v58 = vpop.eup %2720 }
 0x4d1   : > { %1290 = vadd.xlane.f32.xlu2 %v1289_v55  ;;  %v1091_v59 = vmul.f32 %v2721_v58, %v2715_v40 }
 0x4d3   : > { %v1092_v63 = vpack.c.bf16 %v1091_v59, %v1091_v59 }
 0x4d5   : > { %v2723_v1 = vpop.eup %2722 }
 0x4d6   : > { %v1206_v3 = vmul.f32 %v2723_v1, %v2717_v48 }
 0x4d7   : > { %v1095_v60 = vpop.permute.xlu0 %1094 }
 0x4d8   : > { %v1100_v61 = vand.u32 %v1095_v60, %v2962_v56  ;;  %v1207_v5 = vpack.c.bf16 %v1206_v3, %v1206_v3 }
 0x4da   : > { %1109 = vmatpush.bf16.msrb.mxu0 %v1100_v61 }
 0x4dd   : > { %2286 = vmatmul.msk.bf16.vlgmr.msrb.gmra.mxu0 %vm1030_vm9, %v1092_v63 }
 0x4e6   : > { %v1209_v2 = vpop.permute.xlu1 %1208 }
 0x4e7   : > { %v1214_v4 = vand.u32 %v1209_v2, %v2962_v56 }
 0x4e9   : > { %1295 = vrot.lane.b32.xlu2 %v2964_v57, %s2760_s29  ;;  %1223 = vmatpush.bf16.msra.mxu0 %v1214_v4  ;;  %s2586_s29 = sshll.u32 %s3235_s16, 8  ;;  %s3074_s16 = sld [smem:[#allocation3 + %s2848_s18]] }
 0x4ea   : > { %s3034_s22 = scalar_lea.vmem %s3217_s10, %s2586_s29 }
 0x4eb   : > { %v2648_v20 = vld [vmem:[%s3034_s22 + $0xe4] sm:$0xf]  ;;  %v2443_v42 = vld [vmem:[%s3034_s22 + $0xf0] sm:$0xf0]  ;;  %v2449_v43 = vld [vmem:[%s3034_s22 + $0xe8] sm:$0xf] }
 0x4ec   : > { %v2651_v44 = vld [vmem:[%s3034_s22 + $0xf4] sm:$0xf0]  ;;  %v2446_v45 = vor.u32 %v2648_v20, %v2443_v42  ;;  %v2649_v47 = vld [vmem:[%s3034_s22 + $0xec] sm:$0xf]  ;;  %v2451_v48 = vld [vmem:[%s3034_s22 + $0xf8] sm:$0xf0] }
 0x4ed   : > { %2306 = vmatmul.msk.bf16.vlgmr.msra.gmra.mxu0 %vm1030_vm9, %v1207_v5  ;;  %v2450_v46 = vor.u32 %v2651_v44, %v2449_v43  ;;  %v2454_v49 = vor.u32 %v2649_v47, %v2451_v48  ;;  %v2425_v55 = vld [vmem:[%s3034_s22 + $0xc0] sm:$0xf]  ;;  %v2646_v58 = vld [vmem:[%s3034_s22 + $0xcc] sm:$0xf0]  ;;  %v2644_v59 = vld [vmem:[%s3034_s22 + $0xc4] sm:$0xf] }
 0x4ee   : > { %1338 = vmatpush.bf16.msrb.mxu0 %v2619_v15  ;;  %1600 = vmatpush.bf16.msrb.mxu2 %v2446_v45  ;;  %v2426_v60 = vor.u32 %v2646_v58, %v2425_v55  ;;  %v2427_v61 = vld [vmem:[%s3034_s22 + $0xd0] sm:$0xf0]  ;;  %v2433_v62 = vld [vmem:[%s3034_s22 + $0xc8] sm:$0xf]  ;;  %v2647_v63 = vld [vmem:[%s3034_s22 + $0xd4] sm:$0xf0] }
 0x4ef   : > { %v2430_v1 = vor.u32 %v2644_v59, %v2427_v61  ;;  %v2434_v2 = vor.u32 %v2647_v63, %v2433_v62  ;;  %v2645_v3 = vld [vmem:[%s3034_s22 + $0xcc] sm:$0xf]  ;;  %v2435_v4 = vld [vmem:[%s3034_s22 + $0xd8] sm:$0xf0]  ;;  %v2409_v6 = vld [vmem:[%s3034_s22 + $0xa0] sm:$0xf] }
 0x4f0   : > { %v2438_v5 = vor.u32 %v2645_v3, %v2435_v4  ;;  %v2642_v7 = vld [vmem:[%s3034_s22 + $0xac] sm:$0xf0]  ;;  %v2640_v8 = vld [vmem:[%s3034_s22 + $0xa4] sm:$0xf]  ;;  %v2411_v10 = vld [vmem:[%s3034_s22 + $0xb0] sm:$0xf0] }
 0x4f1   : > { %v2419_v15 = vld [vmem:[%s3034_s22 + $0xb8] sm:$0xf0]  ;;  %p712_p13 = scmp.lt.s32.totalorder %s3074_s16, 1  ;;  %v2630_v42 = vld [vmem:[%s3034_s22 + $0x4c] sm:$0xf0] }
 0x4f2   : > { %1601 = vmatpush.bf16.msrb.mxu2 %v2430_v1  ;;  %v2628_v43 = vld [vmem:[%s3034_s22 + $0x44] sm:$0xf]  ;;  %v2363_v45 = vld [vmem:[%s3034_s22 + $0x50] sm:$0xf0]  ;;  %v2631_v47 = vld [vmem:[%s3034_s22 + $0x54] sm:$0xf0] }
 0x4f3   : > { %s3241_s16 = smov (!%p712_p13, %s3074_s16), 1  ;;  %v2366_v48 = vor.u32 %v2628_v43, %v2363_v45  ;;  %v2626_v55 = vld [vmem:[%s3034_s22 + $0x2c] sm:$0xf0]  ;;  %v2624_v58 = vld [vmem:[%s3034_s22 + $0x24] sm:$0xf] }
 0x4f4   : > { %s2587_s29 = sshll.u32 %s3241_s16, 8  ;;  %v2353_v61 = vld [vmem:[%s3034_s22 + $0x28] sm:$0xf]  ;;  %v2627_v62 = vld [vmem:[%s3034_s22 + $0x34] sm:$0xf0]  ;;  %s705_s16 = sld [smem:[#allocation3 + %s2848_s18]] }
 0x4f5   : > { %v2354_v1 = vor.u32 %v2627_v62, %v2353_v61  ;;  %v2355_v3 = vld [vmem:[%s3034_s22 + $0x38] sm:$0xf0]  ;;  %v2329_v4 = vld [vmem:[%s3034_s22] sm:$0xf]  ;;  %s3136_s25 = scalar_lea.vmem %s3219_s12, %s2587_s29 }
 0x4f6   : > { %v2673_v43 = vld [vmem:[%s3136_s25 + $0xa8] sm:$0xff]  ;;  %v2679_v45 = vld [vmem:[%s3136_s25 + $0xd8] sm:$0xff] }
 0x4f7   : > { %v2661_v61 = vld [vmem:[%s3136_s25 + $0x48] sm:$0xff] }
 0x4f8   : > { %v2669_v62 = vld [vmem:[%s3136_s25 + $0x88] sm:$0xff] }
 0x4fa   : > { %p706_p1 = scmp.lt.s32.totalorder %s705_s16, 1 }
 0x4fc   : > { %s3245_s16 = smov (!%p706_p1, %s705_s16), 1 }
 0x4fd   : > { %s2183_s18 = sshll.u32 %s3245_s16, 2 }
 0x4fe   : > { %s709_s21 = scalar_lea.vmem %s3218_s11, %s2183_s18 }
 0x544   : > { %v1291_v9 = vpop.xlane.xlu2 %1290 }
 0x545   : > { %2724 = vrcp.f32 %v1291_v9  ;;  %v2410_v9 = vor.u32 %v2642_v7, %v2409_v6  ;;  %v2622_v6 = vld [vmem:[%s3034_s22 + $0xc] sm:$0xf0]  ;;  %v2620_v7 = vld [vmem:[%s3034_s22 + $0x4] sm:$0xf] }
 0x54b   : > { %v2725_v11 = vpop.eup %2724 }
 0x54c   : > { %v1293_v12 = vmul.f32 %v2725_v11, %v2719_v54  ;;  %v1296_v13 = vpop.permute.xlu2 %1295  ;;  %v2417_v11 = vld [vmem:[%s3034_s22 + $0xa8] sm:$0xf] }
 0x54d   : > { %v1301_v57 = vand.u32 %v1296_v13, %v2962_v56  ;;  %v2618_v56 = vld [vmem:[%s2976_s26 + $0x30] sm:$0xff]  ;;  %v2414_v13 = vor.u32 %v2640_v8, %v2411_v10 }
 0x54e   : > { %v1294_v14 = vpack.c.bf16 %v1293_v12, %v1293_v12  ;;  %1339 = vmatpush.bf16.msrb.mxu0 %v2618_v56  ;;  %v2643_v12 = vld [vmem:[%s3034_s22 + $0xb4] sm:$0xf0]  ;;  %v2401_v56 = vld [vmem:[%s3034_s22 + $0x88] sm:$0xf]  ;;  %v2331_v8 = vld [vmem:[%s3034_s22 + $0x10] sm:$0xf0] }
 0x54f   : > { %1310 = vmatpush.bf16.msra.mxu3 %v1301_v57  ;;  %v2418_v57 = vor.u32 %v2643_v12, %v2417_v11  ;;  %1602 = vmatpush.bf16.msrb.mxu2 %v2414_v13  ;;  %v2334_v10 = vor.u32 %v2620_v7, %v2331_v8  ;;  %v2337_v11 = vld [vmem:[%s3034_s22 + $0x8] sm:$0xf]  ;;  %v2623_v12 = vld [vmem:[%s3034_s22 + $0x14] sm:$0xf0]  ;;  %v2621_v13 = vld [vmem:[%s3034_s22 + $0xc] sm:$0xf] }
 0x552   : > { %2317 = vmatmul.msk.bf16.vlgmr.msra.gmra.mxu3 %vm1030_vm9, %v1294_v14  ;;  %1626 = vmatpush.bf16.msra.mxu0 %v2454_v49  ;;  %v2641_v14 = vld [vmem:[%s3034_s22 + $0xac] sm:$0xf] }
 0x553   : > { %1613 = vmatpush.bf16.msrb.mxu3 %v2450_v46  ;;  %v2369_v46 = vld [vmem:[%s3034_s22 + $0x48] sm:$0xf] }
 0x554   : > { %v2370_v49 = vor.u32 %v2631_v47, %v2369_v46  ;;  %v2664_v46 = vld [vmem:[%s3136_s25 + $0x60] sm:$0xff] }
 0x555   : > { %v2672_v47 = vld [vmem:[%s3136_s25 + $0xa0] sm:$0xff] }
 0x556   : > { %1627 = vmatpush.bf16.msra.mxu0 %v2438_v5 }
 0x557   : > { %1614 = vmatpush.bf16.msrb.mxu3 %v2434_v2  ;;  %v2625_v2 = vld [vmem:[%s3034_s22 + $0x2c] sm:$0xf] }
 0x558   : > { %v2358_v5 = vor.u32 %v2625_v2, %v2355_v3  ;;  %v2660_v2 = vld [vmem:[%s3136_s25 + $0x40] sm:$0xff] }
 0x559   : > { %v2668_v3 = vld [vmem:[%s3136_s25 + $0x80] sm:$0xff] }
 0x55a   : > { %v1111_v16 = vpop.f32.mrf.mxu0 }
 0x55b   : > { %v1115_v18 = vpack.c.bf16 %v1111_v16, %v1111_v16  ;;  %v2422_v16 = vor.u32 %v2641_v14, %v2419_v15  ;;  %1615 = vmatpush.bf16.msrb.mxu3 %v2418_v57  ;;  %v2338_v57 = vor.u32 %v2623_v12, %v2337_v11  ;;  %v2339_v14 = vld [vmem:[%s3034_s22 + $0x18] sm:$0xf0] }
 0x55c   : > { %v2342_v15 = vor.u32 %v2621_v13, %v2339_v14 }
 0x55d   : > { %2295 = vmatmul.msk.bf16.vlgmr.msrb.gmra.mxu1 %vm995_vm5, %v1115_v18  ;;  %v2393_v18 = vld [vmem:[%s3034_s22 + $0x80] sm:$0xf]  ;;  %1628 = vmatpush.bf16.msra.mxu0 %v2422_v16 }
 0x562   : > { %v1113_v19 = vpop.f32.mrf.mxu0 }
 0x563   : > { %v2638_v19 = vld [vmem:[%s3034_s22 + $0x8c] sm:$0xf0] }
 0x56a   : > { %v1225_v21 = vpop.f32.mrf.mxu0 }
 0x56b   : > { %v1229_v22 = vpack.c.bf16 %v1225_v21, %v1225_v21  ;;  %v2636_v21 = vld [vmem:[%s3034_s22 + $0x84] sm:$0xf] }
 0x56d   : > { %2315 = vmatmul.msk.bf16.vlgmr.msra.gmra.mxu1 %vm995_vm5, %v1229_v22  ;;  %v2394_v22 = vor.u32 %v2638_v19, %v2393_v18  ;;  %v2659_v18 = vld [vmem:[%s3136_s25 + $0x38] sm:$0xff] }
 0x56e   : > { %v2683_v19 = vld [vmem:[%s3136_s25 + $0xf8] sm:$0xff] }
 0x572   : > { %v1227_v23 = vpop.f32.mrf.mxu0 }
 0x573   : > { %v2395_v23 = vld [vmem:[%s3034_s22 + $0x90] sm:$0xf0] }
 0x5d5   : > { %v1312_v24 = vpop.f32.mrf.mxu3 }
 0x5d6   : > { %v1316_v25 = vpack.c.bf16 %v1312_v24, %v1312_v24  ;;  %v2639_v24 = vld [vmem:[%s3034_s22 + $0x94] sm:$0xf0] }
 0x5d8   : > { %2326 = vmatmul.msk.bf16.vlgmr.msrb.gmra.mxu0 %vm995_vm5, %v1316_v25  ;;  %v2398_v25 = vor.u32 %v2636_v21, %v2395_v23 }
 0x5da   : > { %v1140_v26 = vpop.f32.mrf.mxu1  ;;  %1603 = vmatpush.bf16.msrb.mxu2 %v2398_v25 }
 0x5db   : > { %v1169_v29 = vadd.f32 %v2993_v35, %v1140_v26  ;;  %v2650_v35 = vld [vmem:[%s3034_s22 + $0xec] sm:$0xf0]  ;;  %v2402_v26 = vor.u32 %v2639_v24, %v2401_v56 }
 0x5dd   : > { %v1314_v27 = vpop.f32.mrf.mxu3  ;;  %1616 = vmatpush.bf16.msrb.mxu3 %v2402_v26 }
 0x5de   : > { %v2637_v27 = vld [vmem:[%s3034_s22 + $0x8c] sm:$0xf] }
 0x5e2   : > { %v1142_v28 = vpop.f32.mrf.mxu1 }
 0x5e3   : > { %v2403_v28 = vld [vmem:[%s3034_s22 + $0x98] sm:$0xf0] }
 0x5ea   : > { %v1254_v30 = vpop.f32.mrf.mxu1 }
 0x5eb   : > { %v1258_v31 = vadd.f32 %v1254_v30, %v1169_v29  ;;  %v2406_v29 = vor.u32 %v2637_v27, %v2403_v28  ;;  %v2377_v30 = vld [vmem:[%s3034_s22 + $0x60] sm:$0xf] }
 0x5ed   : > { %1629 = vmatpush.bf16.msra.mxu0 %v2406_v29 }
 0x5f2   : > { %v1256_v32 = vpop.f32.mrf.mxu1 }
 0x5f3   : > { %v2632_v32 = vld [vmem:[%s3034_s22 + $0x64] sm:$0xf] }
 0x655   : > { %v1341_v33 = vpop.f32.mrf.mxu0 }
 0x656   : > { %v1345_v34 = vadd.f32 %v1341_v33, %v1258_v31  ;;  %v2634_v31 = vld [vmem:[%s3034_s22 + $0x6c] sm:$0xf0] }
 0x657   : > { %v2378_v33 = vor.u32 %v2634_v31, %v2377_v30  ;;  %v2704_v30 = vld [vmem:[%s696_s15] ss:$0 sm:$0xff]  ;;  %s721_s15 = scalar_lea.vmem %s3220_s13, %s3243_s23 }
 0x658   : > { %v1346_v37 = vadd.f32 %v1345_v34, %v2862_v0  ;;  %v2441_v0 = vld [vmem:[%s3034_s22 + $0xe0] sm:$0xf]  ;;  %v2379_v34 = vld [vmem:[%s3034_s22 + $0x70] sm:$0xf0] }
 0x659   : > { %v2442_v41 = vor.u32 %v2650_v35, %v2441_v0  ;;  %v2633_v0 = vld [vmem:[%s3034_s22 + $0x6c] sm:$0xf]  ;;  %v2387_v35 = vld [vmem:[%s3034_s22 + $0x78] sm:$0xf0] }
 0x65a   : > { %v3026_v38 = vadd.f32 %v2702_v36, %v1346_v37  ;;  %v2385_v36 = vld [vmem:[%s3034_s22 + $0x68] sm:$0xf]  ;;  %v2635_v37 = vld [vmem:[%s3034_s22 + $0x74] sm:$0xf0]  ;;  %v2390_v20 = vor.u32 %v2633_v0, %v2387_v35  ;;  %v2666_v0 = vld [vmem:[%s3136_s25 + $0x70] sm:$0xff] }
 0x65b   : > { %1587 = vmatpush.bf16.msrb.mxu1 %v2442_v41  ;;  %v2361_v41 = vld [vmem:[%s3034_s22 + $0x40] sm:$0xf]  ;;  %v2674_v35 = vld [vmem:[%s3136_s25 + $0xb0] sm:$0xff] }
 0x65c   : > { %v1354_v39 = vsel %vm731_vm0, %v3026_v38, 0.0  ;;  %1630 = vmatpush.bf16.msra.mxu0 %v2390_v20  ;;  %v2362_v44 = vor.u32 %v2630_v42, %v2361_v41  ;;  %v2656_v20 = vld [vmem:[%s3136_s25 + $0x20] sm:$0xff]  ;;  %v2665_v42 = vld [vmem:[%s3136_s25 + $0x68] sm:$0xff] }
 0x65d   : > { %1355 = vadd.xlane.f32.xlu0 %v1354_v39  ;;  %v1343_v40 = vpop.f32.mrf.mxu0  ;;  %v2382_v39 = vor.u32 %v2632_v32, %v2379_v34  ;;  %v2682_v34 = vld [vmem:[%s3136_s25 + $0xf0] sm:$0xff]  ;;  %v2680_v41 = vld [vmem:[%s3136_s25 + $0xe0] sm:$0xff] }
 0x65e   : > { %v2386_v40 = vor.u32 %v2635_v37, %v2385_v36  ;;  %v2667_v36 = vld [vmem:[%s3136_s25 + $0x78] sm:$0xff] }
 0x65f   : > { %1588 = vmatpush.bf16.msrb.mxu1 %v2426_v60  ;;  %1604 = vmatpush.bf16.msrb.mxu2 %v2382_v39  ;;  %v2347_v60 = vld [vmem:[%s3034_s22 + $0x30] sm:$0xf0]  ;;  %v2675_v37 = vld [vmem:[%s3136_s25 + $0xb8] sm:$0xff]  ;;  %v2657_v39 = vld [vmem:[%s3136_s25 + $0x28] sm:$0xff] }
 0x660   : > { %1617 = vmatpush.bf16.msrb.mxu3 %v2386_v40  ;;  %v2350_v63 = vor.u32 %v2624_v58, %v2347_v60  ;;  %v2681_v40 = vld [vmem:[%s3136_s25 + $0xe8] sm:$0xff]  ;;  %v2670_v58 = vld [vmem:[%s3136_s25 + $0x90] sm:$0xff]  ;;  %v2676_v60 = vld [vmem:[%s3136_s25 + $0xc0] sm:$0xff] }
 0x663   : > { %1589 = vmatpush.bf16.msrb.mxu1 %v2410_v9  ;;  %1605 = vmatpush.bf16.msrb.mxu2 %v2366_v48  ;;  %v2330_v9 = vor.u32 %v2622_v6, %v2329_v4  ;;  %v2654_v48 = vld [vmem:[%s3136_s25 + $0x10] sm:$0xff] }
 0x664   : > { %1618 = vmatpush.bf16.msrb.mxu3 %v2370_v49  ;;  %v2678_v49 = vld [vmem:[%s3136_s25 + $0xd0] sm:$0xff] }
 0x667   : > { %1590 = vmatpush.bf16.msrb.mxu1 %v2394_v22  ;;  %1606 = vmatpush.bf16.msrb.mxu2 %v2350_v63  ;;  %v1417_v63 = vld [vmem:[%s709_s21] sm:$0xf] }
 0x668   : > { %1619 = vmatpush.bf16.msrb.mxu3 %v2354_v1  ;;  %v1419_v1 = vperm.slane %v1417_v63, 0  ;;  %v1422_v4 = vperm.slane %v1417_v63, 3  ;;  %v1421_v12 = vperm.slane %v1417_v63, 2 }
 0x66b   : > { %1591 = vmatpush.bf16.msrb.mxu1 %v2378_v33  ;;  %1607 = vmatpush.bf16.msrb.mxu2 %v2334_v10  ;;  %v1420_v10 = vperm.slane %v1417_v63, 1 }
 0x66c   : > { %1620 = vmatpush.bf16.msrb.mxu3 %v2338_v57 }
 0x66f   : > { %1592 = vmatpush.bf16.msrb.mxu1 %v2362_v44  ;;  %1952 = vmatpush.bf16.msra.mxu2 %v2667_v36  ;;  %v2655_v44 = vld [vmem:[%s3136_s25 + $0x18] sm:$0xff] }
 0x670   : > { %1965 = vmatpush.bf16.msra.mxu3 %v2675_v37 }
 0x673   : > { %1953 = vmatpush.bf16.msra.mxu2 %v2666_v0 }
 0x674   : > { %1966 = vmatpush.bf16.msra.mxu3 %v2674_v35 }
 0x677   : > { %1954 = vmatpush.bf16.msra.mxu2 %v2665_v42 }
 0x678   : > { %1967 = vmatpush.bf16.msra.mxu3 %v2673_v43 }
 0x67b   : > { %1955 = vmatpush.bf16.msra.mxu2 %v2664_v46 }
 0x67c   : > { %1968 = vmatpush.bf16.msra.mxu3 %v2672_v47 }
 0x6d0   : > { %v1356_v50 = vpop.xlane.xlu0 %1355 }
 0x6d1   : > { %v1357_v51 = vmul.f32 %v1356_v50, %v2878_v17  ;;  %v2629_v50 = vld [vmem:[%s3034_s22 + $0x4c] sm:$0xf] }
 0x6d3   : > { %v3046_v52 = vsub.f32 %v3026_v38, %v1357_v51  ;;  %v2371_v51 = vld [vmem:[%s3034_s22 + $0x58] sm:$0xf0] }
 0x6d5   : > { %v1359_v53 = vmul.f32 %v3046_v52, %v3046_v52 }
 0x6d7   : > { %v1360_v54 = vsel %vm731_vm0, %v1359_v53, 0.0  ;;  %v2374_v53 = vor.u32 %v2629_v50, %v2371_v51  ;;  %v2663_v50 = vld [vmem:[%s3136_s25 + $0x58] sm:$0xff] }
 0x6d8   : > { %1361 = vadd.xlane.f32.xlu2 %v1360_v54  ;;  %v2345_v54 = vld [vmem:[%s3034_s22 + $0x20] sm:$0xf]  ;;  %v2671_v51 = vld [vmem:[%s3136_s25 + $0x98] sm:$0xff]  ;;  %1956 = vmatpush.bf16.msra.mxu2 %v2663_v50 }
 0x6d9   : > { %1631 = vmatpush.bf16.msra.mxu0 %v2374_v53  ;;  %v2346_v59 = vor.u32 %v2626_v55, %v2345_v54  ;;  %1969 = vmatpush.bf16.msra.mxu3 %v2671_v51  ;;  %v2653_v53 = vld [vmem:[%s3136_s25 + $0x8] sm:$0xff]  ;;  %v2662_v55 = vld [vmem:[%s3136_s25 + $0x50] sm:$0xff] }
 0x6da   : > { %v2677_v54 = vld [vmem:[%s3136_s25 + $0xc8] sm:$0xff] }
 0x6db   : > { %1593 = vmatpush.bf16.msrb.mxu1 %v2346_v59  ;;  %v2652_v59 = vld [vmem:[%s3136_s25] sm:$0xff] }
 0x6dc   : > { %1957 = vmatpush.bf16.msra.mxu2 %v2662_v55 }
 0x6dd   : > { %1632 = vmatpush.bf16.msra.mxu0 %v2358_v5  ;;  %1970 = vmatpush.bf16.msra.mxu3 %v2670_v58 }
 0x6df   : > { %1594 = vmatpush.bf16.msrb.mxu1 %v2330_v9 }
 0x6e0   : > { %1958 = vmatpush.bf16.msra.mxu2 %v2661_v61  ;;  %v2705_v61 = vld [vmem:[%s721_s15] ss:$0 sm:$0xff] }
 0x6e1   : > { %1633 = vmatpush.bf16.msra.mxu0 %v2342_v15  ;;  %1971 = vmatpush.bf16.msra.mxu3 %v2669_v62 }
 0x6e3   : > { %1939 = vmatpush.bf16.msra.mxu1 %v2659_v18 }
 0x6e4   : > { %1959 = vmatpush.bf16.msra.mxu2 %v2660_v2 }
 0x6e5   : > { %1978 = vmatpush.bf16.msrb.mxu0 %v2683_v19  ;;  %1972 = vmatpush.bf16.msra.mxu3 %v2668_v3 }
 0x6e9   : > { %1979 = vmatpush.bf16.msrb.mxu0 %v2682_v34 }
 0x6ed   : > { %1980 = vmatpush.bf16.msrb.mxu0 %v2681_v40 }
 0x6f1   : > { %1981 = vmatpush.bf16.msrb.mxu0 %v2680_v41 }
 0x6f5   : > { %1982 = vmatpush.bf16.msrb.mxu0 %v2679_v45 }
 0x6f9   : > { %1983 = vmatpush.bf16.msrb.mxu0 %v2678_v49 }
 0x6fd   : > { %1984 = vmatpush.bf16.msrb.mxu0 %v2677_v54 }
 0x701   : > { %1985 = vmatpush.bf16.msrb.mxu0 %v2676_v60 }
 0x74b   : > { %v1362_v16 = vpop.xlane.xlu2 %1361 }
 0x74c   : > { %v1363_v21 = vmul.f32 %v1362_v16, %v2878_v17  ;;  %v2703_v17 = vld [vmem:[%s691_s27] ss:$0 sm:$0xff] }
 0x74e   : > { %v1364_v22 = vadd.f32 1e-06, %v1363_v21 }
 0x750   : > { %2726 = vrsqrt.f32 %v1364_v22  ;;  %vm1371_vm11 = vweird.f32 %v1364_v22 }
 0x756   : > { %v2727_v23 = vpop.eup %2726 }
 0x757   : > { %v1366_v56 = vmul.f32 %v2727_v23, %v1364_v22  ;;  %vm1372_vm10 = vweird.f32 %v2727_v23 }
 0x758   : > { %vm1373_vm12 = vmor %vm1371_vm11, %vm1372_vm10 }
 0x759   : > { %v1367_v24 = vmul.f32 %v2727_v23, %v1366_v56 }
 0x75b   : > { %v1368_v25 = vmul.f32 0.5, %v1367_v24 }
 0x75d   : > { %v1369_v26 = vsub.f32 1.5, %v1368_v25 }
 0x75f   : > { %v1370_v27 = vmul.f32 %v2727_v23, %v1369_v26 }
 0x761   : > { %v1374_v28 = vsel %vm1373_vm12, %v2727_v23, %v1370_v27 }
 0x762   : > { %v1375_v29 = vmul.f32 %v1374_v28, %v3046_v52  ;;  %v2658_v52 = vld [vmem:[%s3136_s25 + $0x30] sm:$0xff] }
 0x763   : > { %1940 = vmatpush.bf16.msra.mxu1 %v2658_v52 }
 0x764   : > { %v1379_v31 = vmul.f32 %v2703_v17, %v1375_v29 }
 0x766   : > { %v1383_v32 = vadd.f32 %v2704_v30, %v1379_v31 }
 0x767   : > { %1941 = vmatpush.bf16.msra.mxu1 %v2657_v39 }
 0x768   : > { %v1384_v33 = vpack.c.bf16 %v1383_v32, %v1383_v32 }
 0x76a   : > { %1595 = vmatmul.bf16.vlgmr.msrb.gmra.mxu1 %v1384_v33  ;;  %1608 = vmatmul.bf16.vlgmr.msrb.gmra.mxu2 %v1384_v33 }
 0x76b   : > { %1621 = vmatmul.bf16.vlgmr.msrb.gmra.mxu3 %v1384_v33  ;;  %1634 = vmatmul.bf16.vlgmr.msra.gmra.mxu0 %v1384_v33 }
 0x76c   : > { %1942 = vmatpush.bf16.msra.mxu1 %v2656_v20 }
 0x770   : > { %1943 = vmatpush.bf16.msra.mxu1 %v2655_v44 }
 0x774   : > { %1944 = vmatpush.bf16.msra.mxu1 %v2654_v48 }
 0x778   : > { %1945 = vmatpush.bf16.msra.mxu1 %v2653_v53 }
 0x77c   : > { %1946 = vmatpush.bf16.msra.mxu1 %v2652_v59 }
 0x7e7   : > { %v1596_v5 = vpop.f32.mrf.mxu1 }
 0x7e8   : > { %v1597_v6 = vadd.f32 %v1596_v5, %v1419_v1  ;;  %v1635_v7 = vpop.f32.mrf.mxu0 }
 0x7e9   : > { %v1636_v8 = vadd.f32 %v1635_v7, %v1422_v4 }
 0x7ea   : > { %v1639_v9 = vmul.f32 %v1597_v6, %v1597_v6 }
 0x7eb   : > { %v1642_v11 = vmul.f32 %v1636_v8, %v1636_v8 }
 0x7ec   : > { %v1643_v13 = vmul.f32 %v1639_v9, %v1597_v6 }
 0x7ed   : > { %v1646_v57 = vmul.f32 %v1642_v11, %v1636_v8  ;;  %v1609_v14 = vpop.f32.mrf.mxu2 }
 0x7ee   : > { %v1647_v15 = vmul.f32 0.044715, %v1643_v13  ;;  %v1610_v16 = vadd.f32 %v1609_v14, %v1420_v10  ;;  %v1622_v18 = vpop.f32.mrf.mxu3 }
 0x7ef   : > { %v1650_v19 = vmul.f32 0.044715, %v1646_v57  ;;  %v1623_v21 = vadd.f32 %v1622_v18, %v1421_v12  ;;  %v1598_v22 = vpop.f32.mrf.mxu1 }
 0x7f0   : > { %v1651_v23 = vadd.f32 %v1647_v15, %v1597_v6  ;;  %v1640_v56 = vmul.f32 %v1610_v16, %v1610_v16  ;;  %v1637_v24 = vpop.f32.mrf.mxu0 }
 0x7f1   : > { %v1654_v25 = vadd.f32 %v1650_v19, %v1636_v8  ;;  %v1641_v26 = vmul.f32 %v1623_v21, %v1623_v21 }
 0x7f2   : > { %v1655_v27 = vmul.f32 0.7978846, %v1651_v23  ;;  %v1644_v17 = vmul.f32 %v1640_v56, %v1610_v16 }
 0x7f3   : > { %v1658_v28 = vmul.f32 0.7978846, %v1654_v25  ;;  %v1645_v29 = vmul.f32 %v1641_v26, %v1623_v21 }
 0x7f4   : > { %2728 = vtanh.f32 %v1655_v27  ;;  %v1648_v30 = vmul.f32 0.044715, %v1644_v17 }
 0x7f5   : > { %2730 = vtanh.f32 %v1658_v28  ;;  %v1649_v31 = vmul.f32 0.044715, %v1645_v29  ;;  %v1611_v32 = vpop.f32.mrf.mxu2 }
 0x7f6   : > { %v1652_v33 = vadd.f32 %v1648_v30, %v1610_v16  ;;  %v1624_v52 = vpop.f32.mrf.mxu3 }
 0x7f7   : > { %v1653_v34 = vadd.f32 %v1649_v31, %v1623_v21 }
 0x7f8   : > { %v1656_v36 = vmul.f32 0.7978846, %v1652_v33 }
 0x7f9   : > { %v1657_v37 = vmul.f32 0.7978846, %v1653_v34 }
 0x7fa   : > { %v2729_v39 = vpop.eup %2728  ;;  %2732 = vtanh.f32 %v1656_v36 }
 0x7fb   : > { %v2731_v40 = vpop.eup %2730  ;;  %2734 = vtanh.f32 %v1657_v37  ;;  %v1663_v0 = vadd.f32 1.0, %v2729_v39 }
 0x7fc   : > { %v1666_v35 = vadd.f32 1.0, %v2731_v40 }
 0x7fd   : > { %v1667_v20 = vmul.f32 0.5, %v1663_v0 }
 0x7fe   : > { %v1670_v41 = vmul.f32 0.5, %v1666_v35 }
 0x7ff   : > { %v1671_v42 = vmul.f32 %v1667_v20, %v1597_v6 }
 0x800   : > { %v2733_v43 = vpop.eup %2732  ;;  %v1674_v44 = vmul.f32 %v1670_v41, %v1636_v8 }
 0x801   : > { %v2735_v45 = vpop.eup %2734  ;;  %v1675_v46 = vpack.c.bf16 %v1671_v42, %v1671_v42  ;;  %v1664_v47 = vadd.f32 1.0, %v2733_v43 }
 0x802   : > { %v1678_v48 = vpack.c.bf16 %v1674_v44, %v1674_v44  ;;  %v1665_v49 = vadd.f32 1.0, %v2735_v45 }
 0x803   : > { %1947 = vmatmul.bf16.vlgmr.msra.gmra.mxu1 %v1675_v46  ;;  %v1668_v50 = vmul.f32 0.5, %v1664_v47 }
 0x804   : > { %1986 = vmatmul.bf16.vlgmr.msrb.gmra.mxu0 %v1678_v48  ;;  %v1669_v51 = vmul.f32 0.5, %v1665_v49 }
 0x805   : > { %v1672_v53 = vmul.f32 %v1668_v50, %v1610_v16 }
 0x806   : > { %v1673_v54 = vmul.f32 %v1669_v51, %v1623_v21 }
 0x807   : > { %v1676_v55 = vpack.c.bf16 %v1672_v53, %v1672_v53 }
 0x808   : > { %v1677_v58 = vpack.c.bf16 %v1673_v54, %v1673_v54 }
 0x809   : > { %1960 = vmatmul.bf16.vlgmr.msra.gmra.mxu2 %v1676_v55 }
 0x80a   : > { %1973 = vmatmul.bf16.vlgmr.msra.gmra.mxu3 %v1677_v58 }
 0x880   : > { %v1948_v59 = vpop.f32.mrf.mxu1 }
 0x881   : > { %v1987_v60 = vpop.f32.mrf.mxu0  ;;  %v1949_v1 = vadd.f32 %v2705_v61, %v1948_v59 }
 0x888   : > { %v1950_v62 = vpop.f32.mrf.mxu1 }
 0x889   : > { %v1989_v63 = vpop.f32.mrf.mxu0 }
 0x88c   : > { %v1961_v2 = vpop.f32.mrf.mxu2 }
 0x88d   : > { %v1962_v3 = vadd.f32 %v1961_v2, %v1949_v1  ;;  %v1974_v4 = vpop.f32.mrf.mxu3 }
 0x88f   : > { %v1975_v5 = vadd.f32 %v1974_v4, %v1962_v3 }
 0x891   : > { %v1988_v6 = vadd.f32 %v1987_v60, %v1975_v5 }
 0x893   : > { %v1991_v7 = vadd.f32 %v1988_v6, %v3026_v38 }
 0x894   : > { %v1963_v8 = vpop.f32.mrf.mxu2 }
 0x895   : > { %1992 = vst [vmem:[%s726_s28] sm:$0x1f] %v1991_v7  ;;  %v1976_v9 = vpop.f32.mrf.mxu3 }
 0x896 PF: > { %s32_s17 = sadd.s32 1, %s2756_s17  }
 0x897   : > { %p29_p2 = scmp.ge.s32.totalorder %s32_s17, 8  }
 0x899   :  { %31 = sbr.rel (!%p29_p2) target bundleno = 7 (0x7), region = 138 }

// kernel: person_pair_forward.9
= control target key start
LH: loop header
LB: loop body
LE: loop exit
PB: predicated region body
PF: predicated region fallthrough
CT: control target
= control target key end

     0   :  { %vm35_vm0 = vcmask 1043456   ;;  %v1917_v2 = vmov 128.0   ;;  %s2806_s0 = inlined_call_operand.vmem [shape: f32[4,128], index: 0, kind: input, shape index: {}]   ;;  %s2807_s1 = inlined_call_operand.vmem [shape: f32[2,1,128], index: 1, kind: input, shape index: {}]   ;;  %s2808_s2 = inlined_call_operand.vmem [shape: f32[2,1,128], index: 2, kind: input, shape index: {}]   ;;  %s2809_s3 = inlined_call_operand.vmem [shape: bf16[2,128,2048], index: 3, kind: input, shape index: {}]   ;;  %s2810_s4 = inlined_call_operand.vmem [shape: f32[2,1,2048], index: 4, kind: input, shape index: {}]   ;;  %s2811_s5 = inlined_call_operand.vmem [shape: f32[4,2048], index: 5, kind: output, shape index: {}]  }
   0x1   :  { %v1951_v0 = vld [vmem:[%s2806_s0] sm:$0xf]  ;;  %1913 = vrcp.f32 %v1917_v2  ;;  %v1894_v7 = vld [vmem:[%s2809_s3 + $0x784] sm:$0xf]  ;;  %v1728_v10 = vld [vmem:[%s2809_s3 + $0x788] sm:$0xf] }
   0x2   :  { %v36_v1 = vsel %vm35_vm0, %v1951_v0, 0.0  ;;  %v1720_v5 = vld [vmem:[%s2809_s3 + $0x780] sm:$0xf]  ;;  %v1722_v9 = vld [vmem:[%s2809_s3 + $0x7c0] sm:$0xf0] }
   0x3   :  { %37 = vadd.xlane.f32.xlu0 %v36_v1  ;;  %v1902_v6 = vld [vmem:[%s2809_s3 + $0x7bc] sm:$0xf0]  ;;  %v1903_v11 = vld [vmem:[%s2809_s3 + $0x7c4] sm:$0xf0]  ;;  %v1725_v12 = vor.u32 %v1894_v7, %v1722_v9  ;;  %v1895_v14 = vld [vmem:[%s2809_s3 + $0x78c] sm:$0xf] }
   0x4   :  { %v1721_v8 = vor.u32 %v1902_v6, %v1720_v5  ;;  %v1729_v13 = vor.u32 %v1903_v11, %v1728_v10  ;;  %v1730_v15 = vld [vmem:[%s2809_s3 + $0x7c8] sm:$0xf0]  ;;  %v1656_v16 = vld [vmem:[%s2809_s3 + $0x700] sm:$0xf]  ;;  %v1878_v19 = vld [vmem:[%s2809_s3 + $0x704] sm:$0xf] }
   0x5   :  { %v1733_v17 = vor.u32 %v1895_v14, %v1730_v15  ;;  %v1886_v18 = vld [vmem:[%s2809_s3 + $0x73c] sm:$0xf0]  ;;  %v1658_v20 = vld [vmem:[%s2809_s3 + $0x740] sm:$0xf0]  ;;  %891 = vmatpush.bf16.msra.mxu1 %v1725_v12  ;;  %v1664_v23 = vld [vmem:[%s2809_s3 + $0x708] sm:$0xf] }
   0x6   :  { %878 = vmatpush.bf16.msra.mxu0 %v1721_v8  ;;  %904 = vmatpush.bf16.msra.mxu2 %v1729_v13  ;;  %v1657_v21 = vor.u32 %v1886_v18, %v1656_v16  ;;  %v1661_v22 = vor.u32 %v1878_v19, %v1658_v20  ;;  %v1887_v24 = vld [vmem:[%s2809_s3 + $0x744] sm:$0xf0]  ;;  %v1879_v25 = vld [vmem:[%s2809_s3 + $0x70c] sm:$0xf]  ;;  %v1592_v28 = vld [vmem:[%s2809_s3 + $0x680] sm:$0xf] }
   0x7   :  { %v1955_v3 = vpop.eup %1913  ;;  %917 = vmatpush.bf16.msra.mxu3 %v1733_v17  ;;  %v1665_v26 = vor.u32 %v1887_v24, %v1664_v23  ;;  %v1666_v27 = vld [vmem:[%s2809_s3 + $0x748] sm:$0xf0]  ;;  %v1870_v29 = vld [vmem:[%s2809_s3 + $0x6bc] sm:$0xf0]  ;;  %v1862_v31 = vld [vmem:[%s2809_s3 + $0x684] sm:$0xf] }
   0x8   :  { %v1958_v4 = vmul.f32 128.0, %v1955_v3  ;;  %v1669_v30 = vor.u32 %v1879_v25, %v1666_v27  ;;  %v1594_v32 = vld [vmem:[%s2809_s3 + $0x6c0] sm:$0xf0]  ;;  %v1600_v33 = vld [vmem:[%s2809_s3 + $0x688] sm:$0xf]  ;;  %v1593_v34 = vor.u32 %v1870_v29, %v1592_v28  ;;  %vm44_vm1 = vweird.f32 %v1955_v3 }
   0x9   :  { %v1871_v35 = vld [vmem:[%s2809_s3 + $0x6c4] sm:$0xf0]  ;;  %v1863_v36 = vld [vmem:[%s2809_s3 + $0x68c] sm:$0xf]  ;;  %892 = vmatpush.bf16.msra.mxu1 %v1661_v22  ;;  %v1597_v38 = vor.u32 %v1862_v31, %v1594_v32  ;;  %v1528_v40 = vld [vmem:[%s2809_s3 + $0x600] sm:$0xf] }
   0xa   :  { %879 = vmatpush.bf16.msra.mxu0 %v1657_v21  ;;  %v1602_v37 = vld [vmem:[%s2809_s3 + $0x6c8] sm:$0xf0]  ;;  %905 = vmatpush.bf16.msra.mxu2 %v1665_v26  ;;  %v1601_v39 = vor.u32 %v1871_v35, %v1600_v33  ;;  %v1854_v41 = vld [vmem:[%s2809_s3 + $0x63c] sm:$0xf0]  ;;  %v1846_v42 = vld [vmem:[%s2809_s3 + $0x604] sm:$0xf] }
   0xb   :  { %918 = vmatpush.bf16.msra.mxu3 %v1669_v30  ;;  %v1605_v43 = vor.u32 %v1863_v36, %v1602_v37  ;;  %v1530_v44 = vld [vmem:[%s2809_s3 + $0x640] sm:$0xf0]  ;;  %v1536_v45 = vld [vmem:[%s2809_s3 + $0x608] sm:$0xf]  ;;  %v41_v47 = vsub.f32 1.0, %v1958_v4  ;;  %v1529_v50 = vor.u32 %v1854_v41, %v1528_v40 }
   0xc   :  { %v1855_v46 = vld [vmem:[%s2809_s3 + $0x644] sm:$0xf0]  ;;  %v1847_v48 = vld [vmem:[%s2809_s3 + $0x60c] sm:$0xf]  ;;  %v1533_v51 = vor.u32 %v1846_v42, %v1530_v44  ;;  %v1464_v53 = vld [vmem:[%s2809_s3 + $0x580] sm:$0xf] }
   0xd   :  { %v1538_v49 = vld [vmem:[%s2809_s3 + $0x648] sm:$0xf0]  ;;  %893 = vmatpush.bf16.msra.mxu1 %v1597_v38  ;;  %v1537_v52 = vor.u32 %v1855_v46, %v1536_v45  ;;  %v1838_v54 = vld [vmem:[%s2809_s3 + $0x5bc] sm:$0xf0]  ;;  %v1830_v55 = vld [vmem:[%s2809_s3 + $0x584] sm:$0xf]  ;;  %v42_v60 = vmul.f32 %v1955_v3, %v41_v47 }
   0xe   :  { %880 = vmatpush.bf16.msra.mxu0 %v1593_v34  ;;  %906 = vmatpush.bf16.msra.mxu2 %v1601_v39  ;;  %v1541_v56 = vor.u32 %v1847_v48, %v1538_v49  ;;  %v1466_v57 = vld [vmem:[%s2809_s3 + $0x5c0] sm:$0xf0]  ;;  %v1472_v58 = vld [vmem:[%s2809_s3 + $0x588] sm:$0xf]  ;;  %v1831_v61 = vld [vmem:[%s2809_s3 + $0x58c] sm:$0xf]  ;;  %v1465_v63 = vor.u32 %v1838_v54, %v1464_v53 }
   0xf   :  { %919 = vmatpush.bf16.msra.mxu3 %v1605_v43  ;;  %v1839_v59 = vld [vmem:[%s2809_s3 + $0x5c4] sm:$0xf0]  ;;  %v1474_v62 = vld [vmem:[%s2809_s3 + $0x5c8] sm:$0xf0]  ;;  %v1469_v1 = vor.u32 %v1830_v55, %v1466_v57  ;;  %v1400_v4 = vld [vmem:[%s2809_s3 + $0x500] sm:$0xf]  ;;  %v43_v11 = vadd.f32 %v1955_v3, %v42_v60 }
  0x10   :  { %v1473_v2 = vor.u32 %v1839_v59, %v1472_v58  ;;  %v1822_v5 = vld [vmem:[%s2809_s3 + $0x53c] sm:$0xf0]  ;;  %v1814_v6 = vld [vmem:[%s2809_s3 + $0x504] sm:$0xf]  ;;  %v1477_v7 = vor.u32 %v1831_v61, %v1474_v62  ;;  %v1408_v9 = vld [vmem:[%s2809_s3 + $0x508] sm:$0xf] }
  0x11   :  { %894 = vmatpush.bf16.msra.mxu1 %v1533_v51  ;;  %v1402_v8 = vld [vmem:[%s2809_s3 + $0x540] sm:$0xf0]  ;;  %v1823_v10 = vld [vmem:[%s2809_s3 + $0x544] sm:$0xf0]  ;;  %v1815_v12 = vld [vmem:[%s2809_s3 + $0x50c] sm:$0xf]  ;;  %v1401_v14 = vor.u32 %v1822_v5, %v1400_v4  ;;  %v2127_v24 = vsel %vm44_vm1, %v1955_v3, %v43_v11 }
  0x12   :  { %881 = vmatpush.bf16.msra.mxu0 %v1529_v50  ;;  %907 = vmatpush.bf16.msra.mxu2 %v1537_v52  ;;  %v1410_v13 = vld [vmem:[%s2809_s3 + $0x548] sm:$0xf0]  ;;  %v1405_v15 = vor.u32 %v1814_v6, %v1402_v8  ;;  %v1409_v16 = vor.u32 %v1823_v10, %v1408_v9  ;;  %v1336_v17 = vld [vmem:[%s2809_s3 + $0x480] sm:$0xf]  ;;  %v1798_v19 = vld [vmem:[%s2809_s3 + $0x484] sm:$0xf] }
  0x13   :  { %920 = vmatpush.bf16.msra.mxu3 %v1541_v56  ;;  %v1806_v18 = vld [vmem:[%s2809_s3 + $0x4bc] sm:$0xf0]  ;;  %v1413_v20 = vor.u32 %v1815_v12, %v1410_v13  ;;  %v1338_v21 = vld [vmem:[%s2809_s3 + $0x4c0] sm:$0xf0]  ;;  %v1344_v22 = vld [vmem:[%s2809_s3 + $0x488] sm:$0xf] }
  0x14   :  { %v1807_v23 = vld [vmem:[%s2809_s3 + $0x4c4] sm:$0xf0]  ;;  %v1799_v25 = vld [vmem:[%s2809_s3 + $0x48c] sm:$0xf]  ;;  %v1337_v27 = vor.u32 %v1806_v18, %v1336_v17  ;;  %v1341_v29 = vor.u32 %v1798_v19, %v1338_v21  ;;  %v1272_v35 = vld [vmem:[%s2809_s3 + $0x400] sm:$0xf] }
  0x15   :  { %895 = vmatpush.bf16.msra.mxu1 %v1469_v1  ;;  %v1346_v26 = vld [vmem:[%s2809_s3 + $0x4c8] sm:$0xf0]  ;;  %v1345_v30 = vor.u32 %v1807_v23, %v1344_v22  ;;  %v1790_v36 = vld [vmem:[%s2809_s3 + $0x43c] sm:$0xf0]  ;;  %v1274_v38 = vld [vmem:[%s2809_s3 + $0x440] sm:$0xf0] }
  0x16   :  { %882 = vmatpush.bf16.msra.mxu0 %v1465_v63  ;;  %908 = vmatpush.bf16.msra.mxu2 %v1473_v2  ;;  %v1349_v3 = vor.u32 %v1799_v25, %v1346_v26  ;;  %v1273_v37 = vor.u32 %v1790_v36, %v1272_v35  ;;  %v1280_v39 = vld [vmem:[%s2809_s3 + $0x408] sm:$0xf]  ;;  %v1783_v43 = vld [vmem:[%s2809_s3 + $0x40c] sm:$0xf]  ;;  %v1736_v45 = vld [vmem:[%s2809_s3 + $0x790] sm:$0xf] }
  0x17   :  { %921 = vmatpush.bf16.msra.mxu3 %v1477_v7  ;;  %v1791_v40 = vld [vmem:[%s2809_s3 + $0x444] sm:$0xf0]  ;;  %v1282_v44 = vld [vmem:[%s2809_s3 + $0x448] sm:$0xf0]  ;;  %v1904_v47 = vld [vmem:[%s2809_s3 + $0x7cc] sm:$0xf0] }
  0x18   :  { %v1281_v42 = vor.u32 %v1791_v40, %v1280_v39  ;;  %v1285_v46 = vor.u32 %v1783_v43, %v1282_v44  ;;  %v1896_v48 = vld [vmem:[%s2809_s3 + $0x794] sm:$0xf]  ;;  %v1737_v50 = vor.u32 %v1904_v47, %v1736_v45  ;;  %v1744_v52 = vld [vmem:[%s2809_s3 + $0x798] sm:$0xf]  ;;  %v1897_v54 = vld [vmem:[%s2809_s3 + $0x79c] sm:$0xf] }
  0x19   :  { %896 = vmatpush.bf16.msra.mxu1 %v1405_v15  ;;  %v1738_v49 = vld [vmem:[%s2809_s3 + $0x7d0] sm:$0xf0]  ;;  %v1905_v53 = vld [vmem:[%s2809_s3 + $0x7d4] sm:$0xf0]  ;;  %v1746_v56 = vld [vmem:[%s2809_s3 + $0x7d8] sm:$0xf0] }
  0x1a   :  { %883 = vmatpush.bf16.msra.mxu0 %v1401_v14  ;;  %909 = vmatpush.bf16.msra.mxu2 %v1409_v16  ;;  %v1741_v51 = vor.u32 %v1896_v48, %v1738_v49  ;;  %v1745_v55 = vor.u32 %v1905_v53, %v1744_v52  ;;  %v1672_v57 = vld [vmem:[%s2809_s3 + $0x710] sm:$0xf]  ;;  %v1749_v59 = vor.u32 %v1897_v54, %v1746_v56  ;;  %v1880_v61 = vld [vmem:[%s2809_s3 + $0x714] sm:$0xf]  ;;  %v1680_v63 = vld [vmem:[%s2809_s3 + $0x718] sm:$0xf] }
  0x1b   :  { %922 = vmatpush.bf16.msra.mxu3 %v1413_v20  ;;  %v1888_v58 = vld [vmem:[%s2809_s3 + $0x74c] sm:$0xf0]  ;;  %v1674_v62 = vld [vmem:[%s2809_s3 + $0x750] sm:$0xf0]  ;;  %v1889_v2 = vld [vmem:[%s2809_s3 + $0x754] sm:$0xf0] }
  0x1c   :  { %v1673_v60 = vor.u32 %v1888_v58, %v1672_v57  ;;  %v1677_v1 = vor.u32 %v1880_v61, %v1674_v62  ;;  %v1881_v4 = vld [vmem:[%s2809_s3 + $0x71c] sm:$0xf]  ;;  %v1681_v6 = vor.u32 %v1889_v2, %v1680_v63  ;;  %v1608_v8 = vld [vmem:[%s2809_s3 + $0x690] sm:$0xf]  ;;  %v1864_v10 = vld [vmem:[%s2809_s3 + $0x694] sm:$0xf] }
  0x1d   :  { %897 = vmatpush.bf16.msra.mxu1 %v1341_v29  ;;  %v1682_v5 = vld [vmem:[%s2809_s3 + $0x758] sm:$0xf0]  ;;  %v1872_v9 = vld [vmem:[%s2809_s3 + $0x6cc] sm:$0xf0]  ;;  %v1610_v12 = vld [vmem:[%s2809_s3 + $0x6d0] sm:$0xf0] }
  0x1e   :  { %884 = vmatpush.bf16.msra.mxu0 %v1337_v27  ;;  %910 = vmatpush.bf16.msra.mxu2 %v1345_v30  ;;  %v1685_v7 = vor.u32 %v1881_v4, %v1682_v5  ;;  %v1609_v11 = vor.u32 %v1872_v9, %v1608_v8  ;;  %v1616_v13 = vld [vmem:[%s2809_s3 + $0x698] sm:$0xf]  ;;  %v1613_v15 = vor.u32 %v1864_v10, %v1610_v12  ;;  %v1865_v17 = vld [vmem:[%s2809_s3 + $0x69c] sm:$0xf]  ;;  %v1544_v20 = vld [vmem:[%s2809_s3 + $0x610] sm:$0xf] }
  0x1f   :  { %923 = vmatpush.bf16.msra.mxu3 %v1349_v3  ;;  %v1873_v14 = vld [vmem:[%s2809_s3 + $0x6d4] sm:$0xf0]  ;;  %v1618_v18 = vld [vmem:[%s2809_s3 + $0x6d8] sm:$0xf0]  ;;  %v1856_v21 = vld [vmem:[%s2809_s3 + $0x64c] sm:$0xf0] }
  0x20   :  { %v1617_v16 = vor.u32 %v1873_v14, %v1616_v13  ;;  %v1621_v19 = vor.u32 %v1865_v17, %v1618_v18  ;;  %v1848_v22 = vld [vmem:[%s2809_s3 + $0x614] sm:$0xf]  ;;  %v1545_v23 = vor.u32 %v1856_v21, %v1544_v20  ;;  %v1552_v26 = vld [vmem:[%s2809_s3 + $0x618] sm:$0xf]  ;;  %v1849_v30 = vld [vmem:[%s2809_s3 + $0x61c] sm:$0xf] }
  0x21   :  { %v1546_v25 = vld [vmem:[%s2809_s3 + $0x650] sm:$0xf0]  ;;  %v1857_v27 = vld [vmem:[%s2809_s3 + $0x654] sm:$0xf0]  ;;  %v1416_v44 = vld [vmem:[%s2809_s3 + $0x510] sm:$0xf] }
  0x22   :  { %885 = vmatpush.bf16.msra.mxu0 %v1273_v37  ;;  %911 = vmatpush.bf16.msra.mxu2 %v1281_v42  ;;  %v1553_v29 = vor.u32 %v1857_v27, %v1552_v26  ;;  %v1832_v35 = vld [vmem:[%s2809_s3 + $0x594] sm:$0xf]  ;;  %v1488_v37 = vld [vmem:[%s2809_s3 + $0x598] sm:$0xf]  ;;  %v1490_v42 = vld [vmem:[%s2809_s3 + $0x5d8] sm:$0xf0] }
  0x23   :  { %924 = vmatpush.bf16.msra.mxu3 %v1285_v46  ;;  %v1824_v45 = vld [vmem:[%s2809_s3 + $0x54c] sm:$0xf0]  ;;  %v1816_v46 = vld [vmem:[%s2809_s3 + $0x514] sm:$0xf]  ;;  %v1424_v49 = vld [vmem:[%s2809_s3 + $0x518] sm:$0xf] }
  0x24   :  { %v1417_v47 = vor.u32 %v1824_v45, %v1416_v44  ;;  %v1418_v48 = vld [vmem:[%s2809_s3 + $0x550] sm:$0xf0]  ;;  %v1817_v53 = vld [vmem:[%s2809_s3 + $0x51c] sm:$0xf]  ;;  %v1352_v56 = vld [vmem:[%s2809_s3 + $0x490] sm:$0xf] }
  0x25   :  { %v1426_v54 = vld [vmem:[%s2809_s3 + $0x558] sm:$0xf0]  ;;  %v1808_v57 = vld [vmem:[%s2809_s3 + $0x4cc] sm:$0xf0]  ;;  %v1800_v58 = vld [vmem:[%s2809_s3 + $0x494] sm:$0xf] }
  0x26   :  { %930 = vmatpush.bf16.msrb.mxu0 %v1737_v50  ;;  %956 = vmatpush.bf16.msrb.mxu2 %v1745_v55  ;;  %v1825_v50 = vld [vmem:[%s2809_s3 + $0x554] sm:$0xf0]  ;;  %v1429_v55 = vor.u32 %v1817_v53, %v1426_v54  ;;  %v1801_v2 = vld [vmem:[%s2809_s3 + $0x49c] sm:$0xf]  ;;  %v1784_v8 = vld [vmem:[%s2809_s3 + $0x414] sm:$0xf] }
  0x27   :  { %969 = vmatpush.bf16.msrb.mxu3 %v1749_v59  ;;  %v1425_v52 = vor.u32 %v1825_v50, %v1424_v49  ;;  %v1353_v59 = vor.u32 %v1808_v57, %v1352_v56  ;;  %v1360_v61 = vld [vmem:[%s2809_s3 + $0x498] sm:$0xf]  ;;  %v1362_v4 = vld [vmem:[%s2809_s3 + $0x4d8] sm:$0xf0]  ;;  %v1290_v10 = vld [vmem:[%s2809_s3 + $0x450] sm:$0xf0] }
  0x28   :  { %v1809_v62 = vld [vmem:[%s2809_s3 + $0x4d4] sm:$0xf0]  ;;  %v1365_v5 = vor.u32 %v1801_v2, %v1362_v4  ;;  %v1293_v13 = vor.u32 %v1784_v8, %v1290_v10  ;;  %v1891_v49 = vld [vmem:[%s2809_s3 + $0x764] sm:$0xf0]  ;;  %v1883_v50 = vld [vmem:[%s2809_s3 + $0x72c] sm:$0xf] }
  0x29   :  { %v1793_v12 = vld [vmem:[%s2809_s3 + $0x454] sm:$0xf0]  ;;  %v1624_v54 = vld [vmem:[%s2809_s3 + $0x6a0] sm:$0xf]  ;;  %v1850_v8 = vld [vmem:[%s2809_s3 + $0x624] sm:$0xf] }
  0x2a   :  { %931 = vmatpush.bf16.msrb.mxu0 %v1673_v60  ;;  %957 = vmatpush.bf16.msrb.mxu2 %v1681_v6  ;;  %v1354_v60 = vld [vmem:[%s2809_s3 + $0x4d0] sm:$0xf0]  ;;  %v1288_v6 = vld [vmem:[%s2809_s3 + $0x410] sm:$0xf]  ;;  %v1560_v4 = vld [vmem:[%s2809_s3 + $0x620] sm:$0xf] }
  0x2b   :  { %970 = vmatpush.bf16.msrb.mxu3 %v1685_v7  ;;  %v1357_v63 = vor.u32 %v1800_v58, %v1354_v60  ;;  %v1792_v7 = vld [vmem:[%s2809_s3 + $0x44c] sm:$0xf0]  ;;  %v1866_v58 = vld [vmem:[%s2809_s3 + $0x6a4] sm:$0xf]  ;;  %v1632_v60 = vld [vmem:[%s2809_s3 + $0x6a8] sm:$0xf] }
  0x2c   :  { %v1289_v9 = vor.u32 %v1792_v7, %v1288_v6  ;;  %v1568_v10 = vld [vmem:[%s2809_s3 + $0x628] sm:$0xf] }
  0x2e   :  { %932 = vmatpush.bf16.msrb.mxu0 %v1609_v11  ;;  %958 = vmatpush.bf16.msrb.mxu2 %v1617_v16  ;;  %v1296_v11 = vld [vmem:[%s2809_s3 + $0x418] sm:$0xf]  ;;  %v1298_v16 = vld [vmem:[%s2809_s3 + $0x458] sm:$0xf0] }
  0x2f   :  { %971 = vmatpush.bf16.msrb.mxu3 %v1621_v19  ;;  %v1297_v14 = vor.u32 %v1793_v12, %v1296_v11  ;;  %v1859_v11 = vld [vmem:[%s2809_s3 + $0x664] sm:$0xf0]  ;;  %v1851_v12 = vld [vmem:[%s2809_s3 + $0x62c] sm:$0xf] }
  0x32   :  { %933 = vmatpush.bf16.msrb.mxu0 %v1545_v23  ;;  %959 = vmatpush.bf16.msrb.mxu2 %v1553_v29 }
  0x76   :  { %v38_v28 = vpop.xlane.xlu0 %37 }
  0x77   :  { %v46_v31 = vmul.f32 %v2127_v24, %v38_v28  ;;  %v1549_v28 = vor.u32 %v1848_v22, %v1546_v25 }
  0x79   :  { %v2137_v32 = vsub.f32 %v1951_v0, %v46_v31  ;;  %v1782_v0 = vld [vmem:[%s2809_s3 + $0x404] sm:$0xf]  ;;  %v1554_v31 = vld [vmem:[%s2809_s3 + $0x658] sm:$0xf0] }
  0x7a   :  { %v1277_v41 = vor.u32 %v1782_v0, %v1274_v38  ;;  %v1557_v3 = vor.u32 %v1849_v30, %v1554_v31  ;;  %v1482_v0 = vld [vmem:[%s2809_s3 + $0x5d0] sm:$0xf0]  ;;  %v1841_v38 = vld [vmem:[%s2809_s3 + $0x5d4] sm:$0xf0] }
  0x7b   :  { %v48_v33 = vmul.f32 %v2137_v32, %v2137_v32  ;;  %v1485_v39 = vor.u32 %v1832_v35, %v1482_v0  ;;  %v1489_v40 = vor.u32 %v1841_v38, %v1488_v37  ;;  %v1754_v35 = vld [vmem:[%s2809_s3 + $0x7e0] sm:$0xf0]  ;;  %v1907_v0 = vld [vmem:[%s2809_s3 + $0x7e4] sm:$0xf0]  ;;  %v1899_v37 = vld [vmem:[%s2809_s3 + $0x7ac] sm:$0xf] }
  0x7c   :  { %898 = vmatpush.bf16.msra.mxu1 %v1277_v41  ;;  %v1833_v41 = vld [vmem:[%s2809_s3 + $0x59c] sm:$0xf]  ;;  %972 = vmatpush.bf16.msrb.mxu3 %v1557_v3  ;;  %v1752_v3 = vld [vmem:[%s2809_s3 + $0x7a0] sm:$0xf]  ;;  %v1762_v38 = vld [vmem:[%s2809_s3 + $0x7e8] sm:$0xf0] }
  0x7d   :  { %v49_v34 = vsel %vm35_vm0, %v48_v33, 0.0  ;;  %v1480_v33 = vld [vmem:[%s2809_s3 + $0x590] sm:$0xf]  ;;  %v1493_v43 = vor.u32 %v1833_v41, %v1490_v42  ;;  %960 = vmatpush.bf16.msrb.mxu2 %v1489_v40  ;;  %v1688_v42 = vld [vmem:[%s2809_s3 + $0x720] sm:$0xf]  ;;  %v1765_v45 = vor.u32 %v1899_v37, %v1762_v38 }
  0x7e   :  { %50 = vadd.xlane.f32.xlu0 %v49_v34  ;;  %v1840_v34 = vld [vmem:[%s2809_s3 + $0x5cc] sm:$0xf0]  ;;  %v1368_v38 = vld [vmem:[%s2809_s3 + $0x4a0] sm:$0xf] }
  0x7f   :  { %v1481_v36 = vor.u32 %v1840_v34, %v1480_v33  ;;  %v1906_v33 = vld [vmem:[%s2809_s3 + $0x7dc] sm:$0xf0]  ;;  %v1898_v34 = vld [vmem:[%s2809_s3 + $0x7a4] sm:$0xf] }
  0x80   :  { %943 = vmatpush.bf16.msrb.mxu1 %v1741_v51  ;;  %v1421_v51 = vor.u32 %v1816_v46, %v1418_v48  ;;  %973 = vmatpush.bf16.msrb.mxu3 %v1493_v43  ;;  %v1753_v40 = vor.u32 %v1906_v33, %v1752_v3  ;;  %v1757_v41 = vor.u32 %v1898_v34, %v1754_v35  ;;  %v1890_v43 = vld [vmem:[%s2809_s3 + $0x75c] sm:$0xf0]  ;;  %v1882_v46 = vld [vmem:[%s2809_s3 + $0x724] sm:$0xf]  ;;  %v1696_v48 = vld [vmem:[%s2809_s3 + $0x728] sm:$0xf] }
  0x81   :  { %934 = vmatpush.bf16.msrb.mxu0 %v1481_v36  ;;  %961 = vmatpush.bf16.msrb.mxu2 %v1425_v52  ;;  %v1689_v52 = vor.u32 %v1890_v43, %v1688_v42  ;;  %v1697_v56 = vor.u32 %v1891_v49, %v1696_v48  ;;  %v1818_v3 = vld [vmem:[%s2809_s3 + $0x524] sm:$0xf]  ;;  %v1440_v34 = vld [vmem:[%s2809_s3 + $0x528] sm:$0xf]  ;;  %v1378_v48 = vld [vmem:[%s2809_s3 + $0x4e8] sm:$0xf0] }
  0x82   :  { %v1434_v33 = vld [vmem:[%s2809_s3 + $0x560] sm:$0xf0]  ;;  %v1827_v35 = vld [vmem:[%s2809_s3 + $0x564] sm:$0xf0]  ;;  %v1304_v49 = vld [vmem:[%s2809_s3 + $0x420] sm:$0xf] }
  0x83   :  { %v1437_v37 = vor.u32 %v1818_v3, %v1434_v33  ;;  %v1802_v43 = vld [vmem:[%s2809_s3 + $0x4a4] sm:$0xf]  ;;  %v1877_v3 = vld [vmem:[%s2809_s3 + $0x6f4] sm:$0xf0]  ;;  %v1869_v33 = vld [vmem:[%s2809_s3 + $0x6bc] sm:$0xf] }
  0x84   :  { %944 = vmatpush.bf16.msrb.mxu1 %v1677_v1  ;;  %v1361_v1 = vor.u32 %v1809_v62, %v1360_v61  ;;  %974 = vmatpush.bf16.msrb.mxu3 %v1429_v55  ;;  %v1874_v55 = vld [vmem:[%s2809_s3 + $0x6dc] sm:$0xf0]  ;;  %v1875_v61 = vld [vmem:[%s2809_s3 + $0x6e4] sm:$0xf0]  ;;  %v1867_v62 = vld [vmem:[%s2809_s3 + $0x6ac] sm:$0xf] }
  0x85   :  { %935 = vmatpush.bf16.msrb.mxu0 %v1417_v47  ;;  %v1690_v47 = vld [vmem:[%s2809_s3 + $0x760] sm:$0xf0]  ;;  %v1633_v6 = vor.u32 %v1875_v61, %v1632_v60  ;;  %v1314_v60 = vld [vmem:[%s2809_s3 + $0x468] sm:$0xf0]  ;;  %v1768_v61 = vld [vmem:[%s2809_s3 + $0x7b0] sm:$0xf] }
  0x86   :  { %962 = vmatpush.bf16.msrb.mxu2 %v1361_v1  ;;  %v1693_v53 = vor.u32 %v1882_v46, %v1690_v47  ;;  %v1625_v1 = vor.u32 %v1874_v55, %v1624_v54  ;;  %v1811_v46 = vld [vmem:[%s2809_s3 + $0x4e4] sm:$0xf0]  ;;  %v1803_v47 = vld [vmem:[%s2809_s3 + $0x4ac] sm:$0xf]  ;;  %v1306_v54 = vld [vmem:[%s2809_s3 + $0x460] sm:$0xf0] }
  0x88   :  { %945 = vmatpush.bf16.msrb.mxu1 %v1613_v15  ;;  %v1785_v15 = vld [vmem:[%s2809_s3 + $0x41c] sm:$0xf]  ;;  %975 = vmatpush.bf16.msrb.mxu3 %v1365_v5  ;;  %v1858_v5 = vld [vmem:[%s2809_s3 + $0x65c] sm:$0xf0] }
  0x89   :  { %936 = vmatpush.bf16.msrb.mxu0 %v1353_v59  ;;  %v1301_v17 = vor.u32 %v1785_v15, %v1298_v16  ;;  %v1626_v59 = vld [vmem:[%s2809_s3 + $0x6e0] sm:$0xf0]  ;;  %v1496_v16 = vld [vmem:[%s2809_s3 + $0x5a0] sm:$0xf] }
  0x8a   :  { %963 = vmatpush.bf16.msrb.mxu2 %v1297_v14  ;;  %v1629_v2 = vor.u32 %v1866_v58, %v1626_v59  ;;  %v1561_v14 = vor.u32 %v1858_v5, %v1560_v4  ;;  %v1795_v58 = vld [vmem:[%s2809_s3 + $0x464] sm:$0xf0]  ;;  %v1787_v59 = vld [vmem:[%s2809_s3 + $0x42c] sm:$0xf] }
  0x8c   :  { %946 = vmatpush.bf16.msrb.mxu1 %v1549_v28  ;;  %976 = vmatpush.bf16.msrb.mxu3 %v1301_v17  ;;  %v1911_v28 = vld [vmem:[%s2807_s1 + $0x1] ss:$0 sm:$0xff] }
  0x8d   :  { %937 = vmatpush.bf16.msrb.mxu0 %v1289_v9  ;;  %v1562_v9 = vld [vmem:[%s2809_s3 + $0x660] sm:$0xf0]  ;;  %v1842_v17 = vld [vmem:[%s2809_s3 + $0x5dc] sm:$0xf0] }
  0x8e   :  { %v1565_v15 = vor.u32 %v1850_v8, %v1562_v9  ;;  %v1778_v8 = vld [vmem:[%s2809_s3 + $0x7f8] sm:$0xf0] }
  0x90   :  { %947 = vmatpush.bf16.msrb.mxu1 %v1485_v39 }
  0x94   :  { %948 = vmatpush.bf16.msrb.mxu1 %v1421_v51  ;;  %v1698_v51 = vld [vmem:[%s2809_s3 + $0x768] sm:$0xf0] }
  0x95   :  { %v1701_v57 = vor.u32 %v1883_v50, %v1698_v51 }
  0x98   :  { %949 = vmatpush.bf16.msrb.mxu1 %v1357_v63  ;;  %v1634_v63 = vld [vmem:[%s2809_s3 + $0x6e8] sm:$0xf0] }
  0x99   :  { %v1637_v7 = vor.u32 %v1867_v62, %v1634_v63  ;;  %v1908_v62 = vld [vmem:[%s2809_s3 + $0x7ec] sm:$0xf0]  ;;  %v1900_v63 = vld [vmem:[%s2809_s3 + $0x7b4] sm:$0xf] }
  0x9c   :  { %950 = vmatpush.bf16.msrb.mxu1 %v1293_v13  ;;  %v1570_v13 = vld [vmem:[%s2809_s3 + $0x668] sm:$0xf0] }
  0xf1   :  { %v51_v18 = vpop.xlane.xlu0 %50 }
  0xf2   :  { %v52_v19 = vmul.f32 %v51_v18, %v2127_v24  ;;  %v1912_v24 = vld [vmem:[%s2808_s2 + $0x1] ss:$0 sm:$0xff]  ;;  %v1569_v18 = vor.u32 %v1859_v11, %v1568_v10  ;;  %v1317_v10 = vor.u32 %v1787_v59, %v1314_v60  ;;  %v1769_v11 = vor.u32 %v1908_v62, %v1768_v61  ;;  %v1448_v60 = vld [vmem:[%s2809_s3 + $0x530] sm:$0xf] }
  0xf3   :  { %v1828_v61 = vld [vmem:[%s2809_s3 + $0x56c] sm:$0xf0] }
  0xf4   :  { %v53_v20 = vadd.f32 1e-06, %v52_v19  ;;  %v1573_v19 = vor.u32 %v1851_v12, %v1570_v13  ;;  %v1704_v13 = vld [vmem:[%s2809_s3 + $0x730] sm:$0xf] }
  0xf6   :  { %1915 = vrsqrt.f32 %v53_v20  ;;  %vm60_vm3 = vweird.f32 %v53_v20 }
  0xfc   :  { %v1916_v21 = vpop.eup %1915 }
  0xfd   :  { %v55_v22 = vmul.f32 %v1916_v21, %v53_v20  ;;  %vm61_vm2 = vweird.f32 %v1916_v21  ;;  %v1834_v20 = vld [vmem:[%s2809_s3 + $0x5a4] sm:$0xf] }
  0xfe   :  { %vm62_vm4 = vmor %vm60_vm3, %vm61_vm2 }
  0xff   :  { %v56_v23 = vmul.f32 %v1916_v21, %v55_v22  ;;  %v1504_v22 = vld [vmem:[%s2809_s3 + $0x5a8] sm:$0xf] }
 0x101   :  { %v57_v25 = vmul.f32 0.5, %v56_v23  ;;  %v1843_v23 = vld [vmem:[%s2809_s3 + $0x5e4] sm:$0xf0] }
 0x103   :  { %v58_v26 = vsub.f32 1.5, %v57_v25  ;;  %v1835_v25 = vld [vmem:[%s2809_s3 + $0x5ac] sm:$0xf] }
 0x105   :  { %v59_v27 = vmul.f32 %v1916_v21, %v58_v26  ;;  %v1506_v26 = vld [vmem:[%s2809_s3 + $0x5e8] sm:$0xf0] }
 0x107   :  { %v63_v29 = vsel %vm62_vm4, %v1916_v21, %v59_v27  ;;  %v1498_v21 = vld [vmem:[%s2809_s3 + $0x5e0] sm:$0xf0]  ;;  %v1497_v27 = vor.u32 %v1842_v17, %v1496_v16  ;;  %v1884_v17 = vld [vmem:[%s2809_s3 + $0x734] sm:$0xf] }
 0x108   :  { %v64_v30 = vmul.f32 %v63_v29, %v2137_v32  ;;  %v1760_v32 = vld [vmem:[%s2809_s3 + $0x7a8] sm:$0xf]  ;;  %v1432_v29 = vld [vmem:[%s2809_s3 + $0x520] sm:$0xf] }
 0x109   :  { %v1761_v44 = vor.u32 %v1907_v0, %v1760_v32  ;;  %v1819_v32 = vld [vmem:[%s2809_s3 + $0x52c] sm:$0xf] }
 0x10a   :  { %v68_v31 = vmul.f32 %v1911_v28, %v64_v30  ;;  %v1501_v28 = vor.u32 %v1834_v20, %v1498_v21  ;;  %v1505_v30 = vor.u32 %v1843_v23, %v1504_v22  ;;  %v1893_v20 = vld [vmem:[%s2809_s3 + $0x774] sm:$0xf0]  ;;  %v1885_v21 = vld [vmem:[%s2809_s3 + $0x73c] sm:$0xf] }
 0x10b   :  { %v1714_v22 = vld [vmem:[%s2809_s3 + $0x778] sm:$0xf0] }
 0x10c   :  { %v72_v36 = vadd.f32 %v1912_v24, %v68_v31  ;;  %v1826_v24 = vld [vmem:[%s2809_s3 + $0x55c] sm:$0xf0]  ;;  %v1509_v31 = vor.u32 %v1835_v25, %v1506_v26  ;;  %v1640_v26 = vld [vmem:[%s2809_s3 + $0x6b0] sm:$0xf] }
 0x10d   :  { %v1433_v0 = vor.u32 %v1826_v24, %v1432_v29  ;;  %v1717_v29 = vor.u32 %v1885_v21, %v1714_v22  ;;  %v1868_v24 = vld [vmem:[%s2809_s3 + $0x6b4] sm:$0xf]  ;;  %v1320_v22 = vld [vmem:[%s2809_s3 + $0x430] sm:$0xf] }
 0x10e   :  { %v2390_v39 = vpack.c.bf16 %v72_v36, %v72_v36  ;;  %v1442_v36 = vld [vmem:[%s2809_s3 + $0x568] sm:$0xf0] }
 0x10f   :  { %v1445_v42 = vor.u32 %v1819_v32, %v1442_v36  ;;  %v1576_v36 = vld [vmem:[%s2809_s3 + $0x630] sm:$0xf] }
 0x110   :  { %886 = vmatmul.bf16.vlgmr.msra.gmra.mxu0 %v2390_v39  ;;  %899 = vmatmul.bf16.vlgmr.msra.gmra.mxu1 %v2390_v39 }
 0x111   :  { %912 = vmatmul.bf16.vlgmr.msra.gmra.mxu2 %v2390_v39  ;;  %925 = vmatmul.bf16.vlgmr.msra.gmra.mxu3 %v2390_v39 }
 0x112   :  { %982 = vmatpush.bf16.msra.mxu0 %v1753_v40  ;;  %995 = vmatpush.bf16.msra.mxu1 %v1757_v41  ;;  %v1810_v40 = vld [vmem:[%s2809_s3 + $0x4dc] sm:$0xf0]  ;;  %v1441_v41 = vor.u32 %v1827_v35, %v1440_v34  ;;  %v1650_v34 = vld [vmem:[%s2809_s3 + $0x6f8] sm:$0xf0] }
 0x113   :  { %1008 = vmatpush.bf16.msra.mxu2 %v1761_v44  ;;  %1021 = vmatpush.bf16.msra.mxu3 %v1765_v45  ;;  %v1370_v44 = vld [vmem:[%s2809_s3 + $0x4e0] sm:$0xf0]  ;;  %v1376_v45 = vld [vmem:[%s2809_s3 + $0x4a8] sm:$0xf]  ;;  %v1369_v50 = vor.u32 %v1810_v40, %v1368_v38  ;;  %v1653_v38 = vor.u32 %v1869_v33, %v1650_v34  ;;  %v1852_v40 = vld [vmem:[%s2809_s3 + $0x634] sm:$0xf] }
 0x114   :  { %v1373_v51 = vor.u32 %v1802_v43, %v1370_v44  ;;  %v1377_v55 = vor.u32 %v1811_v46, %v1376_v45  ;;  %v1861_v43 = vld [vmem:[%s2809_s3 + $0x674] sm:$0xf0]  ;;  %v1853_v44 = vld [vmem:[%s2809_s3 + $0x63c] sm:$0xf] }
 0x115   :  { %v1586_v45 = vld [vmem:[%s2809_s3 + $0x678] sm:$0xf0] }
 0x116   :  { %983 = vmatpush.bf16.msra.mxu0 %v1689_v52  ;;  %996 = vmatpush.bf16.msra.mxu1 %v1693_v53  ;;  %v1794_v52 = vld [vmem:[%s2809_s3 + $0x45c] sm:$0xf0]  ;;  %v1786_v53 = vld [vmem:[%s2809_s3 + $0x424] sm:$0xf] }
 0x117   :  { %1009 = vmatpush.bf16.msra.mxu2 %v1697_v56  ;;  %1022 = vmatpush.bf16.msra.mxu3 %v1701_v57  ;;  %v1381_v56 = vor.u32 %v1803_v47, %v1378_v48  ;;  %v1312_v57 = vld [vmem:[%s2809_s3 + $0x428] sm:$0xf]  ;;  %v1305_v4 = vor.u32 %v1794_v52, %v1304_v49  ;;  %v1309_v5 = vor.u32 %v1786_v53, %v1306_v54  ;;  %v1512_v48 = vld [vmem:[%s2809_s3 + $0x5b0] sm:$0xf]  ;;  %v1836_v52 = vld [vmem:[%s2809_s3 + $0x5b4] sm:$0xf] }
 0x118   :  { %v1313_v9 = vor.u32 %v1795_v58, %v1312_v57  ;;  %v1844_v49 = vld [vmem:[%s2809_s3 + $0x5ec] sm:$0xf0]  ;;  %v1514_v53 = vld [vmem:[%s2809_s3 + $0x5f0] sm:$0xf0]  ;;  %v1520_v54 = vld [vmem:[%s2809_s3 + $0x5b8] sm:$0xf] }
 0x119   :  { %v1522_v57 = vld [vmem:[%s2809_s3 + $0x5f8] sm:$0xf0]  ;;  %v1513_v58 = vor.u32 %v1844_v49, %v1512_v48  ;;  %v1517_v59 = vor.u32 %v1836_v52, %v1514_v53 }
 0x11a   :  { %984 = vmatpush.bf16.msra.mxu0 %v1625_v1  ;;  %997 = vmatpush.bf16.msra.mxu1 %v1629_v2  ;;  %v1770_v1 = vld [vmem:[%s2809_s3 + $0x7f0] sm:$0xf0]  ;;  %v1776_v2 = vld [vmem:[%s2809_s3 + $0x7b8] sm:$0xf] }
 0x11b   :  { %1010 = vmatpush.bf16.msra.mxu2 %v1633_v6  ;;  %1023 = vmatpush.bf16.msra.mxu3 %v1637_v7  ;;  %v1909_v6 = vld [vmem:[%s2809_s3 + $0x7f4] sm:$0xf0]  ;;  %v1901_v7 = vld [vmem:[%s2809_s3 + $0x7bc] sm:$0xf]  ;;  %v1773_v12 = vor.u32 %v1900_v63, %v1770_v1  ;;  %v1820_v1 = vld [vmem:[%s2809_s3 + $0x534] sm:$0xf] }
 0x11c   :  { %v1781_v16 = vor.u32 %v1901_v7, %v1778_v8  ;;  %v1458_v7 = vld [vmem:[%s2809_s3 + $0x578] sm:$0xf0]  ;;  %v1449_v8 = vor.u32 %v1828_v61, %v1448_v60 }
 0x11e   :  { %985 = vmatpush.bf16.msra.mxu0 %v1561_v14  ;;  %998 = vmatpush.bf16.msra.mxu1 %v1565_v15  ;;  %v1892_v14 = vld [vmem:[%s2809_s3 + $0x76c] sm:$0xf0]  ;;  %v1777_v15 = vor.u32 %v1909_v6, %v1776_v2  ;;  %v1450_v2 = vld [vmem:[%s2809_s3 + $0x570] sm:$0xf0]  ;;  %v1821_v6 = vld [vmem:[%s2809_s3 + $0x53c] sm:$0xf] }
 0x11f   :  { %1011 = vmatpush.bf16.msra.mxu2 %v1569_v18  ;;  %1024 = vmatpush.bf16.msra.mxu3 %v1573_v19  ;;  %v1706_v18 = vld [vmem:[%s2809_s3 + $0x770] sm:$0xf0]  ;;  %v1712_v19 = vld [vmem:[%s2809_s3 + $0x738] sm:$0xf]  ;;  %v1705_v23 = vor.u32 %v1892_v14, %v1704_v13  ;;  %v1461_v13 = vor.u32 %v1821_v6, %v1458_v7 }
 0x120   :  { %938 = vmatmul.bf16.vlgmr.msrb.gmra.mxu0 %v2390_v39  ;;  %951 = vmatmul.bf16.vlgmr.msrb.gmra.mxu1 %v2390_v39  ;;  %v1709_v25 = vor.u32 %v1884_v17, %v1706_v18  ;;  %v1804_v14 = vld [vmem:[%s2809_s3 + $0x4b4] sm:$0xf]  ;;  %v1813_v17 = vld [vmem:[%s2809_s3 + $0x4f4] sm:$0xf0]  ;;  %v1805_v18 = vld [vmem:[%s2809_s3 + $0x4bc] sm:$0xf] }
 0x121   :  { %964 = vmatmul.bf16.vlgmr.msrb.gmra.mxu2 %v2390_v39  ;;  %977 = vmatmul.bf16.vlgmr.msrb.gmra.mxu3 %v2390_v39 }
 0x122   :  { %986 = vmatpush.bf16.msra.mxu0 %v1497_v27  ;;  %999 = vmatpush.bf16.msra.mxu1 %v1501_v28  ;;  %v1876_v27 = vld [vmem:[%s2809_s3 + $0x6ec] sm:$0xf0]  ;;  %v1713_v28 = vor.u32 %v1893_v20, %v1712_v19  ;;  %v1394_v19 = vld [vmem:[%s2809_s3 + $0x4f8] sm:$0xf0] }
 0x123   :  { %1012 = vmatpush.bf16.msra.mxu2 %v1505_v30  ;;  %1025 = vmatpush.bf16.msra.mxu3 %v1509_v31  ;;  %v1642_v30 = vld [vmem:[%s2809_s3 + $0x6f0] sm:$0xf0]  ;;  %v1648_v31 = vld [vmem:[%s2809_s3 + $0x6b8] sm:$0xf]  ;;  %v1641_v35 = vor.u32 %v1876_v27, %v1640_v26  ;;  %v1397_v26 = vor.u32 %v1805_v18, %v1394_v19 }
 0x124   :  { %v1645_v32 = vor.u32 %v1868_v24, %v1642_v30  ;;  %v1788_v27 = vld [vmem:[%s2809_s3 + $0x434] sm:$0xf]  ;;  %v1797_v24 = vld [vmem:[%s2809_s3 + $0x474] sm:$0xf0]  ;;  %v1789_v30 = vld [vmem:[%s2809_s3 + $0x43c] sm:$0xf] }
 0x126   :  { %987 = vmatpush.bf16.msra.mxu0 %v1433_v0  ;;  %1000 = vmatpush.bf16.msra.mxu1 %v1437_v37  ;;  %v1860_v0 = vld [vmem:[%s2809_s3 + $0x66c] sm:$0xf0]  ;;  %v1649_v37 = vor.u32 %v1877_v3, %v1648_v31  ;;  %v1330_v31 = vld [vmem:[%s2809_s3 + $0x478] sm:$0xf0] }
 0x127   :  { %1013 = vmatpush.bf16.msra.mxu2 %v1441_v41  ;;  %1026 = vmatpush.bf16.msra.mxu3 %v1445_v42  ;;  %v1578_v41 = vld [vmem:[%s2809_s3 + $0x670] sm:$0xf0]  ;;  %v1584_v42 = vld [vmem:[%s2809_s3 + $0x638] sm:$0xf]  ;;  %v1577_v46 = vor.u32 %v1860_v0, %v1576_v36 }
 0x128   :  { %v1581_v47 = vor.u32 %v1852_v40, %v1578_v41 }
 0x12a   :  { %988 = vmatpush.bf16.msra.mxu0 %v1369_v50  ;;  %1001 = vmatpush.bf16.msra.mxu1 %v1373_v51  ;;  %v1585_v50 = vor.u32 %v1861_v43, %v1584_v42  ;;  %v1589_v51 = vor.u32 %v1853_v44, %v1586_v45 }
 0x12b   :  { %1014 = vmatpush.bf16.msra.mxu2 %v1377_v55  ;;  %1027 = vmatpush.bf16.msra.mxu3 %v1381_v56  ;;  %v1845_v55 = vld [vmem:[%s2809_s3 + $0x5f4] sm:$0xf0]  ;;  %v1837_v56 = vld [vmem:[%s2809_s3 + $0x5bc] sm:$0xf] }
 0x12c   :  { %v1521_v62 = vor.u32 %v1845_v55, %v1520_v54  ;;  %v1525_v63 = vor.u32 %v1837_v56, %v1522_v57 }
 0x12e   :  { %989 = vmatpush.bf16.msra.mxu0 %v1305_v4  ;;  %1002 = vmatpush.bf16.msra.mxu1 %v1309_v5  ;;  %v1456_v4 = vld [vmem:[%s2809_s3 + $0x538] sm:$0xf] }
 0x12f   :  { %1015 = vmatpush.bf16.msra.mxu2 %v1313_v9  ;;  %1028 = vmatpush.bf16.msra.mxu3 %v1317_v10  ;;  %v1829_v5 = vld [vmem:[%s2809_s3 + $0x574] sm:$0xf0]  ;;  %v1453_v9 = vor.u32 %v1820_v1, %v1450_v2  ;;  %v1384_v10 = vld [vmem:[%s2809_s3 + $0x4b0] sm:$0xf] }
 0x131   :  { %990 = vmatmul.bf16.vlgmr.msra.gmra.mxu0 %v2390_v39  ;;  %1003 = vmatmul.bf16.vlgmr.msra.gmra.mxu1 %v2390_v39 }
 0x132   :  { %1034 = vmatpush.bf16.msrb.mxu0 %v1769_v11  ;;  %1047 = vmatpush.bf16.msrb.mxu1 %v1773_v12  ;;  %v1812_v11 = vld [vmem:[%s2809_s3 + $0x4ec] sm:$0xf0]  ;;  %v1457_v12 = vor.u32 %v1829_v5, %v1456_v4 }
 0x133   :  { %1060 = vmatpush.bf16.msrb.mxu2 %v1777_v15  ;;  %1073 = vmatpush.bf16.msrb.mxu3 %v1781_v16  ;;  %v1386_v15 = vld [vmem:[%s2809_s3 + $0x4f0] sm:$0xf0]  ;;  %v1392_v16 = vld [vmem:[%s2809_s3 + $0x4b8] sm:$0xf]  ;;  %v1385_v20 = vor.u32 %v1812_v11, %v1384_v10 }
 0x134   :  { %1016 = vmatmul.bf16.vlgmr.msra.gmra.mxu2 %v2390_v39  ;;  %1029 = vmatmul.bf16.vlgmr.msra.gmra.mxu3 %v2390_v39  ;;  %v1389_v21 = vor.u32 %v1804_v14, %v1386_v15  ;;  %v1269_v11 = vld [vmem:[%s2810_s4 + $0x18] sm:$0xff] }
 0x135   :  { %v215_v14 = vperm.slane %v1269_v11, 1  ;;  %v214_v15 = vperm.slane %v1269_v11, 0 }
 0x136   :  { %1035 = vmatpush.bf16.msrb.mxu0 %v1705_v23  ;;  %1048 = vmatpush.bf16.msrb.mxu1 %v1709_v25  ;;  %v1796_v23 = vld [vmem:[%s2809_s3 + $0x46c] sm:$0xf0]  ;;  %v1393_v25 = vor.u32 %v1813_v17, %v1392_v16 }
 0x137   :  { %1061 = vmatpush.bf16.msrb.mxu2 %v1713_v28  ;;  %1074 = vmatpush.bf16.msrb.mxu3 %v1717_v29  ;;  %v1322_v28 = vld [vmem:[%s2809_s3 + $0x470] sm:$0xf0]  ;;  %v1328_v29 = vld [vmem:[%s2809_s3 + $0x438] sm:$0xf]  ;;  %v1321_v3 = vor.u32 %v1796_v23, %v1320_v22  ;;  %v216_v23 = vperm.slane %v1269_v11, 2 }
 0x138   :  { %v1325_v33 = vor.u32 %v1788_v27, %v1322_v28  ;;  %v1329_v34 = vor.u32 %v1797_v24, %v1328_v29 }
 0x13a   :  { %1036 = vmatpush.bf16.msrb.mxu0 %v1641_v35  ;;  %1049 = vmatpush.bf16.msrb.mxu1 %v1645_v32  ;;  %v1333_v35 = vor.u32 %v1789_v30, %v1330_v31  ;;  %v1268_v32 = vld [vmem:[%s2810_s4 + $0x10] sm:$0xff] }
 0x13b   :  { %1062 = vmatpush.bf16.msrb.mxu2 %v1649_v37  ;;  %1075 = vmatpush.bf16.msrb.mxu3 %v1653_v38  ;;  %v207_v36 = vperm.slane %v1268_v32, 1  ;;  %v206_v0 = vperm.slane %v1268_v32, 0  ;;  %v209_v43 = vperm.slane %v1268_v32, 3  ;;  %v208_v45 = vperm.slane %v1268_v32, 2 }
 0x13c   :  { %v211_v53 = vperm.slane %v1268_v32, 5  ;;  %v210_v56 = vperm.slane %v1268_v32, 4  ;;  %v212_v1 = vperm.slane %v1268_v32, 6 }
 0x13e   :  { %1037 = vmatpush.bf16.msrb.mxu0 %v1577_v46  ;;  %1050 = vmatpush.bf16.msrb.mxu1 %v1581_v47 }
 0x13f   :  { %1063 = vmatpush.bf16.msrb.mxu2 %v1585_v50  ;;  %1076 = vmatpush.bf16.msrb.mxu3 %v1589_v51 }
 0x142   :  { %1038 = vmatpush.bf16.msrb.mxu0 %v1513_v58  ;;  %1051 = vmatpush.bf16.msrb.mxu1 %v1517_v59 }
 0x143   :  { %1064 = vmatpush.bf16.msrb.mxu2 %v1521_v62  ;;  %1077 = vmatpush.bf16.msrb.mxu3 %v1525_v63  ;;  %v213_v62 = vperm.slane %v1268_v32, 7 }
 0x146   :  { %1039 = vmatpush.bf16.msrb.mxu0 %v1449_v8  ;;  %1052 = vmatpush.bf16.msrb.mxu1 %v1453_v9 }
 0x147   :  { %1065 = vmatpush.bf16.msrb.mxu2 %v1457_v12  ;;  %1078 = vmatpush.bf16.msrb.mxu3 %v1461_v13 }
 0x14a   :  { %1040 = vmatpush.bf16.msrb.mxu0 %v1385_v20  ;;  %1053 = vmatpush.bf16.msrb.mxu1 %v1389_v21  ;;  %v217_v21 = vperm.slane %v1269_v11, 3 }
 0x14b   :  { %1066 = vmatpush.bf16.msrb.mxu2 %v1393_v25  ;;  %1079 = vmatpush.bf16.msrb.mxu3 %v1397_v26 }
 0x14e   :  { %1041 = vmatpush.bf16.msrb.mxu0 %v1321_v3  ;;  %1054 = vmatpush.bf16.msrb.mxu1 %v1325_v33 }
 0x14f   :  { %1067 = vmatpush.bf16.msrb.mxu2 %v1329_v34  ;;  %1080 = vmatpush.bf16.msrb.mxu3 %v1333_v35  ;;  %v219_v34 = vperm.slane %v1269_v11, 5  ;;  %v218_v35 = vperm.slane %v1269_v11, 4 }
 0x151   :  { %1042 = vmatmul.bf16.vlgmr.msrb.gmra.mxu0 %v2390_v39  ;;  %1055 = vmatmul.bf16.vlgmr.msrb.gmra.mxu1 %v2390_v39 }
 0x152   :  { %1068 = vmatmul.bf16.vlgmr.msrb.gmra.mxu2 %v2390_v39  ;;  %1081 = vmatmul.bf16.vlgmr.msrb.gmra.mxu3 %v2390_v39 }
 0x18d   :  { %v887_v37 = vpop.f32.mrf.mxu0  ;;  %v900_v38 = vpop.f32.mrf.mxu1 }
 0x18e   :  { %v901_v40 = vadd.f32 %v900_v38, %v207_v36  ;;  %v888_v41 = vadd.f32 %v887_v37, %v206_v0 }
 0x190   :  { %v1102_v42 = vrot.slane %v901_v40, 4  ;;  %v221_v40 = vperm.slane %v1269_v11, 7 }
 0x192   :  { %v1110_v44 = vsel %vm35_vm0, %v888_v41, %v1102_v42  ;;  %v220_v42 = vperm.slane %v1269_v11, 6 }
 0x193   :  { %1126 = vst [vmem:[%s2811_s5] sm:$0xff] %v1110_v44 }
 0x194   :  { %v913_v39 = vpop.f32.mrf.mxu2  ;;  %v926_v46 = vpop.f32.mrf.mxu3 }
 0x195   :  { %v927_v47 = vadd.f32 %v926_v46, %v209_v43  ;;  %v889_v48 = vpop.f32.mrf.mxu0  ;;  %v902_v49 = vpop.f32.mrf.mxu1  ;;  %v914_v50 = vadd.f32 %v913_v39, %v208_v45 }
 0x197   :  { %v1103_v51 = vrot.slane %v927_v47, 4 }
 0x199   :  { %v1111_v52 = vsel %vm35_vm0, %v914_v50, %v1103_v51 }
 0x19a   :  { %1127 = vst [vmem:[%s2811_s5 + $0x8] sm:$0xff] %v1111_v52 }
 0x19c   :  { %v915_v54 = vpop.f32.mrf.mxu2  ;;  %v928_v55 = vpop.f32.mrf.mxu3 }
 0x19d   :  { %v939_v57 = vpop.f32.mrf.mxu0  ;;  %v952_v58 = vpop.f32.mrf.mxu1 }
 0x19e   :  { %v953_v59 = vadd.f32 %v952_v58, %v211_v53  ;;  %v940_v60 = vadd.f32 %v939_v57, %v210_v56 }
 0x1a0   :  { %v1104_v61 = vrot.slane %v953_v59, 4 }
 0x1a2   :  { %v1112_v63 = vsel %vm35_vm0, %v940_v60, %v1104_v61 }
 0x1a3   :  { %1128 = vst [vmem:[%s2811_s5 + $0x10] sm:$0xff] %v1112_v63 }
 0x1a4   :  { %v965_v2 = vpop.f32.mrf.mxu2  ;;  %v978_v4 = vpop.f32.mrf.mxu3 }
 0x1a5   :  { %v979_v5 = vadd.f32 %v978_v4, %v213_v62  ;;  %v941_v6 = vpop.f32.mrf.mxu0  ;;  %v954_v7 = vpop.f32.mrf.mxu1  ;;  %v966_v8 = vadd.f32 %v965_v2, %v212_v1 }
 0x1a7   :  { %v1105_v9 = vrot.slane %v979_v5, 4 }
 0x1a9   :  { %v1113_v10 = vsel %vm35_vm0, %v966_v8, %v1105_v9 }
 0x1aa   :  { %1129 = vst [vmem:[%s2811_s5 + $0x18] sm:$0xff] %v1113_v10 }
 0x1ac   :  { %v967_v12 = vpop.f32.mrf.mxu2  ;;  %v980_v13 = vpop.f32.mrf.mxu3 }
 0x1ae   :  { %v991_v16 = vpop.f32.mrf.mxu0  ;;  %v1004_v17 = vpop.f32.mrf.mxu1 }
 0x1af   :  { %v1005_v18 = vadd.f32 %v1004_v17, %v215_v14  ;;  %v992_v19 = vadd.f32 %v991_v16, %v214_v15 }
 0x1b1   :  { %v1106_v20 = vrot.slane %v1005_v18, 4 }
 0x1b3   :  { %v1114_v22 = vsel %vm35_vm0, %v992_v19, %v1106_v20 }
 0x1b4   :  { %1130 = vst [vmem:[%s2811_s5 + $0x20] sm:$0xff] %v1114_v22 }
 0x1b6   :  { %v993_v28 = vpop.f32.mrf.mxu0  ;;  %v1006_v29 = vpop.f32.mrf.mxu1 }
 0x1b7   :  { %v1017_v25 = vpop.f32.mrf.mxu2  ;;  %v1030_v26 = vpop.f32.mrf.mxu3 }
 0x1b8   :  { %v1031_v27 = vadd.f32 %v1030_v26, %v217_v21  ;;  %v1018_v24 = vadd.f32 %v1017_v25, %v216_v23 }
 0x1ba   :  { %v1107_v30 = vrot.slane %v1031_v27, 4 }
 0x1bc   :  { %v1115_v31 = vsel %vm35_vm0, %v1018_v24, %v1107_v30 }
 0x1bd   :  { %1131 = vst [vmem:[%s2811_s5 + $0x28] sm:$0xff] %v1115_v31 }
 0x1bf   :  { %v1019_v3 = vpop.f32.mrf.mxu2  ;;  %v1032_v33 = vpop.f32.mrf.mxu3 }
 0x1ce   :  { %v1043_v32 = vpop.f32.mrf.mxu0  ;;  %v1056_v36 = vpop.f32.mrf.mxu1 }
 0x1cf   :  { %v1057_v0 = vadd.f32 %v1056_v36, %v219_v34  ;;  %v1044_v37 = vadd.f32 %v1043_v32, %v218_v35 }
 0x1d1   :  { %v1108_v38 = vrot.slane %v1057_v0, 4 }
 0x1d3   :  { %v1116_v41 = vsel %vm35_vm0, %v1044_v37, %v1108_v38 }
 0x1d4   :  { %1132 = vst [vmem:[%s2811_s5 + $0x30] sm:$0xff] %v1116_v41 }
 0x1d5   :  { %v1069_v43 = vpop.f32.mrf.mxu2  ;;  %v1082_v44 = vpop.f32.mrf.mxu3 }
 0x1d6   :  { %v1083_v45 = vadd.f32 %v1082_v44, %v221_v40  ;;  %v1045_v39 = vpop.f32.mrf.mxu0  ;;  %v1058_v46 = vpop.f32.mrf.mxu1  ;;  %v1070_v47 = vadd.f32 %v1069_v43, %v220_v42 }
 0x1d8   :  { %v1109_v48 = vrot.slane %v1083_v45, 4 }
 0x1da   :  { %v1117_v49 = vsel %vm35_vm0, %v1070_v47, %v1109_v48 }
 0x1db   :  { %1133 = vst [vmem:[%s2811_s5 + $0x38] sm:$0xff] %v1117_v49 }
 0x1dd   :  { %v1071_v50 = vpop.f32.mrf.mxu2  ;;  %v1084_v51 = vpop.f32.mrf.mxu3 }

// kernel: person_pair_forward.8
= control target key start
LH: loop header
LB: loop body
LE: loop exit
PB: predicated region body
PF: predicated region fallthrough
CT: control target
= control target key end

     0   :  { %15 = vsyncpa [#allocation3], 0  ;;  %vm36_vm0 = vcmask 1041408   ;;  %s3437_s0 = inlined_call_operand.vmem [shape: f32[2,128], index: 0, kind: input, shape index: {}]   ;;  %s3438_s1 = inlined_call_operand.vmem [shape: f32[2,1,128], index: 1, kind: input, shape index: {}]   ;;  %s3439_s2 = inlined_call_operand.vmem [shape: f32[2,1,128], index: 2, kind: input, shape index: {}]   ;;  %s3440_s3 = inlined_call_operand.vmem [shape: bf16[2,128,2048], index: 3, kind: input, shape index: {}]   ;;  %s3441_s4 = inlined_call_operand.vmem [shape: f32[2,1,2048], index: 4, kind: input, shape index: {}]   ;;  %s3442_s5 = inlined_call_operand.vmem [shape: f32[2,10], index: 5, kind: input, shape index: {}]   ;;  %s3443_s6 = inlined_call_operand.vmem [shape: f32[10,2048], index: 6, kind: input, shape index: {}]   ;;  %s3444_s7 = inlined_call_operand.vmem [shape: f32[1,2048], index: 7, kind: input, shape index: {}]   ;;  %s3445_s8 = inlined_call_operand.hbm [shape: f32[2,2048], index: 8, kind: output, shape index: {0}]   ;;  %s3446_s9 = inlined_call_operand.hbm [shape: f32[2,2048], index: 9, kind: output, shape index: {1}]  }
   0x1   :  { %v2447_v0 = vld [vmem:[%s3437_s0] sm:$0x3] }
   0x2   :  { %v37_v1 = vsel %vm36_vm0, %v2447_v0, 0.0 }
   0x3   :  { %16 = vsyncpa [#allocation5], 0  ;;  %38 = vadd.xlane.f32.xlu0 %v37_v1  ;;  %v2391_v2 = vmov 128.0   ;;  %v2108_v5 = vld [vmem:[%s3440_s3 + $0x380] sm:$0xf]  ;;  %vm1206_vm5 = vcmask 80896  }
   0x4   :  { %2335 = vrcp.f32 %v2391_v2  ;;  %v2322_v6 = vld [vmem:[%s3440_s3 + $0x3bc] sm:$0xf0]  ;;  %v2314_v7 = vld [vmem:[%s3440_s3 + $0x384] sm:$0xf]  ;;  %v2116_v10 = vld [vmem:[%s3440_s3 + $0x388] sm:$0xf] }
   0x5   :  { %v2109_v8 = vor.u32 %v2322_v6, %v2108_v5  ;;  %v2110_v9 = vld [vmem:[%s3440_s3 + $0x3c0] sm:$0xf0]  ;;  %v2323_v11 = vld [vmem:[%s3440_s3 + $0x3c4] sm:$0xf0]  ;;  %v2315_v14 = vld [vmem:[%s3440_s3 + $0x38c] sm:$0xf] }
   0x6   :  { %v2113_v12 = vor.u32 %v2314_v7, %v2110_v9  ;;  %v2117_v13 = vor.u32 %v2323_v11, %v2116_v10  ;;  %v2118_v15 = vld [vmem:[%s3440_s3 + $0x3c8] sm:$0xf0]  ;;  %v2044_v16 = vld [vmem:[%s3440_s3 + $0x300] sm:$0xf]  ;;  %v2298_v19 = vld [vmem:[%s3440_s3 + $0x304] sm:$0xf] }
   0x7   :  { %879 = vmatpush.bf16.msra.mxu0 %v2109_v8  ;;  %v2121_v17 = vor.u32 %v2315_v14, %v2118_v15  ;;  %v2306_v18 = vld [vmem:[%s3440_s3 + $0x33c] sm:$0xf0]  ;;  %v2046_v20 = vld [vmem:[%s3440_s3 + $0x340] sm:$0xf0]  ;;  %v2052_v23 = vld [vmem:[%s3440_s3 + $0x308] sm:$0xf] }
   0x8   :  { %892 = vmatpush.bf16.msra.mxu1 %v2113_v12  ;;  %905 = vmatpush.bf16.msra.mxu2 %v2117_v13  ;;  %v2045_v21 = vor.u32 %v2306_v18, %v2044_v16  ;;  %v2049_v22 = vor.u32 %v2298_v19, %v2046_v20  ;;  %v2307_v24 = vld [vmem:[%s3440_s3 + $0x344] sm:$0xf0]  ;;  %v2299_v25 = vld [vmem:[%s3440_s3 + $0x30c] sm:$0xf]  ;;  %v1980_v28 = vld [vmem:[%s3440_s3 + $0x280] sm:$0xf] }
   0x9   :  { %918 = vmatpush.bf16.msra.mxu3 %v2121_v17  ;;  %v2053_v26 = vor.u32 %v2307_v24, %v2052_v23  ;;  %v2054_v27 = vld [vmem:[%s3440_s3 + $0x348] sm:$0xf0]  ;;  %v2290_v29 = vld [vmem:[%s3440_s3 + $0x2bc] sm:$0xf0]  ;;  %v2282_v31 = vld [vmem:[%s3440_s3 + $0x284] sm:$0xf] }
   0xa   :  { %v2451_v3 = vpop.eup %2335  ;;  %v2057_v30 = vor.u32 %v2299_v25, %v2054_v27  ;;  %v1982_v32 = vld [vmem:[%s3440_s3 + $0x2c0] sm:$0xf0]  ;;  %v1988_v33 = vld [vmem:[%s3440_s3 + $0x288] sm:$0xf]  ;;  %v1981_v34 = vor.u32 %v2290_v29, %v1980_v28  ;;  %v2283_v36 = vld [vmem:[%s3440_s3 + $0x28c] sm:$0xf] }
   0xb   :  { %v2454_v4 = vmul.f32 128.0, %v2451_v3  ;;  %880 = vmatpush.bf16.msra.mxu0 %v2045_v21  ;;  %v2291_v35 = vld [vmem:[%s3440_s3 + $0x2c4] sm:$0xf0]  ;;  %v1990_v37 = vld [vmem:[%s3440_s3 + $0x2c8] sm:$0xf0]  ;;  %v1985_v38 = vor.u32 %v2282_v31, %v1982_v32  ;;  %vm45_vm1 = vweird.f32 %v2451_v3  ;;  %vm1116_vm6 = vcmask 1045508  }
   0xc   :  { %893 = vmatpush.bf16.msra.mxu1 %v2049_v22  ;;  %906 = vmatpush.bf16.msra.mxu2 %v2053_v26  ;;  %v1989_v39 = vor.u32 %v2291_v35, %v1988_v33  ;;  %v1916_v40 = vld [vmem:[%s3440_s3 + $0x200] sm:$0xf]  ;;  %v2266_v42 = vld [vmem:[%s3440_s3 + $0x204] sm:$0xf]  ;;  %v1993_v43 = vor.u32 %v2283_v36, %v1990_v37  ;;  %v1924_v45 = vld [vmem:[%s3440_s3 + $0x208] sm:$0xf] }
   0xd   :  { %v2274_v41 = vld [vmem:[%s3440_s3 + $0x23c] sm:$0xf0]  ;;  %919 = vmatpush.bf16.msra.mxu3 %v2057_v30  ;;  %v1918_v44 = vld [vmem:[%s3440_s3 + $0x240] sm:$0xf0]  ;;  %v2275_v46 = vld [vmem:[%s3440_s3 + $0x244] sm:$0xf0] }
   0xe   :  { %v42_v47 = vsub.f32 1.0, %v2454_v4  ;;  %v2267_v48 = vld [vmem:[%s3440_s3 + $0x20c] sm:$0xf]  ;;  %v1917_v50 = vor.u32 %v2274_v41, %v1916_v40  ;;  %v1921_v51 = vor.u32 %v2266_v42, %v1918_v44  ;;  %v1925_v52 = vor.u32 %v2275_v46, %v1924_v45  ;;  %v1852_v53 = vld [vmem:[%s3440_s3 + $0x180] sm:$0xf]  ;;  %s1633_s15 = sshll.u32 %s3445_s8, 4  ;;  %s1634_s15 = int_to_ptr.hbm [resolvable:$true] %s1633_s15 }
   0xf   :  { %v1926_v49 = vld [vmem:[%s3440_s3 + $0x248] sm:$0xf0]  ;;  %881 = vmatpush.bf16.msra.mxu0 %v1981_v34  ;;  %v2258_v54 = vld [vmem:[%s3440_s3 + $0x1bc] sm:$0xf0]  ;;  %v2250_v55 = vld [vmem:[%s3440_s3 + $0x184] sm:$0xf] }
  0x10   :  { %894 = vmatpush.bf16.msra.mxu1 %v1985_v38  ;;  %907 = vmatpush.bf16.msra.mxu2 %v1989_v39  ;;  %v1929_v56 = vor.u32 %v2267_v48, %v1926_v49  ;;  %v1854_v57 = vld [vmem:[%s3440_s3 + $0x1c0] sm:$0xf0]  ;;  %v1860_v58 = vld [vmem:[%s3440_s3 + $0x188] sm:$0xf]  ;;  %v43_v60 = vmul.f32 %v2451_v3, %v42_v47  ;;  %v2251_v61 = vld [vmem:[%s3440_s3 + $0x18c] sm:$0xf]  ;;  %v1853_v63 = vor.u32 %v2258_v54, %v1852_v53 }
  0x11   :  { %920 = vmatpush.bf16.msra.mxu3 %v1993_v43  ;;  %v2259_v59 = vld [vmem:[%s3440_s3 + $0x1c4] sm:$0xf0]  ;;  %v1862_v62 = vld [vmem:[%s3440_s3 + $0x1c8] sm:$0xf0]  ;;  %v1857_v1 = vor.u32 %v2250_v55, %v1854_v57  ;;  %v1788_v4 = vld [vmem:[%s3440_s3 + $0x100] sm:$0xf] }
  0x12   :  { %v1861_v2 = vor.u32 %v2259_v59, %v1860_v58  ;;  %v2242_v5 = vld [vmem:[%s3440_s3 + $0x13c] sm:$0xf0]  ;;  %v2234_v6 = vld [vmem:[%s3440_s3 + $0x104] sm:$0xf]  ;;  %v1865_v7 = vor.u32 %v2251_v61, %v1862_v62  ;;  %v1796_v9 = vld [vmem:[%s3440_s3 + $0x108] sm:$0xf]  ;;  %v44_v11 = vadd.f32 %v2451_v3, %v43_v60 }
  0x13   :  { %882 = vmatpush.bf16.msra.mxu0 %v1917_v50  ;;  %v1790_v8 = vld [vmem:[%s3440_s3 + $0x140] sm:$0xf0]  ;;  %v2243_v10 = vld [vmem:[%s3440_s3 + $0x144] sm:$0xf0]  ;;  %v2235_v12 = vld [vmem:[%s3440_s3 + $0x10c] sm:$0xf]  ;;  %v1789_v14 = vor.u32 %v2242_v5, %v1788_v4 }
  0x14   :  { %895 = vmatpush.bf16.msra.mxu1 %v1921_v51  ;;  %908 = vmatpush.bf16.msra.mxu2 %v1925_v52  ;;  %v1798_v13 = vld [vmem:[%s3440_s3 + $0x148] sm:$0xf0]  ;;  %v1793_v15 = vor.u32 %v2234_v6, %v1790_v8  ;;  %v1797_v16 = vor.u32 %v2243_v10, %v1796_v9  ;;  %v1724_v17 = vld [vmem:[%s3440_s3 + $0x80] sm:$0xf]  ;;  %v2218_v19 = vld [vmem:[%s3440_s3 + $0x84] sm:$0xf]  ;;  %v2623_v24 = vsel %vm45_vm1, %v2451_v3, %v44_v11 }
  0x15   :  { %921 = vmatpush.bf16.msra.mxu3 %v1929_v56  ;;  %v2226_v18 = vld [vmem:[%s3440_s3 + $0xbc] sm:$0xf0]  ;;  %v1801_v20 = vor.u32 %v2235_v12, %v1798_v13  ;;  %v1726_v21 = vld [vmem:[%s3440_s3 + $0xc0] sm:$0xf0]  ;;  %v1732_v22 = vld [vmem:[%s3440_s3 + $0x88] sm:$0xf] }
  0x16   :  { %v2227_v23 = vld [vmem:[%s3440_s3 + $0xc4] sm:$0xf0]  ;;  %v2219_v25 = vld [vmem:[%s3440_s3 + $0x8c] sm:$0xf]  ;;  %v1725_v27 = vor.u32 %v2226_v18, %v1724_v17  ;;  %v1729_v29 = vor.u32 %v2218_v19, %v1726_v21  ;;  %v1660_v35 = vld [vmem:[%s3440_s3] sm:$0xf] }
  0x17   :  { %883 = vmatpush.bf16.msra.mxu0 %v1853_v63  ;;  %v1734_v26 = vld [vmem:[%s3440_s3 + $0xc8] sm:$0xf0]  ;;  %v1733_v30 = vor.u32 %v2227_v23, %v1732_v22  ;;  %v2210_v36 = vld [vmem:[%s3440_s3 + $0x3c] sm:$0xf0]  ;;  %v1662_v38 = vld [vmem:[%s3440_s3 + $0x40] sm:$0xf0] }
  0x18   :  { %896 = vmatpush.bf16.msra.mxu1 %v1857_v1  ;;  %909 = vmatpush.bf16.msra.mxu2 %v1861_v2  ;;  %v1737_v3 = vor.u32 %v2219_v25, %v1734_v26  ;;  %v1661_v37 = vor.u32 %v2210_v36, %v1660_v35  ;;  %v1668_v39 = vld [vmem:[%s3440_s3 + $0x8] sm:$0xf]  ;;  %v2203_v43 = vld [vmem:[%s3440_s3 + $0xc] sm:$0xf]  ;;  %v2124_v45 = vld [vmem:[%s3440_s3 + $0x390] sm:$0xf] }
  0x19   :  { %922 = vmatpush.bf16.msra.mxu3 %v1865_v7  ;;  %v2211_v40 = vld [vmem:[%s3440_s3 + $0x44] sm:$0xf0]  ;;  %v1670_v44 = vld [vmem:[%s3440_s3 + $0x48] sm:$0xf0]  ;;  %v2324_v47 = vld [vmem:[%s3440_s3 + $0x3cc] sm:$0xf0] }
  0x1a   :  { %v1669_v42 = vor.u32 %v2211_v40, %v1668_v39  ;;  %v1673_v46 = vor.u32 %v2203_v43, %v1670_v44  ;;  %v2316_v48 = vld [vmem:[%s3440_s3 + $0x394] sm:$0xf]  ;;  %v2125_v50 = vor.u32 %v2324_v47, %v2124_v45  ;;  %v2132_v52 = vld [vmem:[%s3440_s3 + $0x398] sm:$0xf]  ;;  %v2317_v54 = vld [vmem:[%s3440_s3 + $0x39c] sm:$0xf] }
  0x1b   :  { %884 = vmatpush.bf16.msra.mxu0 %v1789_v14  ;;  %v2126_v49 = vld [vmem:[%s3440_s3 + $0x3d0] sm:$0xf0]  ;;  %v2325_v53 = vld [vmem:[%s3440_s3 + $0x3d4] sm:$0xf0]  ;;  %v2134_v56 = vld [vmem:[%s3440_s3 + $0x3d8] sm:$0xf0] }
  0x1c   :  { %897 = vmatpush.bf16.msra.mxu1 %v1793_v15  ;;  %910 = vmatpush.bf16.msra.mxu2 %v1797_v16  ;;  %v2129_v51 = vor.u32 %v2316_v48, %v2126_v49  ;;  %v2133_v55 = vor.u32 %v2325_v53, %v2132_v52  ;;  %v2060_v57 = vld [vmem:[%s3440_s3 + $0x310] sm:$0xf]  ;;  %v2137_v59 = vor.u32 %v2317_v54, %v2134_v56  ;;  %v2300_v61 = vld [vmem:[%s3440_s3 + $0x314] sm:$0xf]  ;;  %v2068_v63 = vld [vmem:[%s3440_s3 + $0x318] sm:$0xf] }
  0x1d   :  { %923 = vmatpush.bf16.msra.mxu3 %v1801_v20  ;;  %v2308_v58 = vld [vmem:[%s3440_s3 + $0x34c] sm:$0xf0]  ;;  %v2062_v62 = vld [vmem:[%s3440_s3 + $0x350] sm:$0xf0]  ;;  %v2309_v2 = vld [vmem:[%s3440_s3 + $0x354] sm:$0xf0] }
  0x1e   :  { %v2061_v60 = vor.u32 %v2308_v58, %v2060_v57  ;;  %v2065_v1 = vor.u32 %v2300_v61, %v2062_v62  ;;  %v2301_v4 = vld [vmem:[%s3440_s3 + $0x31c] sm:$0xf]  ;;  %v2069_v6 = vor.u32 %v2309_v2, %v2068_v63  ;;  %v1996_v8 = vld [vmem:[%s3440_s3 + $0x290] sm:$0xf]  ;;  %v2284_v10 = vld [vmem:[%s3440_s3 + $0x294] sm:$0xf] }
  0x1f   :  { %885 = vmatpush.bf16.msra.mxu0 %v1725_v27  ;;  %v2070_v5 = vld [vmem:[%s3440_s3 + $0x358] sm:$0xf0]  ;;  %v2292_v9 = vld [vmem:[%s3440_s3 + $0x2cc] sm:$0xf0]  ;;  %v1998_v12 = vld [vmem:[%s3440_s3 + $0x2d0] sm:$0xf0] }
  0x20   :  { %898 = vmatpush.bf16.msra.mxu1 %v1729_v29  ;;  %911 = vmatpush.bf16.msra.mxu2 %v1733_v30  ;;  %v2073_v7 = vor.u32 %v2301_v4, %v2070_v5  ;;  %v1997_v11 = vor.u32 %v2292_v9, %v1996_v8  ;;  %v2004_v13 = vld [vmem:[%s3440_s3 + $0x298] sm:$0xf]  ;;  %v2001_v15 = vor.u32 %v2284_v10, %v1998_v12  ;;  %v2285_v17 = vld [vmem:[%s3440_s3 + $0x29c] sm:$0xf]  ;;  %v1932_v20 = vld [vmem:[%s3440_s3 + $0x210] sm:$0xf] }
  0x21   :  { %924 = vmatpush.bf16.msra.mxu3 %v1737_v3  ;;  %v2293_v14 = vld [vmem:[%s3440_s3 + $0x2d4] sm:$0xf0]  ;;  %v2006_v18 = vld [vmem:[%s3440_s3 + $0x2d8] sm:$0xf0]  ;;  %v2276_v21 = vld [vmem:[%s3440_s3 + $0x24c] sm:$0xf0] }
  0x22   :  { %v2005_v16 = vor.u32 %v2293_v14, %v2004_v13  ;;  %v2009_v19 = vor.u32 %v2285_v17, %v2006_v18  ;;  %v2268_v22 = vld [vmem:[%s3440_s3 + $0x214] sm:$0xf]  ;;  %v1933_v23 = vor.u32 %v2276_v21, %v1932_v20  ;;  %v1940_v26 = vld [vmem:[%s3440_s3 + $0x218] sm:$0xf]  ;;  %v2269_v30 = vld [vmem:[%s3440_s3 + $0x21c] sm:$0xf] }
  0x23   :  { %886 = vmatpush.bf16.msra.mxu0 %v1661_v37  ;;  %v1934_v25 = vld [vmem:[%s3440_s3 + $0x250] sm:$0xf0]  ;;  %v2277_v27 = vld [vmem:[%s3440_s3 + $0x254] sm:$0xf0]  ;;  %v1804_v44 = vld [vmem:[%s3440_s3 + $0x110] sm:$0xf] }
  0x24   :  { %912 = vmatpush.bf16.msra.mxu2 %v1669_v42  ;;  %v1941_v29 = vor.u32 %v2277_v27, %v1940_v26  ;;  %v2252_v35 = vld [vmem:[%s3440_s3 + $0x194] sm:$0xf]  ;;  %v1876_v37 = vld [vmem:[%s3440_s3 + $0x198] sm:$0xf]  ;;  %v1878_v42 = vld [vmem:[%s3440_s3 + $0x1d8] sm:$0xf0] }
  0x25   :  { %925 = vmatpush.bf16.msra.mxu3 %v1673_v46  ;;  %v2244_v45 = vld [vmem:[%s3440_s3 + $0x14c] sm:$0xf0]  ;;  %v2236_v46 = vld [vmem:[%s3440_s3 + $0x114] sm:$0xf]  ;;  %v1812_v49 = vld [vmem:[%s3440_s3 + $0x118] sm:$0xf] }
  0x26   :  { %v1805_v47 = vor.u32 %v2244_v45, %v1804_v44  ;;  %v1806_v48 = vld [vmem:[%s3440_s3 + $0x150] sm:$0xf0]  ;;  %v2237_v53 = vld [vmem:[%s3440_s3 + $0x11c] sm:$0xf]  ;;  %v1740_v56 = vld [vmem:[%s3440_s3 + $0x90] sm:$0xf] }
  0x27   :  { %931 = vmatpush.bf16.msrb.mxu0 %v2125_v50  ;;  %v2245_v50 = vld [vmem:[%s3440_s3 + $0x154] sm:$0xf0]  ;;  %v1814_v54 = vld [vmem:[%s3440_s3 + $0x158] sm:$0xf0]  ;;  %v2228_v57 = vld [vmem:[%s3440_s3 + $0xcc] sm:$0xf0] }
  0x28   :  { %957 = vmatpush.bf16.msrb.mxu2 %v2133_v55  ;;  %v1813_v52 = vor.u32 %v2245_v50, %v1812_v49  ;;  %v1817_v55 = vor.u32 %v2237_v53, %v1814_v54  ;;  %v2220_v58 = vld [vmem:[%s3440_s3 + $0x94] sm:$0xf]  ;;  %v1748_v61 = vld [vmem:[%s3440_s3 + $0x98] sm:$0xf]  ;;  %v2221_v2 = vld [vmem:[%s3440_s3 + $0x9c] sm:$0xf] }
  0x29   :  { %970 = vmatpush.bf16.msrb.mxu3 %v2137_v59  ;;  %v1741_v59 = vor.u32 %v2228_v57, %v1740_v56  ;;  %v2229_v62 = vld [vmem:[%s3440_s3 + $0xd4] sm:$0xf0]  ;;  %v1750_v4 = vld [vmem:[%s3440_s3 + $0xd8] sm:$0xf0]  ;;  %v2204_v8 = vld [vmem:[%s3440_s3 + $0x14] sm:$0xf] }
  0x2a   :  { %v1753_v5 = vor.u32 %v2221_v2, %v1750_v4  ;;  %v1678_v10 = vld [vmem:[%s3440_s3 + $0x50] sm:$0xf0]  ;;  %v2213_v12 = vld [vmem:[%s3440_s3 + $0x54] sm:$0xf0]  ;;  %v2311_v49 = vld [vmem:[%s3440_s3 + $0x364] sm:$0xf0] }
  0x2b   :  { %932 = vmatpush.bf16.msrb.mxu0 %v2061_v60  ;;  %v1742_v60 = vld [vmem:[%s3440_s3 + $0xd0] sm:$0xf0]  ;;  %v1681_v13 = vor.u32 %v2204_v8, %v1678_v10  ;;  %v2303_v50 = vld [vmem:[%s3440_s3 + $0x32c] sm:$0xf]  ;;  %v2012_v54 = vld [vmem:[%s3440_s3 + $0x2a0] sm:$0xf] }
  0x2c   :  { %958 = vmatpush.bf16.msrb.mxu2 %v2069_v6  ;;  %v1745_v63 = vor.u32 %v2220_v58, %v1742_v60  ;;  %v1676_v6 = vld [vmem:[%s3440_s3 + $0x10] sm:$0xf]  ;;  %v2286_v58 = vld [vmem:[%s3440_s3 + $0x2a4] sm:$0xf]  ;;  %v2020_v60 = vld [vmem:[%s3440_s3 + $0x2a8] sm:$0xf] }
  0x2d   :  { %971 = vmatpush.bf16.msrb.mxu3 %v2073_v7  ;;  %v2212_v7 = vld [vmem:[%s3440_s3 + $0x4c] sm:$0xf0]  ;;  %v1948_v4 = vld [vmem:[%s3440_s3 + $0x220] sm:$0xf]  ;;  %v2270_v8 = vld [vmem:[%s3440_s3 + $0x224] sm:$0xf] }
  0x2e   :  { %v1677_v9 = vor.u32 %v2212_v7, %v1676_v6  ;;  %v1956_v10 = vld [vmem:[%s3440_s3 + $0x228] sm:$0xf]  ;;  %vm1118_vm7 = vcmask 1043456   ;;  %s1644_s22 = sshll.u32 %s3446_s9, 4  ;;  %s1645_s22 = int_to_ptr.hbm [resolvable:$true] %s1644_s22 }
  0x2f   :  { %933 = vmatpush.bf16.msrb.mxu0 %v1997_v11  ;;  %v1684_v11 = vld [vmem:[%s3440_s3 + $0x18] sm:$0xf] }
  0x30   :  { %959 = vmatpush.bf16.msrb.mxu2 %v2005_v16  ;;  %v1685_v14 = vor.u32 %v2213_v12, %v1684_v11  ;;  %v1686_v16 = vld [vmem:[%s3440_s3 + $0x58] sm:$0xf0]  ;;  %v2279_v11 = vld [vmem:[%s3440_s3 + $0x264] sm:$0xf0]  ;;  %v2271_v12 = vld [vmem:[%s3440_s3 + $0x22c] sm:$0xf] }
  0x31   :  { %972 = vmatpush.bf16.msrb.mxu3 %v2009_v19 }
  0x33   :  { %934 = vmatpush.bf16.msrb.mxu0 %v1933_v23 }
  0x34   :  { %960 = vmatpush.bf16.msrb.mxu2 %v1941_v29 }
  0x76   :  { %v39_v28 = vpop.xlane.xlu0 %38 }
  0x77   :  { %v47_v31 = vmul.f32 %v2623_v24, %v39_v28  ;;  %v1937_v28 = vor.u32 %v2268_v22, %v1934_v25 }
  0x79   :  { %v2633_v32 = vsub.f32 %v2447_v0, %v47_v31  ;;  %v2202_v0 = vld [vmem:[%s3440_s3 + $0x4] sm:$0xf]  ;;  %v1942_v31 = vld [vmem:[%s3440_s3 + $0x258] sm:$0xf0] }
  0x7a   :  { %v1665_v41 = vor.u32 %v2202_v0, %v1662_v38  ;;  %v1945_v3 = vor.u32 %v2269_v30, %v1942_v31  ;;  %v1870_v0 = vld [vmem:[%s3440_s3 + $0x1d0] sm:$0xf0]  ;;  %v2261_v38 = vld [vmem:[%s3440_s3 + $0x1d4] sm:$0xf0] }
  0x7b   :  { %v49_v33 = vmul.f32 %v2633_v32, %v2633_v32  ;;  %v1873_v39 = vor.u32 %v2252_v35, %v1870_v0  ;;  %v1877_v40 = vor.u32 %v2261_v38, %v1876_v37  ;;  %v2142_v35 = vld [vmem:[%s3440_s3 + $0x3e0] sm:$0xf0]  ;;  %v2327_v0 = vld [vmem:[%s3440_s3 + $0x3e4] sm:$0xf0]  ;;  %v2319_v37 = vld [vmem:[%s3440_s3 + $0x3ac] sm:$0xf] }
  0x7c   :  { %899 = vmatpush.bf16.msra.mxu1 %v1665_v41  ;;  %v2253_v41 = vld [vmem:[%s3440_s3 + $0x19c] sm:$0xf]  ;;  %973 = vmatpush.bf16.msrb.mxu3 %v1945_v3  ;;  %v2140_v3 = vld [vmem:[%s3440_s3 + $0x3a0] sm:$0xf]  ;;  %v2150_v38 = vld [vmem:[%s3440_s3 + $0x3e8] sm:$0xf0] }
  0x7d   :  { %v50_v34 = vsel %vm36_vm0, %v49_v33, 0.0  ;;  %v1868_v33 = vld [vmem:[%s3440_s3 + $0x190] sm:$0xf]  ;;  %v1881_v43 = vor.u32 %v2253_v41, %v1878_v42  ;;  %961 = vmatpush.bf16.msrb.mxu2 %v1877_v40  ;;  %v2076_v42 = vld [vmem:[%s3440_s3 + $0x320] sm:$0xf]  ;;  %v2153_v45 = vor.u32 %v2319_v37, %v2150_v38 }
  0x7e   :  { %51 = vadd.xlane.f32.xlu0 %v50_v34  ;;  %v2260_v34 = vld [vmem:[%s3440_s3 + $0x1cc] sm:$0xf0]  ;;  %v1756_v38 = vld [vmem:[%s3440_s3 + $0xa0] sm:$0xf] }
  0x7f   :  { %v1869_v36 = vor.u32 %v2260_v34, %v1868_v33  ;;  %v2326_v33 = vld [vmem:[%s3440_s3 + $0x3dc] sm:$0xf0]  ;;  %v2318_v34 = vld [vmem:[%s3440_s3 + $0x3a4] sm:$0xf] }
  0x80   :  { %944 = vmatpush.bf16.msrb.mxu1 %v2129_v51  ;;  %v1809_v51 = vor.u32 %v2236_v46, %v1806_v48  ;;  %974 = vmatpush.bf16.msrb.mxu3 %v1881_v43  ;;  %v2141_v40 = vor.u32 %v2326_v33, %v2140_v3  ;;  %v2145_v41 = vor.u32 %v2318_v34, %v2142_v35  ;;  %v2310_v43 = vld [vmem:[%s3440_s3 + $0x35c] sm:$0xf0]  ;;  %v2302_v46 = vld [vmem:[%s3440_s3 + $0x324] sm:$0xf]  ;;  %v2084_v48 = vld [vmem:[%s3440_s3 + $0x328] sm:$0xf] }
  0x81   :  { %935 = vmatpush.bf16.msrb.mxu0 %v1869_v36  ;;  %962 = vmatpush.bf16.msrb.mxu2 %v1813_v52  ;;  %v2077_v52 = vor.u32 %v2310_v43, %v2076_v42  ;;  %v2085_v56 = vor.u32 %v2311_v49, %v2084_v48  ;;  %v2238_v3 = vld [vmem:[%s3440_s3 + $0x124] sm:$0xf]  ;;  %v1828_v34 = vld [vmem:[%s3440_s3 + $0x128] sm:$0xf]  ;;  %v1766_v48 = vld [vmem:[%s3440_s3 + $0xe8] sm:$0xf0] }
  0x82   :  { %v1822_v33 = vld [vmem:[%s3440_s3 + $0x160] sm:$0xf0]  ;;  %v2247_v35 = vld [vmem:[%s3440_s3 + $0x164] sm:$0xf0]  ;;  %v1692_v49 = vld [vmem:[%s3440_s3 + $0x20] sm:$0xf] }
  0x83   :  { %v1825_v37 = vor.u32 %v2238_v3, %v1822_v33  ;;  %v2222_v43 = vld [vmem:[%s3440_s3 + $0xa4] sm:$0xf]  ;;  %v2297_v3 = vld [vmem:[%s3440_s3 + $0x2f4] sm:$0xf0]  ;;  %v2289_v33 = vld [vmem:[%s3440_s3 + $0x2bc] sm:$0xf] }
  0x84   :  { %945 = vmatpush.bf16.msrb.mxu1 %v2065_v1  ;;  %v1749_v1 = vor.u32 %v2229_v62, %v1748_v61  ;;  %975 = vmatpush.bf16.msrb.mxu3 %v1817_v55  ;;  %v2294_v55 = vld [vmem:[%s3440_s3 + $0x2dc] sm:$0xf0]  ;;  %v2295_v61 = vld [vmem:[%s3440_s3 + $0x2e4] sm:$0xf0]  ;;  %v2287_v62 = vld [vmem:[%s3440_s3 + $0x2ac] sm:$0xf] }
  0x85   :  { %936 = vmatpush.bf16.msrb.mxu0 %v1805_v47  ;;  %v2078_v47 = vld [vmem:[%s3440_s3 + $0x360] sm:$0xf0]  ;;  %v2021_v6 = vor.u32 %v2295_v61, %v2020_v60  ;;  %v1702_v60 = vld [vmem:[%s3440_s3 + $0x68] sm:$0xf0]  ;;  %v2156_v61 = vld [vmem:[%s3440_s3 + $0x3b0] sm:$0xf] }
  0x86   :  { %963 = vmatpush.bf16.msrb.mxu2 %v1749_v1  ;;  %v2081_v53 = vor.u32 %v2302_v46, %v2078_v47  ;;  %v2013_v1 = vor.u32 %v2294_v55, %v2012_v54  ;;  %v2231_v46 = vld [vmem:[%s3440_s3 + $0xe4] sm:$0xf0]  ;;  %v2223_v47 = vld [vmem:[%s3440_s3 + $0xac] sm:$0xf]  ;;  %v1694_v54 = vld [vmem:[%s3440_s3 + $0x60] sm:$0xf0] }
  0x88   :  { %946 = vmatpush.bf16.msrb.mxu1 %v2001_v15  ;;  %v2205_v15 = vld [vmem:[%s3440_s3 + $0x1c] sm:$0xf]  ;;  %976 = vmatpush.bf16.msrb.mxu3 %v1753_v5  ;;  %v2278_v5 = vld [vmem:[%s3440_s3 + $0x25c] sm:$0xf0] }
  0x89   :  { %937 = vmatpush.bf16.msrb.mxu0 %v1741_v59  ;;  %v1689_v17 = vor.u32 %v2205_v15, %v1686_v16  ;;  %v2014_v59 = vld [vmem:[%s3440_s3 + $0x2e0] sm:$0xf0]  ;;  %v1884_v16 = vld [vmem:[%s3440_s3 + $0x1a0] sm:$0xf] }
  0x8a   :  { %964 = vmatpush.bf16.msrb.mxu2 %v1685_v14  ;;  %v2017_v2 = vor.u32 %v2286_v58, %v2014_v59  ;;  %v1949_v14 = vor.u32 %v2278_v5, %v1948_v4  ;;  %v2215_v58 = vld [vmem:[%s3440_s3 + $0x64] sm:$0xf0]  ;;  %v2207_v59 = vld [vmem:[%s3440_s3 + $0x2c] sm:$0xf] }
  0x8c   :  { %947 = vmatpush.bf16.msrb.mxu1 %v1937_v28  ;;  %977 = vmatpush.bf16.msrb.mxu3 %v1689_v17  ;;  %v2333_v28 = vld [vmem:[%s3438_s1] ss:$0 sm:$0xff] }
  0x8d   :  { %938 = vmatpush.bf16.msrb.mxu0 %v1677_v9  ;;  %v1950_v9 = vld [vmem:[%s3440_s3 + $0x260] sm:$0xf0]  ;;  %v2262_v17 = vld [vmem:[%s3440_s3 + $0x1dc] sm:$0xf0] }
  0x8e   :  { %v1953_v15 = vor.u32 %v2270_v8, %v1950_v9  ;;  %v2166_v8 = vld [vmem:[%s3440_s3 + $0x3f8] sm:$0xf0] }
  0x90   :  { %948 = vmatpush.bf16.msrb.mxu1 %v1873_v39 }
  0x94   :  { %949 = vmatpush.bf16.msrb.mxu1 %v1809_v51  ;;  %v2086_v51 = vld [vmem:[%s3440_s3 + $0x368] sm:$0xf0] }
  0x95   :  { %v2089_v57 = vor.u32 %v2303_v50, %v2086_v51 }
  0x98   :  { %950 = vmatpush.bf16.msrb.mxu1 %v1745_v63  ;;  %v2022_v63 = vld [vmem:[%s3440_s3 + $0x2e8] sm:$0xf0] }
  0x99   :  { %v2025_v7 = vor.u32 %v2287_v62, %v2022_v63  ;;  %v2328_v62 = vld [vmem:[%s3440_s3 + $0x3ec] sm:$0xf0]  ;;  %v2320_v63 = vld [vmem:[%s3440_s3 + $0x3b4] sm:$0xf] }
  0x9c   :  { %951 = vmatpush.bf16.msrb.mxu1 %v1681_v13  ;;  %v1958_v13 = vld [vmem:[%s3440_s3 + $0x268] sm:$0xf0] }
  0xf1   :  { %v52_v18 = vpop.xlane.xlu0 %51 }
  0xf2   :  { %v53_v19 = vmul.f32 %v52_v18, %v2623_v24  ;;  %v2334_v24 = vld [vmem:[%s3439_s2] ss:$0 sm:$0xff]  ;;  %v1957_v18 = vor.u32 %v2279_v11, %v1956_v10  ;;  %v1705_v10 = vor.u32 %v2207_v59, %v1702_v60  ;;  %v2157_v11 = vor.u32 %v2328_v62, %v2156_v61  ;;  %v1836_v60 = vld [vmem:[%s3440_s3 + $0x130] sm:$0xf] }
  0xf3   :  { %v2248_v61 = vld [vmem:[%s3440_s3 + $0x16c] sm:$0xf0] }
  0xf4   :  { %v54_v20 = vadd.f32 1e-06, %v53_v19  ;;  %v1961_v19 = vor.u32 %v2271_v12, %v1958_v13  ;;  %v2092_v13 = vld [vmem:[%s3440_s3 + $0x330] sm:$0xf] }
  0xf6   :  { %2337 = vrsqrt.f32 %v54_v20  ;;  %vm61_vm3 = vweird.f32 %v54_v20 }
  0xfc   :  { %v2338_v21 = vpop.eup %2337 }
  0xfd   :  { %v56_v22 = vmul.f32 %v2338_v21, %v54_v20  ;;  %vm62_vm2 = vweird.f32 %v2338_v21  ;;  %v2254_v20 = vld [vmem:[%s3440_s3 + $0x1a4] sm:$0xf] }
  0xfe   :  { %vm63_vm4 = vmor %vm61_vm3, %vm62_vm2 }
  0xff   :  { %v57_v23 = vmul.f32 %v2338_v21, %v56_v22  ;;  %v1892_v22 = vld [vmem:[%s3440_s3 + $0x1a8] sm:$0xf] }
 0x101   :  { %v58_v25 = vmul.f32 0.5, %v57_v23  ;;  %v2263_v23 = vld [vmem:[%s3440_s3 + $0x1e4] sm:$0xf0] }
 0x103   :  { %v59_v26 = vsub.f32 1.5, %v58_v25  ;;  %v2255_v25 = vld [vmem:[%s3440_s3 + $0x1ac] sm:$0xf] }
 0x105   :  { %v60_v27 = vmul.f32 %v2338_v21, %v59_v26  ;;  %v1894_v26 = vld [vmem:[%s3440_s3 + $0x1e8] sm:$0xf0] }
 0x107   :  { %v64_v29 = vsel %vm63_vm4, %v2338_v21, %v60_v27  ;;  %v1886_v21 = vld [vmem:[%s3440_s3 + $0x1e0] sm:$0xf0]  ;;  %v1885_v27 = vor.u32 %v2262_v17, %v1884_v16  ;;  %v2304_v17 = vld [vmem:[%s3440_s3 + $0x334] sm:$0xf] }
 0x108   :  { %v65_v30 = vmul.f32 %v64_v29, %v2633_v32  ;;  %v2148_v32 = vld [vmem:[%s3440_s3 + $0x3a8] sm:$0xf]  ;;  %v1820_v29 = vld [vmem:[%s3440_s3 + $0x120] sm:$0xf] }
 0x109   :  { %v2149_v44 = vor.u32 %v2327_v0, %v2148_v32  ;;  %v2239_v32 = vld [vmem:[%s3440_s3 + $0x12c] sm:$0xf] }
 0x10a   :  { %v69_v31 = vmul.f32 %v2333_v28, %v65_v30  ;;  %v1889_v28 = vor.u32 %v2254_v20, %v1886_v21  ;;  %v1893_v30 = vor.u32 %v2263_v23, %v1892_v22  ;;  %v2313_v20 = vld [vmem:[%s3440_s3 + $0x374] sm:$0xf0]  ;;  %v2305_v21 = vld [vmem:[%s3440_s3 + $0x33c] sm:$0xf] }
 0x10b   :  { %v2102_v22 = vld [vmem:[%s3440_s3 + $0x378] sm:$0xf0] }
 0x10c   :  { %v73_v36 = vadd.f32 %v2334_v24, %v69_v31  ;;  %v2246_v24 = vld [vmem:[%s3440_s3 + $0x15c] sm:$0xf0]  ;;  %v1897_v31 = vor.u32 %v2255_v25, %v1894_v26  ;;  %v2028_v26 = vld [vmem:[%s3440_s3 + $0x2b0] sm:$0xf] }
 0x10d   :  { %v1821_v0 = vor.u32 %v2246_v24, %v1820_v29  ;;  %v2105_v29 = vor.u32 %v2305_v21, %v2102_v22  ;;  %v2288_v24 = vld [vmem:[%s3440_s3 + $0x2b4] sm:$0xf]  ;;  %v1708_v22 = vld [vmem:[%s3440_s3 + $0x30] sm:$0xf] }
 0x10e   :  { %v2886_v39 = vpack.c.bf16 %v73_v36, %v73_v36  ;;  %v1830_v36 = vld [vmem:[%s3440_s3 + $0x168] sm:$0xf0] }
 0x10f   :  { %v1833_v42 = vor.u32 %v2239_v32, %v1830_v36  ;;  %v1964_v36 = vld [vmem:[%s3440_s3 + $0x230] sm:$0xf] }
 0x110   :  { %887 = vmatmul.bf16.vlgmr.msra.gmra.mxu0 %v2886_v39  ;;  %900 = vmatmul.bf16.vlgmr.msra.gmra.mxu1 %v2886_v39 }
 0x111   :  { %913 = vmatmul.bf16.vlgmr.msra.gmra.mxu2 %v2886_v39  ;;  %926 = vmatmul.bf16.vlgmr.msra.gmra.mxu3 %v2886_v39 }
 0x112   :  { %983 = vmatpush.bf16.msra.mxu0 %v2141_v40  ;;  %996 = vmatpush.bf16.msra.mxu1 %v2145_v41  ;;  %v2230_v40 = vld [vmem:[%s3440_s3 + $0xdc] sm:$0xf0]  ;;  %v1829_v41 = vor.u32 %v2247_v35, %v1828_v34  ;;  %v2038_v34 = vld [vmem:[%s3440_s3 + $0x2f8] sm:$0xf0] }
 0x113   :  { %1009 = vmatpush.bf16.msra.mxu2 %v2149_v44  ;;  %1022 = vmatpush.bf16.msra.mxu3 %v2153_v45  ;;  %v1758_v44 = vld [vmem:[%s3440_s3 + $0xe0] sm:$0xf0]  ;;  %v1764_v45 = vld [vmem:[%s3440_s3 + $0xa8] sm:$0xf]  ;;  %v1757_v50 = vor.u32 %v2230_v40, %v1756_v38  ;;  %v2041_v38 = vor.u32 %v2289_v33, %v2038_v34  ;;  %v2272_v40 = vld [vmem:[%s3440_s3 + $0x234] sm:$0xf] }
 0x114   :  { %v1761_v51 = vor.u32 %v2222_v43, %v1758_v44  ;;  %v1765_v55 = vor.u32 %v2231_v46, %v1764_v45  ;;  %v2281_v43 = vld [vmem:[%s3440_s3 + $0x274] sm:$0xf0]  ;;  %v2273_v44 = vld [vmem:[%s3440_s3 + $0x23c] sm:$0xf] }
 0x115   :  { %v1974_v45 = vld [vmem:[%s3440_s3 + $0x278] sm:$0xf0] }
 0x116   :  { %984 = vmatpush.bf16.msra.mxu0 %v2077_v52  ;;  %997 = vmatpush.bf16.msra.mxu1 %v2081_v53  ;;  %v2214_v52 = vld [vmem:[%s3440_s3 + $0x5c] sm:$0xf0]  ;;  %v2206_v53 = vld [vmem:[%s3440_s3 + $0x24] sm:$0xf] }
 0x117   :  { %1010 = vmatpush.bf16.msra.mxu2 %v2085_v56  ;;  %1023 = vmatpush.bf16.msra.mxu3 %v2089_v57  ;;  %v1769_v56 = vor.u32 %v2223_v47, %v1766_v48  ;;  %v1700_v57 = vld [vmem:[%s3440_s3 + $0x28] sm:$0xf]  ;;  %v1693_v4 = vor.u32 %v2214_v52, %v1692_v49  ;;  %v1697_v5 = vor.u32 %v2206_v53, %v1694_v54  ;;  %v1900_v48 = vld [vmem:[%s3440_s3 + $0x1b0] sm:$0xf]  ;;  %v2256_v52 = vld [vmem:[%s3440_s3 + $0x1b4] sm:$0xf] }
 0x118   :  { %v1701_v9 = vor.u32 %v2215_v58, %v1700_v57  ;;  %v2264_v49 = vld [vmem:[%s3440_s3 + $0x1ec] sm:$0xf0]  ;;  %v1902_v53 = vld [vmem:[%s3440_s3 + $0x1f0] sm:$0xf0]  ;;  %v1908_v54 = vld [vmem:[%s3440_s3 + $0x1b8] sm:$0xf] }
 0x119   :  { %v1910_v57 = vld [vmem:[%s3440_s3 + $0x1f8] sm:$0xf0]  ;;  %v1901_v58 = vor.u32 %v2264_v49, %v1900_v48  ;;  %v1905_v59 = vor.u32 %v2256_v52, %v1902_v53  ;;  %v1143_v48 = vld [vmem:[%s3443_s6 + $0x28] sm:$0xff]  ;;  %v1142_v49 = vld [vmem:[%s3443_s6 + $0x20] sm:$0xff] }
 0x11a   :  { %985 = vmatpush.bf16.msra.mxu0 %v2013_v1  ;;  %998 = vmatpush.bf16.msra.mxu1 %v2017_v2  ;;  %v2158_v1 = vld [vmem:[%s3440_s3 + $0x3f0] sm:$0xf0]  ;;  %v2164_v2 = vld [vmem:[%s3440_s3 + $0x3b8] sm:$0xf]  ;;  %v1163_v53 = vld [vmem:[%s3443_s6 + $0xc8] sm:$0x3] }
 0x11b   :  { %1011 = vmatpush.bf16.msra.mxu2 %v2021_v6  ;;  %1024 = vmatpush.bf16.msra.mxu3 %v2025_v7  ;;  %v2329_v6 = vld [vmem:[%s3440_s3 + $0x3f4] sm:$0xf0]  ;;  %v2321_v7 = vld [vmem:[%s3440_s3 + $0x3bc] sm:$0xf]  ;;  %v2161_v12 = vor.u32 %v2320_v63, %v2158_v1  ;;  %v2240_v1 = vld [vmem:[%s3440_s3 + $0x134] sm:$0xf] }
 0x11c   :  { %v2169_v16 = vor.u32 %v2321_v7, %v2166_v8  ;;  %v1846_v7 = vld [vmem:[%s3440_s3 + $0x178] sm:$0xf0]  ;;  %v1837_v8 = vor.u32 %v2248_v61, %v1836_v60  ;;  %v1165_v52 = vld [vmem:[%s3443_s6 + $0xd8] sm:$0x3]  ;;  %v1167_v61 = vld [vmem:[%s3443_s6 + $0xe8] sm:$0x3] }
 0x11d   :  { %v1169_v60 = vld [vmem:[%s3443_s6 + $0xf8] sm:$0x3] }
 0x11e   :  { %986 = vmatpush.bf16.msra.mxu0 %v1949_v14  ;;  %999 = vmatpush.bf16.msra.mxu1 %v1953_v15  ;;  %v2312_v14 = vld [vmem:[%s3440_s3 + $0x36c] sm:$0xf0]  ;;  %v2165_v15 = vor.u32 %v2329_v6, %v2164_v2  ;;  %v1838_v2 = vld [vmem:[%s3440_s3 + $0x170] sm:$0xf0]  ;;  %v2241_v6 = vld [vmem:[%s3440_s3 + $0x13c] sm:$0xf] }
 0x11f   :  { %1012 = vmatpush.bf16.msra.mxu2 %v1957_v18  ;;  %1025 = vmatpush.bf16.msra.mxu3 %v1961_v19  ;;  %v2094_v18 = vld [vmem:[%s3440_s3 + $0x370] sm:$0xf0]  ;;  %v2100_v19 = vld [vmem:[%s3440_s3 + $0x338] sm:$0xf]  ;;  %v2093_v23 = vor.u32 %v2312_v14, %v2092_v13  ;;  %v1849_v13 = vor.u32 %v2241_v6, %v1846_v7 }
 0x120   :  { %939 = vmatmul.bf16.vlgmr.msrb.gmra.mxu0 %v2886_v39  ;;  %952 = vmatmul.bf16.vlgmr.msrb.gmra.mxu1 %v2886_v39  ;;  %v2097_v25 = vor.u32 %v2304_v17, %v2094_v18  ;;  %v2224_v14 = vld [vmem:[%s3440_s3 + $0xb4] sm:$0xf]  ;;  %v2233_v17 = vld [vmem:[%s3440_s3 + $0xf4] sm:$0xf0]  ;;  %v2225_v18 = vld [vmem:[%s3440_s3 + $0xbc] sm:$0xf] }
 0x121   :  { %965 = vmatmul.bf16.vlgmr.msrb.gmra.mxu2 %v2886_v39  ;;  %978 = vmatmul.bf16.vlgmr.msrb.gmra.mxu3 %v2886_v39 }
 0x122   :  { %987 = vmatpush.bf16.msra.mxu0 %v1885_v27  ;;  %1000 = vmatpush.bf16.msra.mxu1 %v1889_v28  ;;  %v2296_v27 = vld [vmem:[%s3440_s3 + $0x2ec] sm:$0xf0]  ;;  %v2101_v28 = vor.u32 %v2313_v20, %v2100_v19  ;;  %v1782_v19 = vld [vmem:[%s3440_s3 + $0xf8] sm:$0xf0] }
 0x123   :  { %1013 = vmatpush.bf16.msra.mxu2 %v1893_v30  ;;  %1026 = vmatpush.bf16.msra.mxu3 %v1897_v31  ;;  %v2030_v30 = vld [vmem:[%s3440_s3 + $0x2f0] sm:$0xf0]  ;;  %v2036_v31 = vld [vmem:[%s3440_s3 + $0x2b8] sm:$0xf]  ;;  %v2029_v35 = vor.u32 %v2296_v27, %v2028_v26  ;;  %v1785_v26 = vor.u32 %v2225_v18, %v1782_v19 }
 0x124   :  { %v2033_v32 = vor.u32 %v2288_v24, %v2030_v30  ;;  %v2208_v27 = vld [vmem:[%s3440_s3 + $0x34] sm:$0xf]  ;;  %v2217_v24 = vld [vmem:[%s3440_s3 + $0x74] sm:$0xf0]  ;;  %v2209_v30 = vld [vmem:[%s3440_s3 + $0x3c] sm:$0xf] }
 0x126   :  { %988 = vmatpush.bf16.msra.mxu0 %v1821_v0  ;;  %1001 = vmatpush.bf16.msra.mxu1 %v1825_v37  ;;  %v2280_v0 = vld [vmem:[%s3440_s3 + $0x26c] sm:$0xf0]  ;;  %v2037_v37 = vor.u32 %v2297_v3, %v2036_v31  ;;  %v1718_v31 = vld [vmem:[%s3440_s3 + $0x78] sm:$0xf0] }
 0x127   :  { %1014 = vmatpush.bf16.msra.mxu2 %v1829_v41  ;;  %1027 = vmatpush.bf16.msra.mxu3 %v1833_v42  ;;  %v1966_v41 = vld [vmem:[%s3440_s3 + $0x270] sm:$0xf0]  ;;  %v1972_v42 = vld [vmem:[%s3440_s3 + $0x238] sm:$0xf]  ;;  %v1965_v46 = vor.u32 %v2280_v0, %v1964_v36  ;;  %v1155_v0 = vld [vmem:[%s3443_s6 + $0x88] sm:$0x3] }
 0x128   :  { %v1969_v47 = vor.u32 %v2272_v40, %v1966_v41  ;;  %v1157_v36 = vld [vmem:[%s3443_s6 + $0x98] sm:$0x3]  ;;  %v1139_v41 = vld [vmem:[%s3443_s6 + $0x8] sm:$0xff] }
 0x129   :  { %v1141_v40 = vld [vmem:[%s3443_s6 + $0x18] sm:$0xff] }
 0x12a   :  { %989 = vmatpush.bf16.msra.mxu0 %v1757_v50  ;;  %1002 = vmatpush.bf16.msra.mxu1 %v1761_v51  ;;  %v1973_v50 = vor.u32 %v2281_v43, %v1972_v42  ;;  %v1977_v51 = vor.u32 %v2273_v44, %v1974_v45  ;;  %v1138_v42 = vld [vmem:[%s3443_s6] sm:$0xff]  ;;  %v1160_v43 = vld [vmem:[%s3443_s6 + $0xb0] sm:$0x3]  ;;  %v1159_v44 = vld [vmem:[%s3443_s6 + $0xa8] sm:$0x3] }
 0x12b   :  { %1015 = vmatpush.bf16.msra.mxu2 %v1765_v55  ;;  %1028 = vmatpush.bf16.msra.mxu3 %v1769_v56  ;;  %v2265_v55 = vld [vmem:[%s3440_s3 + $0x1f4] sm:$0xf0]  ;;  %v2257_v56 = vld [vmem:[%s3440_s3 + $0x1bc] sm:$0xf]  ;;  %v1158_v45 = vld [vmem:[%s3443_s6 + $0xa0] sm:$0x3] }
 0x12c   :  { %v1909_v62 = vor.u32 %v2265_v55, %v1908_v54  ;;  %v1913_v63 = vor.u32 %v2257_v56, %v1910_v57  ;;  %v1162_v54 = vld [vmem:[%s3443_s6 + $0xc0] sm:$0x3]  ;;  %v1148_v55 = vld [vmem:[%s3443_s6 + $0x50] sm:$0xff]  ;;  %v1149_v56 = vld [vmem:[%s3443_s6 + $0x58] sm:$0xff] }
 0x12d   :  { %v1147_v57 = vld [vmem:[%s3443_s6 + $0x48] sm:$0xff] }
 0x12e   :  { %990 = vmatpush.bf16.msra.mxu0 %v1693_v4  ;;  %1003 = vmatpush.bf16.msra.mxu1 %v1697_v5  ;;  %v1844_v4 = vld [vmem:[%s3440_s3 + $0x138] sm:$0xf] }
 0x12f   :  { %1016 = vmatpush.bf16.msra.mxu2 %v1701_v9  ;;  %1029 = vmatpush.bf16.msra.mxu3 %v1705_v10  ;;  %v2249_v5 = vld [vmem:[%s3440_s3 + $0x174] sm:$0xf0]  ;;  %v1841_v9 = vor.u32 %v2240_v1, %v1838_v2  ;;  %v1772_v10 = vld [vmem:[%s3440_s3 + $0xb0] sm:$0xf]  ;;  %v1151_v2 = vld [vmem:[%s3443_s6 + $0x68] sm:$0xff] }
 0x130   :  { %v1153_v1 = vld [vmem:[%s3443_s6 + $0x78] sm:$0xff] }
 0x131   :  { %991 = vmatmul.bf16.vlgmr.msra.gmra.mxu0 %v2886_v39  ;;  %1004 = vmatmul.bf16.vlgmr.msra.gmra.mxu1 %v2886_v39 }
 0x132   :  { %1035 = vmatpush.bf16.msrb.mxu0 %v2157_v11  ;;  %1048 = vmatpush.bf16.msrb.mxu1 %v2161_v12  ;;  %v2232_v11 = vld [vmem:[%s3440_s3 + $0xec] sm:$0xf0]  ;;  %v1845_v12 = vor.u32 %v2249_v5, %v1844_v4  ;;  %v1150_v4 = vld [vmem:[%s3443_s6 + $0x60] sm:$0xff] }
 0x133   :  { %1061 = vmatpush.bf16.msrb.mxu2 %v2165_v15  ;;  %1074 = vmatpush.bf16.msrb.mxu3 %v2169_v16  ;;  %v1774_v15 = vld [vmem:[%s3440_s3 + $0xf0] sm:$0xf0]  ;;  %v1780_v16 = vld [vmem:[%s3440_s3 + $0xb8] sm:$0xf]  ;;  %v1773_v20 = vor.u32 %v2232_v11, %v1772_v10  ;;  %v203_v5 = vld [vmem:[%s3441_s4] sm:$0xff] }
 0x134   :  { %1017 = vmatmul.bf16.vlgmr.msra.gmra.mxu2 %v2886_v39  ;;  %1030 = vmatmul.bf16.vlgmr.msra.gmra.mxu3 %v2886_v39  ;;  %v1777_v21 = vor.u32 %v2224_v14, %v1774_v15  ;;  %v208_v7 = vperm.slane %v203_v5, 1  ;;  %v209_v10 = vperm.slane %v203_v5, 2  ;;  %v210_v11 = vperm.slane %v203_v5, 3 }
 0x136   :  { %1036 = vmatpush.bf16.msrb.mxu0 %v2093_v23  ;;  %1049 = vmatpush.bf16.msrb.mxu1 %v2097_v25  ;;  %v2216_v23 = vld [vmem:[%s3440_s3 + $0x6c] sm:$0xf0]  ;;  %v1781_v25 = vor.u32 %v2233_v17, %v1780_v16 }
 0x137   :  { %1062 = vmatpush.bf16.msrb.mxu2 %v2101_v28  ;;  %1075 = vmatpush.bf16.msrb.mxu3 %v2105_v29  ;;  %v1710_v28 = vld [vmem:[%s3440_s3 + $0x70] sm:$0xf0]  ;;  %v1716_v29 = vld [vmem:[%s3440_s3 + $0x38] sm:$0xf]  ;;  %v1709_v3 = vor.u32 %v2216_v23, %v1708_v22 }
 0x138   :  { %v1713_v33 = vor.u32 %v2208_v27, %v1710_v28  ;;  %v1717_v34 = vor.u32 %v2217_v24, %v1716_v29  ;;  %v212_v24 = vperm.slane %v203_v5, 5 }
 0x13a   :  { %1037 = vmatpush.bf16.msrb.mxu0 %v2029_v35  ;;  %1050 = vmatpush.bf16.msrb.mxu1 %v2033_v32  ;;  %v1721_v35 = vor.u32 %v2209_v30, %v1718_v31  ;;  %v1156_v32 = vld [vmem:[%s3443_s6 + $0x90] sm:$0x3] }
 0x13b   :  { %1063 = vmatpush.bf16.msrb.mxu2 %v2037_v37  ;;  %1076 = vmatpush.bf16.msrb.mxu3 %v2041_v38  ;;  %v1154_v37 = vld [vmem:[%s3443_s6 + $0x80] sm:$0x3]  ;;  %v1140_v38 = vld [vmem:[%s3443_s6 + $0x10] sm:$0xff] }
 0x13e   :  { %1038 = vmatpush.bf16.msrb.mxu0 %v1965_v46  ;;  %1051 = vmatpush.bf16.msrb.mxu1 %v1969_v47  ;;  %v1144_v46 = vld [vmem:[%s3443_s6 + $0x30] sm:$0xff]  ;;  %v1145_v47 = vld [vmem:[%s3443_s6 + $0x38] sm:$0xff] }
 0x13f   :  { %1064 = vmatpush.bf16.msrb.mxu2 %v1973_v50  ;;  %1077 = vmatpush.bf16.msrb.mxu3 %v1977_v51  ;;  %v1137_v50 = vld [vmem:[%s3442_s5] sm:$0x3]  ;;  %v1164_v51 = vld [vmem:[%s3443_s6 + $0xd0] sm:$0x3] }
 0x142   :  { %1039 = vmatpush.bf16.msrb.mxu0 %v1901_v58  ;;  %1052 = vmatpush.bf16.msrb.mxu1 %v1905_v59  ;;  %v1146_v58 = vld [vmem:[%s3443_s6 + $0x40] sm:$0xff]  ;;  %v1168_v59 = vld [vmem:[%s3443_s6 + $0xf0] sm:$0x3] }
 0x143   :  { %1065 = vmatpush.bf16.msrb.mxu2 %v1909_v62  ;;  %1078 = vmatpush.bf16.msrb.mxu3 %v1913_v63  ;;  %v1166_v62 = vld [vmem:[%s3443_s6 + $0xe0] sm:$0x3]  ;;  %v1152_v63 = vld [vmem:[%s3443_s6 + $0x70] sm:$0xff] }
 0x146   :  { %1040 = vmatpush.bf16.msrb.mxu0 %v1837_v8  ;;  %1053 = vmatpush.bf16.msrb.mxu1 %v1841_v9 }
 0x147   :  { %1066 = vmatpush.bf16.msrb.mxu2 %v1845_v12  ;;  %1079 = vmatpush.bf16.msrb.mxu3 %v1849_v13  ;;  %v207_v12 = vperm.slane %v203_v5, 0 }
 0x14a   :  { %1041 = vmatpush.bf16.msrb.mxu0 %v1773_v20  ;;  %1054 = vmatpush.bf16.msrb.mxu1 %v1777_v21 }
 0x14b   :  { %1067 = vmatpush.bf16.msrb.mxu2 %v1781_v25  ;;  %1080 = vmatpush.bf16.msrb.mxu3 %v1785_v26 }
 0x14e   :  { %1042 = vmatpush.bf16.msrb.mxu0 %v1709_v3  ;;  %1055 = vmatpush.bf16.msrb.mxu1 %v1713_v33  ;;  %v213_v3 = vperm.slane %v203_v5, 6  ;;  %v214_v33 = vperm.slane %v203_v5, 7 }
 0x14f   :  { %1068 = vmatpush.bf16.msrb.mxu2 %v1717_v34  ;;  %1081 = vmatpush.bf16.msrb.mxu3 %v1721_v35  ;;  %v211_v34 = vperm.slane %v203_v5, 4 }
 0x151   :  { %1043 = vmatmul.bf16.vlgmr.msrb.gmra.mxu0 %v2886_v39  ;;  %1056 = vmatmul.bf16.vlgmr.msrb.gmra.mxu1 %v2886_v39 }
 0x152   :  { %1069 = vmatmul.bf16.vlgmr.msrb.gmra.mxu2 %v2886_v39  ;;  %1082 = vmatmul.bf16.vlgmr.msrb.gmra.mxu3 %v2886_v39  ;;  %v1161_v39 = vld [vmem:[%s3443_s6 + $0xb8] sm:$0x3] }
 0x153   :  { %2174 = vmatpush.msk.msra.mxu2 %vm36_vm0, %v1156_v32  ;;  %2176 = vmatpush.msk.msra.mxu3 %vm36_vm0, %v1157_v36 }
 0x154   :  { %2172 = vmatpush.msk.msra.mxu1 %vm36_vm0, %v1155_v0  ;;  %2170 = vmatpush.msk.msra.mxu0 %vm36_vm0, %v1154_v37 }
 0x155   :  { %1313 = vmatpush.msra.mxu2 %v1140_v38  ;;  %1333 = vmatpush.msra.mxu3 %v1141_v40 }
 0x156   :  { %1293 = vmatpush.msra.mxu1 %v1139_v41  ;;  %1273 = vmatpush.msra.mxu0 %v1138_v42 }
 0x157   :  { %2182 = vmatpush.msk.msrb.mxu2 %vm36_vm0, %v1160_v43  ;;  %2184 = vmatpush.msk.msrb.mxu3 %vm36_vm0, %v1161_v39 }
 0x158   :  { %2180 = vmatpush.msk.msrb.mxu1 %vm36_vm0, %v1159_v44  ;;  %2178 = vmatpush.msk.msrb.mxu0 %vm36_vm0, %v1158_v45 }
 0x159   :  { %1393 = vmatpush.msrb.mxu2 %v1144_v46  ;;  %1413 = vmatpush.msrb.mxu3 %v1145_v47 }
 0x15a   :  { %1373 = vmatpush.msrb.mxu1 %v1143_v48  ;;  %1353 = vmatpush.msrb.mxu0 %v1142_v49  ;;  %v204_v48 = vld [vmem:[%s3441_s4 + $0x8] sm:$0xff]  ;;  %s2392_s4 = smov [#allocation2]  }
 0x15b   :  { %s1631_s2 = sshll.u32 %s2392_s4, 4  ;;  %s1632_s2 = int_to_ptr.vmem [resolvable:$true] %s1631_s2 }
 0x161   :  { %2173 = vmatmul.msk.f32.vlgmr.msra.gmra.mxu1 %vm1206_vm5, %v1137_v50  ;;  %2171 = vmatmul.msk.f32.vlgmr.msra.gmra.mxu0 %vm1206_vm5, %v1137_v50 }
 0x162   :  { %2175 = vmatmul.msk.f32.vlgmr.msra.gmra.mxu2 %vm1206_vm5, %v1137_v50  ;;  %2177 = vmatmul.msk.f32.vlgmr.msra.gmra.mxu3 %vm1206_vm5, %v1137_v50 }
 0x163   :  { %2190 = vmatpush.msk.msra.mxu2 %vm36_vm0, %v1164_v51  ;;  %2192 = vmatpush.msk.msra.mxu3 %vm36_vm0, %v1165_v52 }
 0x164   :  { %2188 = vmatpush.msk.msra.mxu1 %vm36_vm0, %v1163_v53  ;;  %2186 = vmatpush.msk.msra.mxu0 %vm36_vm0, %v1162_v54  ;;  %v217_v53 = vperm.slane %v204_v48, 2  ;;  %v218_v54 = vperm.slane %v204_v48, 3 }
 0x165   :  { %1473 = vmatpush.msra.mxu2 %v1148_v55  ;;  %1493 = vmatpush.msra.mxu3 %v1149_v56  ;;  %v215_v55 = vperm.slane %v204_v48, 0 }
 0x166   :  { %1453 = vmatpush.msra.mxu1 %v1147_v57  ;;  %1433 = vmatpush.msra.mxu0 %v1146_v58 }
 0x169   :  { %2181 = vmatmul.msk.f32.vlgmr.msrb.gmra.mxu1 %vm1206_vm5, %v1137_v50  ;;  %2179 = vmatmul.msk.f32.vlgmr.msrb.gmra.mxu0 %vm1206_vm5, %v1137_v50 }
 0x16a   :  { %2183 = vmatmul.msk.f32.vlgmr.msrb.gmra.mxu2 %vm1206_vm5, %v1137_v50  ;;  %2185 = vmatmul.msk.f32.vlgmr.msrb.gmra.mxu3 %vm1206_vm5, %v1137_v50 }
 0x16b   :  { %2198 = vmatpush.msk.msrb.mxu2 %vm36_vm0, %v1168_v59  ;;  %2200 = vmatpush.msk.msrb.mxu3 %vm36_vm0, %v1169_v60 }
 0x16c   :  { %2196 = vmatpush.msk.msrb.mxu1 %vm36_vm0, %v1167_v61  ;;  %2194 = vmatpush.msk.msrb.mxu0 %vm36_vm0, %v1166_v62 }
 0x16d   :  { %1553 = vmatpush.msrb.mxu2 %v1152_v63  ;;  %1573 = vmatpush.msrb.mxu3 %v1153_v1 }
 0x16e   :  { %1533 = vmatpush.msrb.mxu1 %v1151_v2  ;;  %1513 = vmatpush.msrb.mxu0 %v1150_v4 }
 0x171   :  { %2189 = vmatmul.msk.f32.vlgmr.msra.gmra.mxu1 %vm1206_vm5, %v1137_v50  ;;  %2187 = vmatmul.msk.f32.vlgmr.msra.gmra.mxu0 %vm1206_vm5, %v1137_v50 }
 0x172   :  { %2191 = vmatmul.msk.f32.vlgmr.msra.gmra.mxu2 %vm1206_vm5, %v1137_v50  ;;  %2193 = vmatmul.msk.f32.vlgmr.msra.gmra.mxu3 %vm1206_vm5, %v1137_v50 }
 0x179   :  { %2197 = vmatmul.msk.f32.vlgmr.msrb.gmra.mxu1 %vm1206_vm5, %v1137_v50  ;;  %2195 = vmatmul.msk.f32.vlgmr.msrb.gmra.mxu0 %vm1206_vm5, %v1137_v50 }
 0x17a   :  { %2199 = vmatmul.msk.f32.vlgmr.msrb.gmra.mxu2 %vm1206_vm5, %v1137_v50  ;;  %2201 = vmatmul.msk.f32.vlgmr.msrb.gmra.mxu3 %vm1206_vm5, %v1137_v50  ;;  %v216_v50 = vperm.slane %v204_v48, 1 }
 0x18d   :  { %v888_v6 = vpop.f32.mrf.mxu0  ;;  %v901_v8 = vpop.f32.mrf.mxu1 }
 0x18e   :  { %v902_v9 = vadd.f32 %v901_v8, %v208_v7  ;;  %v889_v20 = vadd.f32 %v888_v6, %v207_v12 }
 0x190   :  { %v1103_v15 = vrot.slane %v902_v9, 6 }
 0x192   :  { %v1115_v23 = vsel %vm36_vm0, %v889_v20, %v1103_v15  ;;  %v219_v15 = vperm.slane %v204_v48, 4 }
 0x194   :  { %v914_v13 = vpop.f32.mrf.mxu2  ;;  %v927_v14 = vpop.f32.mrf.mxu3 }
 0x195   :  { %v915_v16 = vadd.f32 %v914_v13, %v209_v10  ;;  %v928_v17 = vadd.f32 %v927_v14, %v210_v11  ;;  %v890_v18 = vpop.f32.mrf.mxu0  ;;  %v903_v19 = vpop.f32.mrf.mxu1  ;;  %v220_v10 = vperm.slane %v204_v48, 5  ;;  %v221_v13 = vperm.slane %v204_v48, 6 }
 0x196   :  { %v222_v14 = vperm.slane %v204_v48, 7 }
 0x197   :  { %v1104_v21 = vrot.slane %v915_v16, 4  ;;  %v1105_v22 = vrot.slane %v928_v17, 2 }
 0x199   :  { %v1117_v25 = vsel %vm1116_vm6, %v1104_v21, %v1105_v22 }
 0x19a   :  { %v1119_v26 = vsel %vm1118_vm7, %v1115_v23, %v1117_v25 }
 0x19b   :  { %1133 = vst [vmem:[#allocation2] sm:$0xff] %v1119_v26 }
 0x19c   :  { %v916_v27 = vpop.f32.mrf.mxu2  ;;  %v929_v28 = vpop.f32.mrf.mxu3 }
 0x19d   :  { %v940_v29 = vpop.f32.mrf.mxu0  ;;  %v953_v30 = vpop.f32.mrf.mxu1  ;;  %v1170_v27 = vld [vmem:[%s3444_s7] sm:$0xff] }
 0x19e   :  { %v954_v31 = vadd.f32 %v953_v30, %v212_v24  ;;  %v941_v41 = vadd.f32 %v940_v29, %v211_v34  ;;  %v1175_v30 = vperm.slane %v1170_v27, 1 }
 0x1a0   :  { %v1106_v36 = vrot.slane %v954_v31, 6 }
 0x1a2   :  { %v1120_v39 = vsel %vm36_vm0, %v941_v41, %v1106_v36  ;;  %v1176_v36 = vperm.slane %v1170_v27, 2 }
 0x1a4   :  { %v966_v35 = vpop.f32.mrf.mxu2  ;;  %v979_v32 = vpop.f32.mrf.mxu3 }
 0x1a5   :  { %v967_v0 = vadd.f32 %v966_v35, %v213_v3  ;;  %v980_v37 = vadd.f32 %v979_v32, %v214_v33  ;;  %v942_v38 = vpop.f32.mrf.mxu0  ;;  %v955_v40 = vpop.f32.mrf.mxu1  ;;  %v1174_v32 = vperm.slane %v1170_v27, 0 }
 0x1a6   :  { %v1179_v40 = vperm.slane %v1170_v27, 5 }
 0x1a7   :  { %v1107_v42 = vrot.slane %v967_v0, 4  ;;  %v1108_v43 = vrot.slane %v980_v37, 2  ;;  %v1177_v0 = vperm.slane %v1170_v27, 3 }
 0x1a9   :  { %v1121_v44 = vsel %vm1116_vm6, %v1107_v42, %v1108_v43 }
 0x1aa   :  { %v1122_v45 = vsel %vm1118_vm7, %v1120_v39, %v1121_v44 }
 0x1ab   :  { %1134 = vst [vmem:[#allocation2 + $0x8] sm:$0xff] %v1122_v45 }
 0x1ac   :  { %v968_v46 = vpop.f32.mrf.mxu2  ;;  %v981_v47 = vpop.f32.mrf.mxu3 }
 0x1ad   :  { %v1178_v46 = vperm.slane %v1170_v27, 4 }
 0x1ae   :  { %v992_v49 = vpop.f32.mrf.mxu0  ;;  %v1005_v51 = vpop.f32.mrf.mxu1 }
 0x1af   :  { %v1006_v52 = vadd.f32 %v1005_v51, %v216_v50  ;;  %v993_v63 = vadd.f32 %v992_v49, %v215_v55  ;;  %v1171_v51 = vld [vmem:[%s3444_s7 + $0x8] sm:$0xff]  ;;  %s2393_s7 = smov [#allocation4]  }
 0x1b0   :  { %s1642_s19 = sshll.u32 %s2393_s7, 4  ;;  %s1643_s19 = int_to_ptr.vmem [resolvable:$true] %s1642_s19 }
 0x1b1   :  { %v1109_v58 = vrot.slane %v1006_v52, 6 }
 0x1b3   :  { %v1123_v4 = vsel %vm36_vm0, %v993_v63, %v1109_v58  ;;  %v1183_v58 = vperm.slane %v1171_v51, 1 }
 0x1b6   :  { %v994_v61 = vpop.f32.mrf.mxu0  ;;  %v1007_v62 = vpop.f32.mrf.mxu1 }
 0x1b7   :  { %v1018_v56 = vpop.f32.mrf.mxu2  ;;  %v1031_v57 = vpop.f32.mrf.mxu3 }
 0x1b8   :  { %v1019_v59 = vadd.f32 %v1018_v56, %v217_v53  ;;  %v1032_v60 = vadd.f32 %v1031_v57, %v218_v54  ;;  %v1180_v53 = vperm.slane %v1170_v27, 6  ;;  %v1181_v54 = vperm.slane %v1170_v27, 7 }
 0x1ba   :  { %v1110_v1 = vrot.slane %v1019_v59, 4  ;;  %v1111_v2 = vrot.slane %v1032_v60, 2 }
 0x1bc   :  { %v1124_v5 = vsel %vm1116_vm6, %v1110_v1, %v1111_v2  ;;  %v1182_v1 = vperm.slane %v1171_v51, 0 }
 0x1bd   :  { %v1125_v6 = vsel %vm1118_vm7, %v1123_v4, %v1124_v5 }
 0x1be   :  { %1135 = vst [vmem:[#allocation2 + $0x10] sm:$0xff] %v1125_v6 }
 0x1bf   :  { %v1020_v7 = vpop.f32.mrf.mxu2  ;;  %v1033_v8 = vpop.f32.mrf.mxu3 }
 0x1ce   :  { %v1044_v9 = vpop.f32.mrf.mxu0  ;;  %v1057_v11 = vpop.f32.mrf.mxu1 }
 0x1cf   :  { %v1058_v12 = vadd.f32 %v1057_v11, %v220_v10  ;;  %v1045_v23 = vadd.f32 %v1044_v9, %v219_v15  ;;  %v1184_v9 = vperm.slane %v1171_v51, 2  ;;  %v1185_v10 = vperm.slane %v1171_v51, 3 }
 0x1d1   :  { %v1112_v18 = vrot.slane %v1058_v12, 6 }
 0x1d3   :  { %v1126_v28 = vsel %vm36_vm0, %v1045_v23, %v1112_v18 }
 0x1d5   :  { %v1070_v16 = vpop.f32.mrf.mxu2  ;;  %v1083_v17 = vpop.f32.mrf.mxu3 }
 0x1d6   :  { %v1071_v19 = vadd.f32 %v1070_v16, %v221_v13  ;;  %v1084_v20 = vadd.f32 %v1083_v17, %v222_v14  ;;  %v1046_v21 = vpop.f32.mrf.mxu0  ;;  %v1059_v22 = vpop.f32.mrf.mxu1  ;;  %v1187_v14 = vperm.slane %v1171_v51, 5 }
 0x1d8   :  { %v1113_v25 = vrot.slane %v1071_v19, 4  ;;  %v1114_v26 = vrot.slane %v1084_v20, 2  ;;  %v1186_v20 = vperm.slane %v1171_v51, 4 }
 0x1da   :  { %v1127_v29 = vsel %vm1116_vm6, %v1113_v25, %v1114_v26 }
 0x1db   :  { %v1128_v24 = vsel %vm1118_vm7, %v1126_v28, %v1127_v29  ;;  %v1188_v28 = vperm.slane %v1171_v51, 6  ;;  %v1189_v29 = vperm.slane %v1171_v51, 7 }
 0x1dc   :  { %1136 = vst [vmem:[#allocation2 + $0x18] sm:$0xff] %v1128_v24 }
 0x1dd   :  { %v1072_v31 = vpop.f32.mrf.mxu2  ;;  %v1085_v3 = vpop.f32.mrf.mxu3  ;;  %1636 = dma.vmem_to_hbm [thread:$0]  %s1632_s2, 512, %s1634_s15, [#allocation3]  }
 0x1de   :  { %v1295_v33 = vpop.f32.mrf.mxu1  ;;  %v1275_v34 = vpop.f32.mrf.mxu0 }
 0x1df   :  { %v1296_v35 = vadd.f32 %v1295_v33, %v1175_v30  ;;  %v1276_v38 = vadd.f32 %v1275_v34, %v1174_v32 }
 0x1e1   :  { %v1594_v37 = vrot.slane %v1296_v35, 6 }
 0x1e3   :  { %v1606_v49 = vsel %vm36_vm0, %v1276_v38, %v1594_v37 }
 0x1e5   :  { %v1315_v41 = vpop.f32.mrf.mxu2  ;;  %v1335_v42 = vpop.f32.mrf.mxu3 }
 0x1e6   :  { %v1316_v43 = vadd.f32 %v1315_v41, %v1176_v36  ;;  %v1336_v39 = vadd.f32 %v1335_v42, %v1177_v0  ;;  %v1375_v44 = vpop.f32.mrf.mxu1  ;;  %v1355_v45 = vpop.f32.mrf.mxu0 }
 0x1e7   :  { %v1376_v50 = vadd.f32 %v1375_v44, %v1179_v40  ;;  %v1356_v57 = vadd.f32 %v1355_v45, %v1178_v46 }
 0x1e8   :  { %v1595_v47 = vrot.slane %v1316_v43, 4  ;;  %v1596_v48 = vrot.slane %v1336_v39, 2 }
 0x1e9   :  { %v1597_v56 = vrot.slane %v1376_v50, 6 }
 0x1ea   :  { %v1607_v52 = vsel %vm1116_vm6, %v1595_v47, %v1596_v48 }
 0x1eb   :  { %v1608_v55 = vsel %vm1118_vm7, %v1606_v49, %v1607_v52  ;;  %v1609_v6 = vsel %vm36_vm0, %v1356_v57, %v1597_v56 }
 0x1ec   :  { %1622 = vst [vmem:[#allocation4] sm:$0xff] %v1608_v55 }
 0x1ed   :  { %v1395_v59 = vpop.f32.mrf.mxu2  ;;  %v1415_v60 = vpop.f32.mrf.mxu3 }
 0x1ee   :  { %v1396_v61 = vadd.f32 %v1395_v59, %v1180_v53  ;;  %v1416_v62 = vadd.f32 %v1415_v60, %v1181_v54  ;;  %v1455_v63 = vpop.f32.mrf.mxu1  ;;  %v1435_v2 = vpop.f32.mrf.mxu0 }
 0x1ef   :  { %v1456_v7 = vadd.f32 %v1455_v63, %v1183_v58  ;;  %v1436_v13 = vadd.f32 %v1435_v2, %v1182_v1 }
 0x1f0   :  { %v1598_v4 = vrot.slane %v1396_v61, 4  ;;  %v1599_v5 = vrot.slane %v1416_v62, 2 }
 0x1f1   :  { %v1600_v12 = vrot.slane %v1456_v7, 6 }
 0x1f2   :  { %v1610_v8 = vsel %vm1116_vm6, %v1598_v4, %v1599_v5 }
 0x1f3   :  { %v1611_v11 = vsel %vm1118_vm7, %v1609_v6, %v1610_v8  ;;  %v1612_v23 = vsel %vm36_vm0, %v1436_v13, %v1600_v12 }
 0x1f4   :  { %1623 = vst [vmem:[#allocation4 + $0x8] sm:$0xff] %v1611_v11 }
 0x1f5   :  { %v1475_v15 = vpop.f32.mrf.mxu2  ;;  %v1495_v16 = vpop.f32.mrf.mxu3 }
 0x1f6   :  { %v1476_v17 = vadd.f32 %v1475_v15, %v1184_v9  ;;  %v1496_v18 = vadd.f32 %v1495_v16, %v1185_v10  ;;  %v1535_v19 = vpop.f32.mrf.mxu1  ;;  %v1515_v26 = vpop.f32.mrf.mxu0 }
 0x1f7   :  { %v1536_v25 = vadd.f32 %v1535_v19, %v1187_v14  ;;  %v1516_v31 = vadd.f32 %v1515_v26, %v1186_v20 }
 0x1f8   :  { %v1601_v21 = vrot.slane %v1476_v17, 4  ;;  %v1602_v22 = vrot.slane %v1496_v18, 2 }
 0x1f9   :  { %v1603_v30 = vrot.slane %v1536_v25, 6 }
 0x1fa   :  { %v1613_v27 = vsel %vm1116_vm6, %v1601_v21, %v1602_v22 }
 0x1fb   :  { %v1614_v24 = vsel %vm1118_vm7, %v1612_v23, %v1613_v27  ;;  %v1615_v0 = vsel %vm36_vm0, %v1516_v31, %v1603_v30 }
 0x1fc   :  { %1624 = vst [vmem:[#allocation4 + $0x10] sm:$0xff] %v1614_v24 }
 0x1fd   :  { %v1555_v3 = vpop.f32.mrf.mxu2  ;;  %v1575_v33 = vpop.f32.mrf.mxu3 }
 0x1fe   :  { %v1556_v34 = vadd.f32 %v1555_v3, %v1188_v28  ;;  %v1576_v35 = vadd.f32 %v1575_v33, %v1189_v29 }
 0x200   :  { %v1604_v32 = vrot.slane %v1556_v34, 4  ;;  %v1605_v36 = vrot.slane %v1576_v35, 2 }
 0x202   :  { %v1616_v37 = vsel %vm1116_vm6, %v1604_v32, %v1605_v36 }
 0x203   :  { %v1617_v38 = vsel %vm1118_vm7, %v1615_v0, %v1616_v37 }
 0x204   :  { %1625 = vst [vmem:[#allocation4 + $0x18] sm:$0xff] %v1617_v38 }
 0x205   :  { %1647 = dma.vmem_to_hbm [thread:$0]  %s1643_s19, 512, %s1645_s22, [#allocation5]  }
 0x206   :  { %2387 = dma.done.wait [#allocation3], 512  }
 0x207   :  { %2388 = vsyncadd [#allocation3], 4294966784 }
 0x208   :  { %2389 = dma.done.wait [#allocation5], 512  }
 0x209   :  { %2390 = vsyncadd [#allocation5], 4294966784 }
 0x20a   :  { %1656 = vsyncpa [#allocation3], 1 }
 0x20b   :  { %1657 = vsyncpa [#allocation5], 1 }

</bundles_post_ra>
